<compile_context>
chip_gen: v7x
topology: tpu7x:2x2x1
jax: 0.10.0
libtpu: 0.0.40
codegen_flags: <defaults>
</compile_context>

<pallas_src>
import functools

import jax
import jax.numpy as jnp
from jax.experimental import pallas as pl
from jax.experimental.pallas import tpu as pltpu


# ----------------------------- configuration -------------------------------
CFG = dict(
    # SiglipVisionConfig (small, synthetic)
    image_size=16, patch_size=4, num_channels=3,
    v_hidden=32, v_inter=64, v_heads=4, v_layers=2, v_ln_eps=1e-6,
    # GemmaConfig (small, synthetic)
    t_hidden=32, t_inter=64, t_heads=4, t_kv_heads=2, t_head_dim=8, t_layers=2,
    vocab=64, rms_eps=1e-6, rope_theta=10000.0,
    # PaliGemmaConfig
    projection_dim=32, hidden_size=32,
    image_token_index=63, pad_token_id=0,
)


# --------------------------- in-kernel helpers ------------------------------
def _gelu_tanh(x):
    # torch.nn.functional.gelu(x, approximate="tanh")
    return 0.5 * x * (1.0 + jnp.tanh(0.7978845608028654 * (x + 0.044715 * x * x * x)))


def _layernorm(x, g, b, eps):
    mu = jnp.mean(x, axis=-1, keepdims=True)
    var = jnp.mean(jnp.square(x - mu), axis=-1, keepdims=True)
    return (x - mu) * jax.lax.rsqrt(var + eps) * g + b


def _rmsnorm(x, g, eps):
    # Gemma RMSNorm in fp32, scale by (1 + weight)
    return x * jax.lax.rsqrt(jnp.mean(x * x, axis=-1, keepdims=True) + eps) * (1.0 + g)


# ------------------------------ Pallas kernels ------------------------------
def _patch_embed_kernel(x_ref, w_ref, b_ref, pos_ref, o_ref):
    # x: (1, nP, C*P*P), w: (C*P*P, Dv) bf16, b: (1, Dv), pos: (nP, Dv)
    y = jnp.dot(x_ref[0].astype(jnp.bfloat16), w_ref[...],
                preferred_element_type=jnp.float32)
    o_ref[0] = (y + b_ref[...] + pos_ref[...]).astype(o_ref.dtype)


def _ln_linear_kernel(x_ref, g_ref, b0_ref, w_ref, b_ref, o_ref, *, eps, out_scale):
    # LayerNorm(x) @ W + b, optionally scaled (used for Siglip QKV and post-LN+projector).
    x = x_ref[...].astype(jnp.float32)
    xn = _layernorm(x, g_ref[...], b0_ref[...], eps)
    y = jnp.dot(xn.astype(jnp.bfloat16), w_ref[...], preferred_element_type=jnp.float32)
    o_ref[...] = ((y + b_ref[...]) * out_scale).astype(o_ref.dtype)


def _rms_linear_kernel(x_ref, g_ref, w_ref, o_ref, *, eps):
    # RMSNorm(x) @ W (no bias) — Gemma fused norm + QKV projection.
    x = x_ref[...].astype(jnp.float32)
    xn = _rmsnorm(x, g_ref[...], eps)
    o_ref[...] = jnp.dot(xn.astype(jnp.bfloat16), w_ref[...],
                         preferred_element_type=jnp.float32).astype(o_ref.dtype)


def _linear_res_kernel(*refs, has_bias):
    # o = res + x @ W (+ b) — fused output projection + residual add.
    if has_bias:
        x_ref, res_ref, w_ref, b_ref, o_ref = refs
    else:
        x_ref, res_ref, w_ref, o_ref = refs
    y = jnp.dot(x_ref[...].astype(jnp.bfloat16), w_ref[...],
                preferred_element_type=jnp.float32)
    if has_bias:
        y = y + b_ref[...]
    o_ref[...] = (res_ref[...] + y).astype(o_ref.dtype)


def _ln_mlp_kernel(x_ref, g_ref, b0_ref, w1_ref, b1_ref, w2_ref, b2_ref, o_ref, *, eps):
    # Siglip MLP block fully fused: o = x + fc2(gelu_tanh(fc1(LN(x)))).
    x = x_ref[...].astype(jnp.float32)
    xn = _layernorm(x, g_ref[...], b0_ref[...], eps)
    h1 = jnp.dot(xn.astype(jnp.bfloat16), w1_ref[...],
                 preferred_element_type=jnp.float32) + b1_ref[...]
    h1 = _gelu_tanh(h1).astype(jnp.bfloat16)
    y = jnp.dot(h1, w2_ref[...], preferred_element_type=jnp.float32) + b2_ref[...]
    o_ref[...] = (x + y).astype(o_ref.dtype)


def _rms_geglu_down_kernel(x_ref, g_ref, wg_ref, wu_ref, wd_ref, o_ref, *, eps):
    # Gemma MLP fully fused: o = x + (gelu_tanh(rms(x)@Wg) * (rms(x)@Wu)) @ Wd.
    # TODO(synk): at real Gemma sizes the intermediate dim would need K/N tiling with a
    # VMEM accumulator; at this toy config everything fits one VMEM block.
    x = x_ref[...].astype(jnp.float32)
    xn = _rmsnorm(x, g_ref[...], eps).astype(jnp.bfloat16)
    gate = jnp.dot(xn, wg_ref[...], preferred_element_type=jnp.float32)
    up = jnp.dot(xn, wu_ref[...], preferred_element_type=jnp.float32)
    mid = (_gelu_tanh(gate) * up).astype(jnp.bfloat16)
    y = jnp.dot(mid, wd_ref[...], preferred_element_type=jnp.float32)
    o_ref[...] = (x + y).astype(o_ref.dtype)


def _rms_lmhead_kernel(x_ref, g_ref, emb_ref, o_ref, *, eps):
    # Final RMSNorm + tied lm_head.  Contract against the (V, H) embedding directly with
    # dot_general dims ((1,),(1,)) — no transposed weight copy in HBM.
    x = x_ref[...].astype(jnp.float32)
    xn = _rmsnorm(x, g_ref[...], eps)
    o_ref[...] = jax.lax.dot_general(
        xn, emb_ref[...], (((1,), (1,)), ((), ())),
        preferred_element_type=jnp.float32).astype(o_ref.dtype)


def _attn_kernel(*refs, nh, nkv, hd, scale, use_rope):
    # Per-batch multi-head attention over the fused qkv activation.
    #   qkv: (1, S, nh*hd + 2*nkv*hd); optional cos/sin: (1, S, hd); o: (1, S, nh*hd)
    # PaliGemma prefill uses FULL attention over image+prefix -> no additive mask at all.
    # GQA: query head h reads kv head h // (nh // nkv) directly from the qkv columns.
    if use_rope:
        qkv_ref, cos_ref, sin_ref, o_ref = refs
    else:
        qkv_ref, o_ref = refs
    rep = nh // nkv
    koff, voff = nh * hd, (nh + nkv) * hd

    if use_rope:
        cos = cos_ref[0]                      # (S, hd) fp32
        sin = sin_ref[0]
        half = hd // 2
        # rotate_half(x) == x @ R with a constant +/-1 permutation matrix built from iota.
        # Keeps the rotation on the MXU and avoids sub-128-lane shuffles at head_dim=8.
        r = jax.lax.broadcasted_iota(jnp.int32, (hd, hd), 0)
        c = jax.lax.broadcasted_iota(jnp.int32, (hd, hd), 1)
        rot = (jnp.where(c == r + half, 1.0, 0.0)
               - jnp.where(r == c + half, 1.0, 0.0)).astype(jnp.float32)

        def rope(x):
            return x * cos + jnp.dot(x, rot, preferred_element_type=jnp.float32) * sin
    else:
        def rope(x):
            return x

    # RoPE each KV head once (not once per query head).
    ks = [rope(qkv_ref[0, :, koff + j * hd: koff + (j + 1) * hd]) for j in range(nkv)]
    vs = [qkv_ref[0, :, voff + j * hd: voff + (j + 1) * hd] for j in range(nkv)]

    for h in range(nh):
        q = rope(qkv_ref[0, :, h * hd:(h + 1) * hd])
        k = ks[h // rep]
        v = vs[h // rep]
        s = jax.lax.dot_general(q, k, (((1,), (1,)), ((), ())),
                                preferred_element_type=jnp.float32) * scale
        s = s - jnp.max(s, axis=-1, keepdims=True)
        p = jnp.exp(s)
        p = p * pl.reciprocal(jnp.sum(p, axis=-1, keepdims=True), approx=True)
        o_ref[0, :, h * hd:(h + 1) * hd] = jnp.dot(
            p, v, preferred_element_type=jnp.float32).astype(o_ref.dtype)


# ------------------------------ kernel wrappers ------------------------------
def _tiled_call(kernel, row_inputs, full_inputs, out_cols, out_dtype=jnp.float32):
    """Row-tiled pallas_call: row_inputs are (M, *) tiled over M; full_inputs (weights,
    norm params, biases) are whole blocks.  One 'parallel' grid axis for megacore."""
    M = row_inputs[0].shape[0]
    tm = 8 if M % 8 == 0 else M
    in_specs = ([pl.BlockSpec((tm, a.shape[1]), lambda i: (i, 0)) for a in row_inputs]
                + [pl.BlockSpec(a.shape, lambda i: (0, 0)) for a in full_inputs])
    return pl.pallas_call(
        kernel,
        grid=(M // tm,),
        in_specs=in_specs,
        out_specs=pl.BlockSpec((tm, out_cols), lambda i: (i, 0)),
        out_shape=jax.ShapeDtypeStruct((M, out_cols), out_dtype),
        compiler_params=pltpu.CompilerParams(dimension_semantics=("parallel",)),
    )(*row_inputs, *full_inputs)


def _patch_embed_call(patches, w, b, pos):
    B, nP, Cpp = patches.shape
    Dv = w.shape[1]
    return pl.pallas_call(
        _patch_embed_kernel,
        grid=(B,),
        in_specs=[pl.BlockSpec((1, nP, Cpp), lambda i: (i, 0, 0)),
                  pl.BlockSpec(w.shape, lambda i: (0, 0)),
                  pl.BlockSpec(b.shape, lambda i: (0, 0)),
                  pl.BlockSpec(pos.shape, lambda i: (0, 0))],
        out_specs=pl.BlockSpec((1, nP, Dv), lambda i: (i, 0, 0)),
        out_shape=jax.ShapeDtypeStruct((B, nP, Dv), jnp.float32),
        compiler_params=pltpu.CompilerParams(dimension_semantics=("parallel",)),
    )(patches, w, b, pos)


def attention(qkv, *, nh, nkv, hd, scale, cos=None, sin=None):
    """qkv: (B, S, nh*hd + 2*nkv*hd) fused projection output.  Returns (B, S, nh*hd)."""
    B, S, QKV = qkv.shape
    use_rope = cos is not None
    in_specs = [pl.BlockSpec((1, S, QKV), lambda i: (i, 0, 0))]
    args = [qkv]
    if use_rope:
        in_specs += [pl.BlockSpec((1, S, hd), lambda i: (i, 0, 0)),
                     pl.BlockSpec((1, S, hd), lambda i: (i, 0, 0))]
        args += [cos, sin]
    return pl.pallas_call(
        functools.partial(_attn_kernel, nh=nh, nkv=nkv, hd=hd, scale=scale,
                          use_rope=use_rope),
        grid=(B,),
        in_specs=in_specs,
        out_specs=pl.BlockSpec((1, S, nh * hd), lambda i: (i, 0, 0)),
        out_shape=jax.ShapeDtypeStruct((B, S, nh * hd), jnp.float32),
        compiler_params=pltpu.CompilerParams(dimension_semantics=("parallel",)),
    )(*args)


# ------------------------------ model pieces --------------------------------
def siglip_and_project(params, pixel_values):
    """SiglipVisionModel + multimodal projector + 1/sqrt(hidden) scaling (fused)."""
    B = pixel_values.shape[0]
    C, P = CFG["num_channels"], CFG["patch_size"]
    nH = nW = CFG["image_size"] // P
    nP = nH * nW
    Dv = CFG["v_hidden"]
    nh = CFG["v_heads"]
    hd = Dv // nh
    eps = CFG["v_ln_eps"]

    # Conv2d(kernel=P, stride=P, padding=valid) == patch extraction + Pallas matmul.
    x = pixel_values.reshape(B, C, nH, P, nW, P)
    x = jnp.transpose(x, (0, 2, 4, 1, 3, 5)).reshape(B, nP, C * P * P)
    h = _patch_embed_call(x, params["v_patch_w"], params["v_patch_b"], params["v_pos_emb"])

    h2 = h.reshape(B * nP, Dv)
    for lp in params["v_layers"]:
        qkv = _tiled_call(functools.partial(_ln_linear_kernel, eps=eps, out_scale=1.0),
                          [h2], [lp["ln1_w"], lp["ln1_b"], lp["wqkv"], lp["bqkv"]], 3 * Dv)
        a = attention(qkv.reshape(B, nP, 3 * Dv), nh=nh, nkv=nh, hd=hd, scale=hd ** -0.5)
        h2 = _tiled_call(functools.partial(_linear_res_kernel, has_bias=True),
                         [a.reshape(B * nP, Dv), h2], [lp["wo"], lp["bo"]], Dv)
        h2 = _tiled_call(functools.partial(_ln_mlp_kernel, eps=eps),
                         [h2], [lp["ln2_w"], lp["ln2_b"], lp["w1"], lp["b1"],
                                lp["w2"], lp["b2"]], Dv)

    # Fused: final post-LN + multimodal projector + divide-by-sqrt(hidden) epilogue.
    Hh = CFG["hidden_size"]
    scaled = _tiled_call(functools.partial(_ln_linear_kernel, eps=eps, out_scale=Hh ** -0.5),
                         [h2], [params["v_post_ln_w"], params["v_post_ln_b"],
                                params["proj_w"], params["proj_b"]],
                         CFG["projection_dim"])
    return scaled.reshape(B, nP, CFG["projection_dim"])


def rotary_cos_sin(position_ids, head_dim, theta):
    inv_freq = 1.0 / (theta ** (jnp.arange(0, head_dim, 2, dtype=jnp.float32) / head_dim))
    freqs = position_ids.astype(jnp.float32)[..., None] * inv_freq[None, None, :]   # (B,S,hd/2)
    emb = jnp.concatenate([freqs, freqs], axis=-1)                                   # (B,S,hd)
    return jnp.cos(emb), jnp.sin(emb)


def gemma_lm(params, h, position_ids):
    B, S, Ht = h.shape
    nh, nkv, hd = CFG["t_heads"], CFG["t_kv_heads"], CFG["t_head_dim"]
    eps = CFG["rms_eps"]
    qkv_dim = (nh + 2 * nkv) * hd
    cos, sin = rotary_cos_sin(position_ids, hd, CFG["rope_theta"])

    h2 = h.reshape(B * S, Ht)
    for lp in params["t_layers"]:
        qkv = _tiled_call(functools.partial(_rms_linear_kernel, eps=eps),
                          [h2], [lp["in_norm"], lp["wqkv"]], qkv_dim)
        a = attention(qkv.reshape(B, S, qkv_dim), nh=nh, nkv=nkv, hd=hd,
                      scale=hd ** -0.5, cos=cos, sin=sin)
        h2 = _tiled_call(functools.partial(_linear_res_kernel, has_bias=False),
                         [a.reshape(B * S, nh * hd), h2], [lp["wo"]], Ht)
        h2 = _tiled_call(functools.partial(_rms_geglu_down_kernel, eps=eps),
                         [h2], [lp["post_norm"], lp["wg"], lp["wu"], lp["wd"]], Ht)

    logits = _tiled_call(functools.partial(_rms_lmhead_kernel, eps=eps),
                         [h2], [params["final_norm"], params["embed_tokens"]], CFG["vocab"])
    return logits.reshape(B, S, CFG["vocab"])


@jax.jit
def paligemma_forward(params, input_ids, pixel_values, attention_mask):
    # NOTE: the reference's `assert torch.all(attention_mask == 1)` is a host-side check;
    # it is performed by the caller (outside this jitted program) to avoid a device->host sync.
    B, S = input_ids.shape
    Hh = CFG["hidden_size"]

    # 1. text embeddings (lookup is glue)
    inputs_embeds = params["embed_tokens"][input_ids]                         # (B, S, H)

    # 2. vision tower + projector (+ /sqrt(H)), all in Pallas kernels
    scaled_img = siglip_and_project(params, pixel_values.astype(jnp.float32))  # (B, nP, H)

    # 3. merge image features into the sequence (masked_scatter equivalent, glue)
    image_mask = input_ids == CFG["image_token_index"]
    pad_mask = input_ids == CFG["pad_token_id"]
    text_mask = (~image_mask) & (~pad_mask)
    img_idx = jnp.clip(jnp.cumsum(image_mask.astype(jnp.int32), axis=-1) - 1,
                       0, scaled_img.shape[1] - 1)
    gathered = scaled_img[jnp.arange(B)[:, None], img_idx]                    # (B, S, H)
    final = jnp.where(text_mask[..., None], inputs_embeds, 0.0)
    final = jnp.where(image_mask[..., None], gathered, final)
    final = jnp.where(pad_mask[..., None], 0.0, final)

    # prefill, no padding -> positions = cumsum(mask); full attention (no mask tensor built).
    position_ids = jnp.cumsum(attention_mask, axis=-1)
    position_ids = jnp.where(attention_mask == 0, 1, position_ids)

    # 4. Gemma language model (embedding normalizer, then fused layers + tied lm_head)
    h = final * jnp.asarray(Hh ** 0.5, jnp.float32)
    logits = gemma_lm(params, h, position_ids)
    return logits.astype(jnp.float32)
    # TODO(synk): kv_cache / autoregressive decode path not implemented (prefill only).


# ------------------------------ parameter init -------------------------------
def init_params(key):
    ks = iter(jax.random.split(key, 256))

    def nrm(*shape):
        # torch-layout (out, in) init
        return 0.02 * jax.random.normal(next(ks), shape, jnp.float32)

    def tw(out_dim, in_dim):
        # stored pre-transposed as (in, out), bf16 for the MXU (no per-forward .T copies)
        return nrm(out_dim, in_dim).T.astype(jnp.bfloat16)

    C, P = CFG["num_channels"], CFG["patch_size"]
    Cpp = C * P * P
    Dv, Iv = CFG["v_hidden"], CFG["v_inter"]
    nP = (CFG["image_size"] // P) ** 2
    Ht, It, V = CFG["t_hidden"], CFG["t_inter"], CFG["vocab"]
    nh, nkv, hd = CFG["t_heads"], CFG["t_kv_heads"], CFG["t_head_dim"]

    p = {
        "v_patch_w": nrm(Dv, C, P, P).reshape(Dv, Cpp).T.astype(jnp.bfloat16),   # (Cpp, Dv)
        "v_patch_b": nrm(Dv).reshape(1, Dv),
        "v_pos_emb": nrm(nP, Dv),
        "v_post_ln_w": jnp.ones((1, Dv), jnp.float32),
        "v_post_ln_b": jnp.zeros((1, Dv), jnp.float32),
        "proj_w": tw(CFG["projection_dim"], Dv),
        "proj_b": nrm(CFG["projection_dim"]).reshape(1, -1),
        "embed_tokens": nrm(V, Ht),                       # tied with lm_head, kept (V, H) fp32
        "final_norm": jnp.zeros((1, Ht), jnp.float32),
        "v_layers": [], "t_layers": [],
    }
    for _ in range(CFG["v_layers"]):
        wq, wk, wv = nrm(Dv, Dv), nrm(Dv, Dv), nrm(Dv, Dv)
        bq, bk, bv = nrm(Dv), nrm(Dv), nrm(Dv)
        p["v_layers"].append({
            "ln1_w": jnp.ones((1, Dv), jnp.float32), "ln1_b": jnp.zeros((1, Dv), jnp.float32),
            "wqkv": jnp.concatenate([wq.T, wk.T, wv.T], axis=1).astype(jnp.bfloat16),  # (Dv,3Dv)
            "bqkv": jnp.concatenate([bq, bk, bv]).reshape(1, 3 * Dv),
            "wo": tw(Dv, Dv), "bo": nrm(Dv).reshape(1, Dv),
            "ln2_w": jnp.ones((1, Dv), jnp.float32), "ln2_b": jnp.zeros((1, Dv), jnp.float32),
            "w1": tw(Iv, Dv), "b1": nrm(Iv).reshape(1, Iv),
            "w2": tw(Dv, Iv), "b2": nrm(Dv).reshape(1, Dv),
        })
    for _ in range(CFG["t_layers"]):
        wq, wk, wv = nrm(nh * hd, Ht), nrm(nkv * hd, Ht), nrm(nkv * hd, Ht)
        p["t_layers"].append({
            "in_norm": jnp.zeros((1, Ht), jnp.float32),
            "wqkv": jnp.concatenate([wq.T, wk.T, wv.T], axis=1).astype(jnp.bfloat16),
            "wo": tw(Ht, nh * hd),
            "post_norm": jnp.zeros((1, Ht), jnp.float32),
            "wg": tw(It, Ht), "wu": tw(It, Ht), "wd": tw(Ht, It),
        })
    return p


# ---------------------------------- main -------------------------------------
if __name__ == "__main__":
    key = jax.random.PRNGKey(0)
    pk, ik, tk = jax.random.split(key, 3)
    params = init_params(pk)

    B = 2
    nP = (CFG["image_size"] // CFG["patch_size"]) ** 2   # 16 image tokens
    text_len = 4
    S = nP + text_len                                     # 20

    pixel_values = jax.random.normal(
        ik, (B, CFG["num_channels"], CFG["image_size"], CFG["image_size"]), jnp.float32)
    text_ids = jax.random.randint(tk, (B, text_len), 1, CFG["image_token_index"], jnp.int32)
    image_ids = jnp.full((B, nP), CFG["image_token_index"], jnp.int32)
    input_ids = jnp.concatenate([image_ids, text_ids], axis=1)
    attention_mask = jnp.ones((B, S), jnp.int32)

    # host-side validation (kept out of the jitted forward to avoid a device->host sync there)
    assert bool(jnp.all(attention_mask == 1)), "the input cannot be padded"

    logits = paligemma_forward(params, input_ids, pixel_values, attention_mask)
    jax.block_until_ready(logits)
    assert logits.shape == (B, S, CFG["vocab"]) and logits.dtype == jnp.float32
    assert bool(jnp.all(jnp.isfinite(logits)))
    print("KERNEL_OK")
</pallas_src>

<mosaic_0001>
module attributes {stable_mosaic.version = 11 : i64} {
  func.func @_linear_res_kernel(%arg0: i32, %arg1: memref<8x32xf32, #tpu.memory_space<vmem>>, %arg2: memref<8x32xf32, #tpu.memory_space<vmem>>, %arg3: memref<32x32xbf16, #tpu.memory_space<vmem>>, %arg4: memref<1x32xf32, #tpu.memory_space<vmem>>, %arg5: memref<8x32xf32, #tpu.memory_space<vmem>>) attributes {dimension_semantics = [#tpu.dimension_semantics<parallel>], iteration_bounds = array<i64: 4>, scalar_prefetch = 0 : i64, scratch_operands = 0 : i64, tpu.core_type = #tpu.core_type<tc>, window_params = [{transform_indices = @transform_0, window_bounds = array<i64: 8, 32>}, {transform_indices = @transform_1, window_bounds = array<i64: 8, 32>}, {pipeline_mode = #tpu.pipeline_mode<synchronous>, transform_indices = @transform_2, window_bounds = array<i64: 32, 32>}, {pipeline_mode = #tpu.pipeline_mode<synchronous>, transform_indices = @transform_3, window_bounds = array<i64: 1, 32>}, {transform_indices = @transform_4, window_bounds = array<i64: 8, 32>}]} {
    %c0 = arith.constant 0 : index
    %c0_0 = arith.constant 0 : index
    %0 = vector.load %arg1[%c0, %c0_0] : memref<8x32xf32, #tpu.memory_space<vmem>>, vector<8x32xf32>
    %1 = arith.truncf %0 : vector<8x32xf32> to vector<8x32xbf16>
    %c0_1 = arith.constant 0 : index
    %c0_2 = arith.constant 0 : index
    %2 = vector.load %arg3[%c0_1, %c0_2] : memref<32x32xbf16, #tpu.memory_space<vmem>>, vector<32x32xbf16>
    %cst = arith.constant dense<0.000000e+00> : vector<8x32xf32>
    %3 = tpu.matmul %1, %2, %cst {dimension_numbers = #tpu.dot_dimension_numbers<[1], [0], [0], [1], [0, 0, 1, 1], [], []>} : vector<8x32xbf16>, vector<32x32xbf16>, vector<8x32xf32> -> vector<8x32xf32>
    %c0_3 = arith.constant 0 : index
    %c0_4 = arith.constant 0 : index
    %4 = vector.load %arg4[%c0_3, %c0_4] : memref<1x32xf32, #tpu.memory_space<vmem>>, vector<1x32xf32>
    %5 = vector.broadcast %4 : vector<1x32xf32> to vector<8x32xf32>
    %6 = arith.addf %3, %5 : vector<8x32xf32>
    %c0_5 = arith.constant 0 : index
    %c0_6 = arith.constant 0 : index
    %7 = vector.load %arg2[%c0_5, %c0_6] : memref<8x32xf32, #tpu.memory_space<vmem>>, vector<8x32xf32>
    %8 = arith.addf %7, %6 : vector<8x32xf32>
    %c0_7 = arith.constant 0 : index
    %c0_8 = arith.constant 0 : index
    %9 = vector.load %arg5[%c0_7, %c0_8] : memref<8x32xf32, #tpu.memory_space<vmem>>, vector<8x32xf32>
    tpu.vector_store %arg5[%c0_7, %c0_8], %8 {strides = array<i32>} : memref<8x32xf32, #tpu.memory_space<vmem>>, vector<8x32xf32>,
    return
  }
  func.func @transform_0(%arg0: i32) -> (i32, i32) {
    %c0_i32 = arith.constant 0 : i32
    %c0_i32_0 = arith.constant 0 : i32
    return %arg0, %c0_i32 : i32, i32
  }
  func.func @transform_1(%arg0: i32) -> (i32, i32) {
    %c0_i32 = arith.constant 0 : i32
    %c0_i32_0 = arith.constant 0 : i32
    return %arg0, %c0_i32 : i32, i32
  }
  func.func @transform_2(%arg0: i32) -> (i32, i32) {
    %c0_i32 = arith.constant 0 : i32
    %c0_i32_0 = arith.constant 0 : i32
    %c0_i32_1 = arith.constant 0 : i32
    return %c0_i32, %c0_i32_0 : i32, i32
  }
  func.func @transform_3(%arg0: i32) -> (i32, i32) {
    %c0_i32 = arith.constant 0 : i32
    %c0_i32_0 = arith.constant 0 : i32
    %c0_i32_1 = arith.constant 0 : i32
    return %c0_i32, %c0_i32_0 : i32, i32
  }
  func.func @transform_4(%arg0: i32) -> (i32, i32) {
    %c0_i32 = arith.constant 0 : i32
    %c0_i32_0 = arith.constant 0 : i32
    return %arg0, %c0_i32 : i32, i32
  }
}

module attributes {stable_mosaic.version = 11 : i64} {
  func.func @_patch_embed_kernel(%arg0: i32, %arg1: memref<1x16x48xf32, #tpu.memory_space<vmem>>, %arg2: memref<48x32xbf16, #tpu.memory_space<vmem>>, %arg3: memref<1x32xf32, #tpu.memory_space<vmem>>, %arg4: memref<16x32xf32, #tpu.memory_space<vmem>>, %arg5: memref<1x16x32xf32, #tpu.memory_space<vmem>>) attributes {dimension_semantics = [#tpu.dimension_semantics<parallel>], iteration_bounds = array<i64: 2>, scalar_prefetch = 0 : i64, scratch_operands = 0 : i64, tpu.core_type = #tpu.core_type<tc>, window_params = [{transform_indices = @transform_0, window_bounds = array<i64: 1, 16, 48>}, {pipeline_mode = #tpu.pipeline_mode<synchronous>, transform_indices = @transform_1, window_bounds = array<i64: 48, 32>}, {pipeline_mode = #tpu.pipeline_mode<synchronous>, transform_indices = @transform_2, window_bounds = array<i64: 1, 32>}, {pipeline_mode = #tpu.pipeline_mode<synchronous>, transform_indices = @transform_3, window_bounds = array<i64: 16, 32>}, {transform_indices = @transform_4, window_bounds = array<i64: 1, 16, 32>}]} {
    %c0 = arith.constant 0 : index
    %c0_0 = arith.constant 0 : index
    %c0_1 = arith.constant 0 : index
    %0 = vector.load %arg1[%c0, %c0_0, %c0_1] : memref<1x16x48xf32, #tpu.memory_space<vmem>>, vector<1x16x48xf32>
    %1 = vector.shape_cast %0 : vector<1x16x48xf32> to vector<16x48xf32>
    %2 = arith.truncf %1 : vector<16x48xf32> to vector<16x48xbf16>
    %c0_2 = arith.constant 0 : index
    %c0_3 = arith.constant 0 : index
    %3 = vector.load %arg2[%c0_2, %c0_3] : memref<48x32xbf16, #tpu.memory_space<vmem>>, vector<48x32xbf16>
    %cst = arith.constant dense<0.000000e+00> : vector<16x32xf32>
    %4 = tpu.matmul %2, %3, %cst {dimension_numbers = #tpu.dot_dimension_numbers<[1], [0], [0], [1], [0, 0, 1, 1], [], []>} : vector<16x48xbf16>, vector<48x32xbf16>, vector<16x32xf32> -> vector<16x32xf32>
    %c0_4 = arith.constant 0 : index
    %c0_5 = arith.constant 0 : index
    %5 = vector.load %arg3[%c0_4, %c0_5] : memref<1x32xf32, #tpu.memory_space<vmem>>, vector<1x32xf32>
    %6 = vector.broadcast %5 : vector<1x32xf32> to vector<16x32xf32>
    %7 = arith.addf %4, %6 : vector<16x32xf32>
    %c0_6 = arith.constant 0 : index
    %c0_7 = arith.constant 0 : index
    %8 = vector.load %arg4[%c0_6, %c0_7] : memref<16x32xf32, #tpu.memory_space<vmem>>, vector<16x32xf32>
    %9 = arith.addf %7, %8 : vector<16x32xf32>
    %c0_8 = arith.constant 0 : index
    %c0_9 = arith.constant 0 : index
    %c0_10 = arith.constant 0 : index
    %10 = vector.load %arg5[%c0_8, %c0_9, %c0_10] : memref<1x16x32xf32, #tpu.memory_space<vmem>>, vector<1x16x32xf32>
    %11 = vector.shape_cast %10 : vector<1x16x32xf32> to vector<16x32xf32>
    %12 = vector.shape_cast %9 : vector<16x32xf32> to vector<1x16x32xf32>
    tpu.vector_store %arg5[%c0_8, %c0_9, %c0_10], %12 {strides = array<i32>} : memref<1x16x32xf32, #tpu.memory_space<vmem>>, vector<1x16x32xf32>,
    return
  }
  func.func @transform_0(%arg0: i32) -> (i32, i32, i32) {
    %c0_i32 = arith.constant 0 : i32
    %c0_i32_0 = arith.constant 0 : i32
    %c0_i32_1 = arith.constant 0 : i32
    return %arg0, %c0_i32, %c0_i32_0 : i32, i32, i32
  }
  func.func @transform_1(%arg0: i32) -> (i32, i32) {
    %c0_i32 = arith.constant 0 : i32
    %c0_i32_0 = arith.constant 0 : i32
    %c0_i32_1 = arith.constant 0 : i32
    return %c0_i32, %c0_i32_0 : i32, i32
  }
  func.func @transform_2(%arg0: i32) -> (i32, i32) {
    %c0_i32 = arith.constant 0 : i32
    %c0_i32_0 = arith.constant 0 : i32
    %c0_i32_1 = arith.constant 0 : i32
    return %c0_i32, %c0_i32_0 : i32, i32
  }
  func.func @transform_3(%arg0: i32) -> (i32, i32) {
    %c0_i32 = arith.constant 0 : i32
    %c0_i32_0 = arith.constant 0 : i32
    %c0_i32_1 = arith.constant 0 : i32
    return %c0_i32, %c0_i32_0 : i32, i32
  }
  func.func @transform_4(%arg0: i32) -> (i32, i32, i32) {
    %c0_i32 = arith.constant 0 : i32
    %c0_i32_0 = arith.constant 0 : i32
    %c0_i32_1 = arith.constant 0 : i32
    return %arg0, %c0_i32, %c0_i32_0 : i32, i32, i32
  }
}

module attributes {stable_mosaic.version = 11 : i64} {
  func.func @_attn_kernel(%arg0: i32, %arg1: memref<1x16x96xf32, #tpu.memory_space<vmem>>, %arg2: memref<1x16x32xf32, #tpu.memory_space<vmem>>) attributes {dimension_semantics = [#tpu.dimension_semantics<parallel>], iteration_bounds = array<i64: 2>, scalar_prefetch = 0 : i64, scratch_operands = 0 : i64, tpu.core_type = #tpu.core_type<tc>, window_params = [{transform_indices = @transform_0, window_bounds = array<i64: 1, 16, 96>}, {transform_indices = @transform_1, window_bounds = array<i64: 1, 16, 32>}]} {
    %c0 = arith.constant 0 : index
    %c0_0 = arith.constant 0 : index
    %c32 = arith.constant 32 : index
    %0 = vector.load %arg1[%c0, %c0_0, %c32] : memref<1x16x96xf32, #tpu.memory_space<vmem>>, vector<1x16x8xf32>
    %1 = vector.shape_cast %0 : vector<1x16x8xf32> to vector<16x8xf32>
    %c0_1 = arith.constant 0 : index
    %c0_2 = arith.constant 0 : index
    %c40 = arith.constant 40 : index
    %2 = vector.load %arg1[%c0_1, %c0_2, %c40] : memref<1x16x96xf32, #tpu.memory_space<vmem>>, vector<1x16x8xf32>
    %3 = vector.shape_cast %2 : vector<1x16x8xf32> to vector<16x8xf32>
    %c0_3 = arith.constant 0 : index
    %c0_4 = arith.constant 0 : index
    %c48 = arith.constant 48 : index
    %4 = vector.load %arg1[%c0_3, %c0_4, %c48] : memref<1x16x96xf32, #tpu.memory_space<vmem>>, vector<1x16x8xf32>
    %5 = vector.shape_cast %4 : vector<1x16x8xf32> to vector<16x8xf32>
    %c0_5 = arith.constant 0 : index
    %c0_6 = arith.constant 0 : index
    %c56 = arith.constant 56 : index
    %6 = vector.load %arg1[%c0_5, %c0_6, %c56] : memref<1x16x96xf32, #tpu.memory_space<vmem>>, vector<1x16x8xf32>
    %7 = vector.shape_cast %6 : vector<1x16x8xf32> to vector<16x8xf32>
    %c0_7 = arith.constant 0 : index
    %c0_8 = arith.constant 0 : index
    %c64 = arith.constant 64 : index
    %8 = vector.load %arg1[%c0_7, %c0_8, %c64] : memref<1x16x96xf32, #tpu.memory_space<vmem>>, vector<1x16x8xf32>
    %9 = vector.shape_cast %8 : vector<1x16x8xf32> to vector<16x8xf32>
    %c0_9 = arith.constant 0 : index
    %c0_10 = arith.constant 0 : index
    %c72 = arith.constant 72 : index
    %10 = vector.load %arg1[%c0_9, %c0_10, %c72] : memref<1x16x96xf32, #tpu.memory_space<vmem>>, vector<1x16x8xf32>
    %11 = vector.shape_cast %10 : vector<1x16x8xf32> to vector<16x8xf32>
    %c0_11 = arith.constant 0 : index
    %c0_12 = arith.constant 0 : index
    %c80 = arith.constant 80 : index
    %12 = vector.load %arg1[%c0_11, %c0_12, %c80] : memref<1x16x96xf32, #tpu.memory_space<vmem>>, vector<1x16x8xf32>
    %13 = vector.shape_cast %12 : vector<1x16x8xf32> to vector<16x8xf32>
    %c0_13 = arith.constant 0 : index
    %c0_14 = arith.constant 0 : index
    %c88 = arith.constant 88 : index
    %14 = vector.load %arg1[%c0_13, %c0_14, %c88] : memref<1x16x96xf32, #tpu.memory_space<vmem>>, vector<1x16x8xf32>
    %15 = vector.shape_cast %14 : vector<1x16x8xf32> to vector<16x8xf32>
    %c0_15 = arith.constant 0 : index
    %c0_16 = arith.constant 0 : index
    %c0_17 = arith.constant 0 : index
    %16 = vector.load %arg1[%c0_15, %c0_16, %c0_17] : memref<1x16x96xf32, #tpu.memory_space<vmem>>, vector<1x16x8xf32>
    %17 = vector.shape_cast %16 : vector<1x16x8xf32> to vector<16x8xf32>
    %cst = arith.constant dense<0.000000e+00> : vector<16x16xf32>
    %18 = tpu.matmul %17, %1, %cst {dimension_numbers = #tpu.dot_dimension_numbers<[1], [1], [0], [0], [0, 0, 1, 0], [], []>} : vector<16x8xf32>, vector<16x8xf32>, vector<16x16xf32> -> vector<16x16xf32>
    %cst_18 = arith.constant 0.353553385 : f32
    %19 = vector.broadcast %cst_18 : f32 to vector<16x16xf32>
    %20 = arith.mulf %18, %19 : vector<16x16xf32>
    %cst_19 = arith.constant dense<0xFF800000> : vector<16xf32>
    %21 = vector.multi_reduction <maximumf>, %20, %cst_19 [1] : vector<16x16xf32> to vector<16xf32>
    %22 = vector.shape_cast %21 : vector<16xf32> to vector<16x1xf32>
    %23 = vector.broadcast %22 : vector<16x1xf32> to vector<16x16xf32>
    %24 = arith.subf %20, %23 : vector<16x16xf32>
    %25 = math.exp %24 : vector<16x16xf32>
    %cst_20 = arith.constant dense<0.000000e+00> : vector<16xf32>
    %26 = vector.multi_reduction <add>, %25, %cst_20 [1] : vector<16x16xf32> to vector<16xf32>
    %27 = vector.shape_cast %26 : vector<16xf32> to vector<16x1xf32>
    %28 = tpu.reciprocal %27 {approx = true} : vector<16x1xf32> -> vector<16x1xf32>
    %29 = vector.broadcast %28 : vector<16x1xf32> to vector<16x16xf32>
    %30 = arith.mulf %25, %29 : vector<16x16xf32>
    %cst_21 = arith.constant dense<0.000000e+00> : vector<16x8xf32>
    %31 = tpu.matmul %30, %9, %cst_21 {dimension_numbers = #tpu.dot_dimension_numbers<[1], [0], [0], [1], [0, 0, 1, 1], [], []>} : vector<16x16xf32>, vector<16x8xf32>, vector<16x8xf32> -> vector<16x8xf32>
    %c0_22 = arith.constant 0 : index
    %c0_23 = arith.constant 0 : index
    %c0_24 = arith.constant 0 : index
    %32 = vector.load %arg2[%c0_22, %c0_23, %c0_24] : memref<1x16x32xf32, #tpu.memory_space<vmem>>, vector<1x16x8xf32>
    %33 = vector.shape_cast %32 : vector<1x16x8xf32> to vector<16x8xf32>
    %34 = vector.shape_cast %31 : vector<16x8xf32> to vector<1x16x8xf32>
    tpu.vector_store %arg2[%c0_22, %c0_23, %c0_24], %34 {strides = array<i32>} : memref<1x16x32xf32, #tpu.memory_space<vmem>>, vector<1x16x8xf32>,
    %c0_25 = arith.constant 0 : index
    %c0_26 = arith.constant 0 : index
    %c8 = arith.constant 8 : index
    %35 = vector.load %arg1[%c0_25, %c0_26, %c8] : memref<1x16x96xf32, #tpu.memory_space<vmem>>, vector<1x16x8xf32>
    %36 = vector.shape_cast %35 : vector<1x16x8xf32> to vector<16x8xf32>
    %cst_27 = arith.constant dense<0.000000e+00> : vector<16x16xf32>
    %37 = tpu.matmul %36, %3, %cst_27 {dimension_numbers = #tpu.dot_dimension_numbers<[1], [1], [0], [0], [0, 0, 1, 0], [], []>} : vector<16x8xf32>, vector<16x8xf32>, vector<16x16xf32> -> vector<16x16xf32>
    %cst_28 = arith.constant 0.353553385 : f32
    %38 = vector.broadcast %cst_28 : f32 to vector<16x16xf32>
    %39 = arith.mulf %37, %38 : vector<16x16xf32>
    %cst_29 = arith.constant dense<0xFF800000> : vector<16xf32>
    %40 = vector.multi_reduction <maximumf>, %39, %cst_29 [1] : vector<16x16xf32> to vector<16xf32>
    %41 = vector.shape_cast %40 : vector<16xf32> to vector<16x1xf32>
    %42 = vector.broadcast %41 : vector<16x1xf32> to vector<16x16xf32>
    %43 = arith.subf %39, %42 : vector<16x16xf32>
    %44 = math.exp %43 : vector<16x16xf32>
    %cst_30 = arith.constant dense<0.000000e+00> : vector<16xf32>
    %45 = vector.multi_reduction <add>, %44, %cst_30 [1] : vector<16x16xf32> to vector<16xf32>
    %46 = vector.shape_cast %45 : vector<16xf32> to vector<16x1xf32>
    %47 = tpu.reciprocal %46 {approx = true} : vector<16x1xf32> -> vector<16x1xf32>
    %48 = vector.broadcast %47 : vector<16x1xf32> to vector<16x16xf32>
    %49 = arith.mulf %44, %48 : vector<16x16xf32>
    %cst_31 = arith.constant dense<0.000000e+00> : vector<16x8xf32>
    %50 = tpu.matmul %49, %11, %cst_31 {dimension_numbers = #tpu.dot_dimension_numbers<[1], [0], [0], [1], [0, 0, 1, 1], [], []>} : vector<16x16xf32>, vector<16x8xf32>, vector<16x8xf32> -> vector<16x8xf32>
    %c0_32 = arith.constant 0 : index
    %c0_33 = arith.constant 0 : index
    %c8_34 = arith.constant 8 : index
    %51 = vector.load %arg2[%c0_32, %c0_33, %c8_34] : memref<1x16x32xf32, #tpu.memory_space<vmem>>, vector<1x16x8xf32>
    %52 = vector.shape_cast %51 : vector<1x16x8xf32> to vector<16x8xf32>
    %53 = vector.shape_cast %50 : vector<16x8xf32> to vector<1x16x8xf32>
    tpu.vector_store %arg2[%c0_32, %c0_33, %c8_34], %53 {strides = array<i32>} : memref<1x16x32xf32, #tpu.memory_space<vmem>>, vector<1x16x8xf32>,
    %c0_35 = arith.constant 0 : index
    %c0_36 = arith.constant 0 : index
    %c16 = arith.constant 16 : index
    %54 = vector.load %arg1[%c0_35, %c0_36, %c16] : memref<1x16x96xf32, #tpu.memory_space<vmem>>, vector<1x16x8xf32>
    %55 = vector.shape_cast %54 : vector<1x16x8xf32> to vector<16x8xf32>
    %cst_37 = arith.constant dense<0.000000e+00> : vector<16x16xf32>
    %56 = tpu.matmul %55, %5, %cst_37 {dimension_numbers = #tpu.dot_dimension_numbers<[1], [1], [0], [0], [0, 0, 1, 0], [], []>} : vector<16x8xf32>, vector<16x8xf32>, vector<16x16xf32> -> vector<16x16xf32>
    %cst_38 = arith.constant 0.353553385 : f32
    %57 = vector.broadcast %cst_38 : f32 to vector<16x16xf32>
    %58 = arith.mulf %56, %57 : vector<16x16xf32>
    %cst_39 = arith.constant dense<0xFF800000> : vector<16xf32>
    %59 = vector.multi_reduction <maximumf>, %58, %cst_39 [1] : vector<16x16xf32> to vector<16xf32>
    %60 = vector.shape_cast %59 : vector<16xf32> to vector<16x1xf32>
    %61 = vector.broadcast %60 : vector<16x1xf32> to vector<16x16xf32>
    %62 = arith.subf %58, %61 : vector<16x16xf32>
    %63 = math.exp %62 : vector<16x16xf32>
    %cst_40 = arith.constant dense<0.000000e+00> : vector<16xf32>
    %64 = vector.multi_reduction <add>, %63, %cst_40 [1] : vector<16x16xf32> to vector<16xf32>
    %65 = vector.shape_cast %64 : vector<16xf32> to vector<16x1xf32>
    %66 = tpu.reciprocal %65 {approx = true} : vector<16x1xf32> -> vector<16x1xf32>
    %67 = vector.broadcast %66 : vector<16x1xf32> to vector<16x16xf32>
    %68 = arith.mulf %63, %67 : vector<16x16xf32>
    %cst_41 = arith.constant dense<0.000000e+00> : vector<16x8xf32>
    %69 = tpu.matmul %68, %13, %cst_41 {dimension_numbers = #tpu.dot_dimension_numbers<[1], [0], [0], [1], [0, 0, 1, 1], [], []>} : vector<16x16xf32>, vector<16x8xf32>, vector<16x8xf32> -> vector<16x8xf32>
    %c0_42 = arith.constant 0 : index
    %c0_43 = arith.constant 0 : index
    %c16_44 = arith.constant 16 : index
    %70 = vector.load %arg2[%c0_42, %c0_43, %c16_44] : memref<1x16x32xf32, #tpu.memory_space<vmem>>, vector<1x16x8xf32>
    %71 = vector.shape_cast %70 : vector<1x16x8xf32> to vector<16x8xf32>
    %72 = vector.shape_cast %69 : vector<16x8xf32> to vector<1x16x8xf32>
    tpu.vector_store %arg2[%c0_42, %c0_43, %c16_44], %72 {strides = array<i32>} : memref<1x16x32xf32, #tpu.memory_space<vmem>>, vector<1x16x8xf32>,
    %c0_45 = arith.constant 0 : index
    %c0_46 = arith.constant 0 : index
    %c24 = arith.constant 24 : index
    %73 = vector.load %arg1[%c0_45, %c0_46, %c24] : memref<1x16x96xf32, #tpu.memory_space<vmem>>, vector<1x16x8xf32>
    %74 = vector.shape_cast %73 : vector<1x16x8xf32> to vector<16x8xf32>
    %cst_47 = arith.constant dense<0.000000e+00> : vector<16x16xf32>
    %75 = tpu.matmul %74, %7, %cst_47 {dimension_numbers = #tpu.dot_dimension_numbers<[1], [1], [0], [0], [0, 0, 1, 0], [], []>} : vector<16x8xf32>, vector<16x8xf32>, vector<16x16xf32> -> vector<16x16xf32>
    %cst_48 = arith.constant 0.353553385 : f32
    %76 = vector.broadcast %cst_48 : f32 to vector<16x16xf32>
    %77 = arith.mulf %75, %76 : vector<16x16xf32>
    %cst_49 = arith.constant dense<0xFF800000> : vector<16xf32>
    %78 = vector.multi_reduction <maximumf>, %77, %cst_49 [1] : vector<16x16xf32> to vector<16xf32>
    %79 = vector.shape_cast %78 : vector<16xf32> to vector<16x1xf32>
    %80 = vector.broadcast %79 : vector<16x1xf32> to vector<16x16xf32>
    %81 = arith.subf %77, %80 : vector<16x16xf32>
    %82 = math.exp %81 : vector<16x16xf32>
    %cst_50 = arith.constant dense<0.000000e+00> : vector<16xf32>
    %83 = vector.multi_reduction <add>, %82, %cst_50 [1] : vector<16x16xf32> to vector<16xf32>
    %84 = vector.shape_cast %83 : vector<16xf32> to vector<16x1xf32>
    %85 = tpu.reciprocal %84 {approx = true} : vector<16x1xf32> -> vector<16x1xf32>
    %86 = vector.broadcast %85 : vector<16x1xf32> to vector<16x16xf32>
    %87 = arith.mulf %82, %86 : vector<16x16xf32>
    %cst_51 = arith.constant dense<0.000000e+00> : vector<16x8xf32>
    %88 = tpu.matmul %87, %15, %cst_51 {dimension_numbers = #tpu.dot_dimension_numbers<[1], [0], [0], [1], [0, 0, 1, 1], [], []>} : vector<16x16xf32>, vector<16x8xf32>, vector<16x8xf32> -> vector<16x8xf32>
    %c0_52 = arith.constant 0 : index
    %c0_53 = arith.constant 0 : index
    %c24_54 = arith.constant 24 : index
    %89 = vector.load %arg2[%c0_52, %c0_53, %c24_54] : memref<1x16x32xf32, #tpu.memory_space<vmem>>, vector<1x16x8xf32>
    %90 = vector.shape_cast %89 : vector<1x16x8xf32> to vector<16x8xf32>
    %91 = vector.shape_cast %88 : vector<16x8xf32> to vector<1x16x8xf32>
    tpu.vector_store %arg2[%c0_52, %c0_53, %c24_54], %91 {strides = array<i32>} : memref<1x16x32xf32, #tpu.memory_space<vmem>>, vector<1x16x8xf32>,
    return
  }
  func.func @transform_0(%arg0: i32) -> (i32, i32, i32) {
    %c0_i32 = arith.constant 0 : i32
    %c0_i32_0 = arith.constant 0 : i32
    %c0_i32_1 = arith.constant 0 : i32
    return %arg0, %c0_i32, %c0_i32_0 : i32, i32, i32
  }
  func.func @transform_1(%arg0: i32) -> (i32, i32, i32) {
    %c0_i32 = arith.constant 0 : i32
    %c0_i32_0 = arith.constant 0 : i32
    %c0_i32_1 = arith.constant 0 : i32
    return %arg0, %c0_i32, %c0_i32_0 : i32, i32, i32
  }
}

module attributes {stable_mosaic.version = 11 : i64} {
  func.func @_ln_linear_kernel(%arg0: i32, %arg1: memref<8x32xf32, #tpu.memory_space<vmem>>, %arg2: memref<1x32xf32, #tpu.memory_space<vmem>>, %arg3: memref<1x32xf32, #tpu.memory_space<vmem>>, %arg4: memref<32x96xbf16, #tpu.memory_space<vmem>>, %arg5: memref<1x96xf32, #tpu.memory_space<vmem>>, %arg6: memref<8x96xf32, #tpu.memory_space<vmem>>) attributes {dimension_semantics = [#tpu.dimension_semantics<parallel>], iteration_bounds = array<i64: 4>, scalar_prefetch = 0 : i64, scratch_operands = 0 : i64, tpu.core_type = #tpu.core_type<tc>, window_params = [{transform_indices = @transform_0, window_bounds = array<i64: 8, 32>}, {pipeline_mode = #tpu.pipeline_mode<synchronous>, transform_indices = @transform_1, window_bounds = array<i64: 1, 32>}, {pipeline_mode = #tpu.pipeline_mode<synchronous>, transform_indices = @transform_2, window_bounds = array<i64: 1, 32>}, {pipeline_mode = #tpu.pipeline_mode<synchronous>, transform_indices = @transform_3, window_bounds = array<i64: 32, 96>}, {pipeline_mode = #tpu.pipeline_mode<synchronous>, transform_indices = @transform_4, window_bounds = array<i64: 1, 96>}, {transform_indices = @transform_5, window_bounds = array<i64: 8, 96>}]} {
    %c0 = arith.constant 0 : index
    %c0_0 = arith.constant 0 : index
    %0 = vector.load %arg1[%c0, %c0_0] : memref<8x32xf32, #tpu.memory_space<vmem>>, vector<8x32xf32>
    %c0_1 = arith.constant 0 : index
    %c0_2 = arith.constant 0 : index
    %1 = vector.load %arg2[%c0_1, %c0_2] : memref<1x32xf32, #tpu.memory_space<vmem>>, vector<1x32xf32>
    %c0_3 = arith.constant 0 : index
    %c0_4 = arith.constant 0 : index
    %2 = vector.load %arg3[%c0_3, %c0_4] : memref<1x32xf32, #tpu.memory_space<vmem>>, vector<1x32xf32>
    %cst = arith.constant dense<0.000000e+00> : vector<8xf32>
    %3 = vector.multi_reduction <add>, %0, %cst [1] : vector<8x32xf32> to vector<8xf32>
    %4 = vector.shape_cast %3 : vector<8xf32> to vector<8x1xf32>
    %cst_5 = arith.constant 3.200000e+01 : f32
    %5 = vector.broadcast %cst_5 : f32 to vector<8x1xf32>
    %6 = arith.divf %4, %5 : vector<8x1xf32>
    %7 = vector.broadcast %6 : vector<8x1xf32> to vector<8x32xf32>
    %8 = arith.subf %0, %7 : vector<8x32xf32>
    %9 = arith.mulf %8, %8 : vector<8x32xf32>
    %cst_6 = arith.constant dense<0.000000e+00> : vector<8xf32>
    %10 = vector.multi_reduction <add>, %9, %cst_6 [1] : vector<8x32xf32> to vector<8xf32>
    %11 = vector.shape_cast %10 : vector<8xf32> to vector<8x1xf32>
    %cst_7 = arith.constant 3.200000e+01 : f32
    %12 = vector.broadcast %cst_7 : f32 to vector<8x1xf32>
    %13 = arith.divf %11, %12 : vector<8x1xf32>
    %14 = vector.broadcast %6 : vector<8x1xf32> to vector<8x32xf32>
    %15 = arith.subf %0, %14 : vector<8x32xf32>
    %cst_8 = arith.constant 9.99999997E-7 : f32
    %16 = vector.broadcast %cst_8 : f32 to vector<8x1xf32>
    %17 = arith.addf %13, %16 : vector<8x1xf32>
    %18 = math.rsqrt %17 : vector<8x1xf32>
    %19 = vector.broadcast %18 : vector<8x1xf32> to vector<8x32xf32>
    %20 = arith.mulf %15, %19 : vector<8x32xf32>
    %21 = vector.broadcast %1 : vector<1x32xf32> to vector<8x32xf32>
    %22 = arith.mulf %20, %21 : vector<8x32xf32>
    %23 = vector.broadcast %2 : vector<1x32xf32> to vector<8x32xf32>
    %24 = arith.addf %22, %23 : vector<8x32xf32>
    %25 = arith.truncf %24 : vector<8x32xf32> to vector<8x32xbf16>
    %c0_9 = arith.constant 0 : index
    %c0_10 = arith.constant 0 : index
    %26 = vector.load %arg4[%c0_9, %c0_10] : memref<32x96xbf16, #tpu.memory_space<vmem>>, vector<32x96xbf16>
    %cst_11 = arith.constant dense<0.000000e+00> : vector<8x96xf32>
    %27 = tpu.matmul %25, %26, %cst_11 {dimension_numbers = #tpu.dot_dimension_numbers<[1], [0], [0], [1], [0, 0, 1, 1], [], []>} : vector<8x32xbf16>, vector<32x96xbf16>, vector<8x96xf32> -> vector<8x96xf32>
    %c0_12 = arith.constant 0 : index
    %c0_13 = arith.constant 0 : index
    %28 = vector.load %arg5[%c0_12, %c0_13] : memref<1x96xf32, #tpu.memory_space<vmem>>, vector<1x96xf32>
    %29 = vector.broadcast %28 : vector<1x96xf32> to vector<8x96xf32>
    %30 = arith.addf %27, %29 : vector<8x96xf32>
    %cst_14 = arith.constant 1.000000e+00 : f32
    %31 = vector.broadcast %cst_14 : f32 to vector<8x96xf32>
    %32 = arith.mulf %30, %31 : vector<8x96xf32>
    %c0_15 = arith.constant 0 : index
    %c0_16 = arith.constant 0 : index
    %33 = vector.load %arg6[%c0_15, %c0_16] : memref<8x96xf32, #tpu.memory_space<vmem>>, vector<8x96xf32>
    tpu.vector_store %arg6[%c0_15, %c0_16], %32 {strides = array<i32>} : memref<8x96xf32, #tpu.memory_space<vmem>>, vector<8x96xf32>,
    return
  }
  func.func @transform_0(%arg0: i32) -> (i32, i32) {
    %c0_i32 = arith.constant 0 : i32
    %c0_i32_0 = arith.constant 0 : i32
    return %arg0, %c0_i32 : i32, i32
  }
  func.func @transform_1(%arg0: i32) -> (i32, i32) {
    %c0_i32 = arith.constant 0 : i32
    %c0_i32_0 = arith.constant 0 : i32
    %c0_i32_1 = arith.constant 0 : i32
    return %c0_i32, %c0_i32_0 : i32, i32
  }
  func.func @transform_2(%arg0: i32) -> (i32, i32) {
    %c0_i32 = arith.constant 0 : i32
    %c0_i32_0 = arith.constant 0 : i32
    %c0_i32_1 = arith.constant 0 : i32
    return %c0_i32, %c0_i32_0 : i32, i32
  }
  func.func @transform_3(%arg0: i32) -> (i32, i32) {
    %c0_i32 = arith.constant 0 : i32
    %c0_i32_0 = arith.constant 0 : i32
    %c0_i32_1 = arith.constant 0 : i32
    return %c0_i32, %c0_i32_0 : i32, i32
  }
  func.func @transform_4(%arg0: i32) -> (i32, i32) {
    %c0_i32 = arith.constant 0 : i32
    %c0_i32_0 = arith.constant 0 : i32
    %c0_i32_1 = arith.constant 0 : i32
    return %c0_i32, %c0_i32_0 : i32, i32
  }
  func.func @transform_5(%arg0: i32) -> (i32, i32) {
    %c0_i32 = arith.constant 0 : i32
    %c0_i32_0 = arith.constant 0 : i32
    return %arg0, %c0_i32 : i32, i32
  }
}

module attributes {stable_mosaic.version = 11 : i64} {
  func.func @_ln_mlp_kernel(%arg0: i32, %arg1: memref<8x32xf32, #tpu.memory_space<vmem>>, %arg2: memref<1x32xf32, #tpu.memory_space<vmem>>, %arg3: memref<1x32xf32, #tpu.memory_space<vmem>>, %arg4: memref<32x64xbf16, #tpu.memory_space<vmem>>, %arg5: memref<1x64xf32, #tpu.memory_space<vmem>>, %arg6: memref<64x32xbf16, #tpu.memory_space<vmem>>, %arg7: memref<1x32xf32, #tpu.memory_space<vmem>>, %arg8: memref<8x32xf32, #tpu.memory_space<vmem>>) attributes {dimension_semantics = [#tpu.dimension_semantics<parallel>], iteration_bounds = array<i64: 4>, scalar_prefetch = 0 : i64, scratch_operands = 0 : i64, tpu.core_type = #tpu.core_type<tc>, window_params = [{transform_indices = @transform_0, window_bounds = array<i64: 8, 32>}, {pipeline_mode = #tpu.pipeline_mode<synchronous>, transform_indices = @transform_1, window_bounds = array<i64: 1, 32>}, {pipeline_mode = #tpu.pipeline_mode<synchronous>, transform_indices = @transform_2, window_bounds = array<i64: 1, 32>}, {pipeline_mode = #tpu.pipeline_mode<synchronous>, transform_indices = @transform_3, window_bounds = array<i64: 32, 64>}, {pipeline_mode = #tpu.pipeline_mode<synchronous>, transform_indices = @transform_4, window_bounds = array<i64: 1, 64>}, {pipeline_mode = #tpu.pipeline_mode<synchronous>, transform_indices = @transform_5, window_bounds = array<i64: 64, 32>}, {pipeline_mode = #tpu.pipeline_mode<synchronous>, transform_indices = @transform_6, window_bounds = array<i64: 1, 32>}, {transform_indices = @transform_7, window_bounds = array<i64: 8, 32>}]} {
    %c0 = arith.constant 0 : index
    %c0_0 = arith.constant 0 : index
    %0 = vector.load %arg1[%c0, %c0_0] : memref<8x32xf32, #tpu.memory_space<vmem>>, vector<8x32xf32>
    %c0_1 = arith.constant 0 : index
    %c0_2 = arith.constant 0 : index
    %1 = vector.load %arg2[%c0_1, %c0_2] : memref<1x32xf32, #tpu.memory_space<vmem>>, vector<1x32xf32>
    %c0_3 = arith.constant 0 : index
    %c0_4 = arith.constant 0 : index
    %2 = vector.load %arg3[%c0_3, %c0_4] : memref<1x32xf32, #tpu.memory_space<vmem>>, vector<1x32xf32>
    %cst = arith.constant dense<0.000000e+00> : vector<8xf32>
    %3 = vector.multi_reduction <add>, %0, %cst [1] : vector<8x32xf32> to vector<8xf32>
    %4 = vector.shape_cast %3 : vector<8xf32> to vector<8x1xf32>
    %cst_5 = arith.constant 3.200000e+01 : f32
    %5 = vector.broadcast %cst_5 : f32 to vector<8x1xf32>
    %6 = arith.divf %4, %5 : vector<8x1xf32>
    %7 = vector.broadcast %6 : vector<8x1xf32> to vector<8x32xf32>
    %8 = arith.subf %0, %7 : vector<8x32xf32>
    %9 = arith.mulf %8, %8 : vector<8x32xf32>
    %cst_6 = arith.constant dense<0.000000e+00> : vector<8xf32>
    %10 = vector.multi_reduction <add>, %9, %cst_6 [1] : vector<8x32xf32> to vector<8xf32>
    %11 = vector.shape_cast %10 : vector<8xf32> to vector<8x1xf32>
    %cst_7 = arith.constant 3.200000e+01 : f32
    %12 = vector.broadcast %cst_7 : f32 to vector<8x1xf32>
    %13 = arith.divf %11, %12 : vector<8x1xf32>
    %14 = vector.broadcast %6 : vector<8x1xf32> to vector<8x32xf32>
    %15 = arith.subf %0, %14 : vector<8x32xf32>
    %cst_8 = arith.constant 9.99999997E-7 : f32
    %16 = vector.broadcast %cst_8 : f32 to vector<8x1xf32>
    %17 = arith.addf %13, %16 : vector<8x1xf32>
    %18 = math.rsqrt %17 : vector<8x1xf32>
    %19 = vector.broadcast %18 : vector<8x1xf32> to vector<8x32xf32>
    %20 = arith.mulf %15, %19 : vector<8x32xf32>
    %21 = vector.broadcast %1 : vector<1x32xf32> to vector<8x32xf32>
    %22 = arith.mulf %20, %21 : vector<8x32xf32>
    %23 = vector.broadcast %2 : vector<1x32xf32> to vector<8x32xf32>
    %24 = arith.addf %22, %23 : vector<8x32xf32>
    %25 = arith.truncf %24 : vector<8x32xf32> to vector<8x32xbf16>
    %c0_9 = arith.constant 0 : index
    %c0_10 = arith.constant 0 : index
    %26 = vector.load %arg4[%c0_9, %c0_10] : memref<32x64xbf16, #tpu.memory_space<vmem>>, vector<32x64xbf16>
    %cst_11 = arith.constant dense<0.000000e+00> : vector<8x64xf32>
    %27 = tpu.matmul %25, %26, %cst_11 {dimension_numbers = #tpu.dot_dimension_numbers<[1], [0], [0], [1], [0, 0, 1, 1], [], []>} : vector<8x32xbf16>, vector<32x64xbf16>, vector<8x64xf32> -> vector<8x64xf32>
    %c0_12 = arith.constant 0 : index
    %c0_13 = arith.constant 0 : index
    %28 = vector.load %arg5[%c0_12, %c0_13] : memref<1x64xf32, #tpu.memory_space<vmem>>, vector<1x64xf32>
    %29 = vector.broadcast %28 : vector<1x64xf32> to vector<8x64xf32>
    %30 = arith.addf %27, %29 : vector<8x64xf32>
    %cst_14 = arith.constant 5.000000e-01 : f32
    %31 = vector.broadcast %cst_14 : f32 to vector<8x64xf32>
    %32 = arith.mulf %31, %30 : vector<8x64xf32>
    %cst_15 = arith.constant 4.471500e-02 : f32
    %33 = vector.broadcast %cst_15 : f32 to vector<8x64xf32>
    %34 = arith.mulf %33, %30 : vector<8x64xf32>
    %35 = arith.mulf %34, %30 : vector<8x64xf32>
    %36 = arith.mulf %35, %30 : vector<8x64xf32>
    %37 = arith.addf %30, %36 : vector<8x64xf32>
    %cst_16 = arith.constant 0.797884583 : f32
    %38 = vector.broadcast %cst_16 : f32 to vector<8x64xf32>
    %39 = arith.mulf %38, %37 : vector<8x64xf32>
    %40 = math.tanh %39 : vector<8x64xf32>
    %cst_17 = arith.constant 1.000000e+00 : f32
    %41 = vector.broadcast %cst_17 : f32 to vector<8x64xf32>
    %42 = arith.addf %41, %40 : vector<8x64xf32>
    %43 = arith.mulf %32, %42 : vector<8x64xf32>
    %44 = arith.truncf %43 : vector<8x64xf32> to vector<8x64xbf16>
    %c0_18 = arith.constant 0 : index
    %c0_19 = arith.constant 0 : index
    %45 = vector.load %arg6[%c0_18, %c0_19] : memref<64x32xbf16, #tpu.memory_space<vmem>>, vector<64x32xbf16>
    %cst_20 = arith.constant dense<0.000000e+00> : vector<8x32xf32>
    %46 = tpu.matmul %44, %45, %cst_20 {dimension_numbers = #tpu.dot_dimension_numbers<[1], [0], [0], [1], [0, 0, 1, 1], [], []>} : vector<8x64xbf16>, vector<64x32xbf16>, vector<8x32xf32> -> vector<8x32xf32>
    %c0_21 = arith.constant 0 : index
    %c0_22 = arith.constant 0 : index
    %47 = vector.load %arg7[%c0_21, %c0_22] : memref<1x32xf32, #tpu.memory_space<vmem>>, vector<1x32xf32>
    %48 = vector.broadcast %47 : vector<1x32xf32> to vector<8x32xf32>
    %49 = arith.addf %46, %48 : vector<8x32xf32>
    %50 = arith.addf %0, %49 : vector<8x32xf32>
    %c0_23 = arith.constant 0 : index
    %c0_24 = arith.constant 0 : index
    %51 = vector.load %arg8[%c0_23, %c0_24] : memref<8x32xf32, #tpu.memory_space<vmem>>, vector<8x32xf32>
    tpu.vector_store %arg8[%c0_23, %c0_24], %50 {strides = array<i32>} : memref<8x32xf32, #tpu.memory_space<vmem>>, vector<8x32xf32>,
    return
  }
  func.func @transform_0(%arg0: i32) -> (i32, i32) {
    %c0_i32 = arith.constant 0 : i32
    %c0_i32_0 = arith.constant 0 : i32
    return %arg0, %c0_i32 : i32, i32
  }
  func.func @transform_1(%arg0: i32) -> (i32, i32) {
    %c0_i32 = arith.constant 0 : i32
    %c0_i32_0 = arith.constant 0 : i32
    %c0_i32_1 = arith.constant 0 : i32
    return %c0_i32, %c0_i32_0 : i32, i32
  }
  func.func @transform_2(%arg0: i32) -> (i32, i32) {
    %c0_i32 = arith.constant 0 : i32
    %c0_i32_0 = arith.constant 0 : i32
    %c0_i32_1 = arith.constant 0 : i32
    return %c0_i32, %c0_i32_0 : i32, i32
  }
  func.func @transform_3(%arg0: i32) -> (i32, i32) {
    %c0_i32 = arith.constant 0 : i32
    %c0_i32_0 = arith.constant 0 : i32
    %c0_i32_1 = arith.constant 0 : i32
    return %c0_i32, %c0_i32_0 : i32, i32
  }
  func.func @transform_4(%arg0: i32) -> (i32, i32) {
    %c0_i32 = arith.constant 0 : i32
    %c0_i32_0 = arith.constant 0 : i32
    %c0_i32_1 = arith.constant 0 : i32
    return %c0_i32, %c0_i32_0 : i32, i32
  }
  func.func @transform_5(%arg0: i32) -> (i32, i32) {
    %c0_i32 = arith.constant 0 : i32
    %c0_i32_0 = arith.constant 0 : i32
    %c0_i32_1 = arith.constant 0 : i32
    return %c0_i32, %c0_i32_0 : i32, i32
  }
  func.func @transform_6(%arg0: i32) -> (i32, i32) {
    %c0_i32 = arith.constant 0 : i32
    %c0_i32_0 = arith.constant 0 : i32
    %c0_i32_1 = arith.constant 0 : i32
    return %c0_i32, %c0_i32_0 : i32, i32
  }
  func.func @transform_7(%arg0: i32) -> (i32, i32) {
    %c0_i32 = arith.constant 0 : i32
    %c0_i32_0 = arith.constant 0 : i32
    return %arg0, %c0_i32 : i32, i32
  }
}

module attributes {stable_mosaic.version = 11 : i64} {
  func.func @_ln_linear_kernel(%arg0: i32, %arg1: memref<8x32xf32, #tpu.memory_space<vmem>>, %arg2: memref<1x32xf32, #tpu.memory_space<vmem>>, %arg3: memref<1x32xf32, #tpu.memory_space<vmem>>, %arg4: memref<32x32xbf16, #tpu.memory_space<vmem>>, %arg5: memref<1x32xf32, #tpu.memory_space<vmem>>, %arg6: memref<8x32xf32, #tpu.memory_space<vmem>>) attributes {dimension_semantics = [#tpu.dimension_semantics<parallel>], iteration_bounds = array<i64: 4>, scalar_prefetch = 0 : i64, scratch_operands = 0 : i64, tpu.core_type = #tpu.core_type<tc>, window_params = [{transform_indices = @transform_0, window_bounds = array<i64: 8, 32>}, {pipeline_mode = #tpu.pipeline_mode<synchronous>, transform_indices = @transform_1, window_bounds = array<i64: 1, 32>}, {pipeline_mode = #tpu.pipeline_mode<synchronous>, transform_indices = @transform_2, window_bounds = array<i64: 1, 32>}, {pipeline_mode = #tpu.pipeline_mode<synchronous>, transform_indices = @transform_3, window_bounds = array<i64: 32, 32>}, {pipeline_mode = #tpu.pipeline_mode<synchronous>, transform_indices = @transform_4, window_bounds = array<i64: 1, 32>}, {transform_indices = @transform_5, window_bounds = array<i64: 8, 32>}]} {
    %c0 = arith.constant 0 : index
    %c0_0 = arith.constant 0 : index
    %0 = vector.load %arg1[%c0, %c0_0] : memref<8x32xf32, #tpu.memory_space<vmem>>, vector<8x32xf32>
    %c0_1 = arith.constant 0 : index
    %c0_2 = arith.constant 0 : index
    %1 = vector.load %arg2[%c0_1, %c0_2] : memref<1x32xf32, #tpu.memory_space<vmem>>, vector<1x32xf32>
    %c0_3 = arith.constant 0 : index
    %c0_4 = arith.constant 0 : index
    %2 = vector.load %arg3[%c0_3, %c0_4] : memref<1x32xf32, #tpu.memory_space<vmem>>, vector<1x32xf32>
    %cst = arith.constant dense<0.000000e+00> : vector<8xf32>
    %3 = vector.multi_reduction <add>, %0, %cst [1] : vector<8x32xf32> to vector<8xf32>
    %4 = vector.shape_cast %3 : vector<8xf32> to vector<8x1xf32>
    %cst_5 = arith.constant 3.200000e+01 : f32
    %5 = vector.broadcast %cst_5 : f32 to vector<8x1xf32>
    %6 = arith.divf %4, %5 : vector<8x1xf32>
    %7 = vector.broadcast %6 : vector<8x1xf32> to vector<8x32xf32>
    %8 = arith.subf %0, %7 : vector<8x32xf32>
    %9 = arith.mulf %8, %8 : vector<8x32xf32>
    %cst_6 = arith.constant dense<0.000000e+00> : vector<8xf32>
    %10 = vector.multi_reduction <add>, %9, %cst_6 [1] : vector<8x32xf32> to vector<8xf32>
    %11 = vector.shape_cast %10 : vector<8xf32> to vector<8x1xf32>
    %cst_7 = arith.constant 3.200000e+01 : f32
    %12 = vector.broadcast %cst_7 : f32 to vector<8x1xf32>
    %13 = arith.divf %11, %12 : vector<8x1xf32>
    %14 = vector.broadcast %6 : vector<8x1xf32> to vector<8x32xf32>
    %15 = arith.subf %0, %14 : vector<8x32xf32>
    %cst_8 = arith.constant 9.99999997E-7 : f32
    %16 = vector.broadcast %cst_8 : f32 to vector<8x1xf32>
    %17 = arith.addf %13, %16 : vector<8x1xf32>
    %18 = math.rsqrt %17 : vector<8x1xf32>
    %19 = vector.broadcast %18 : vector<8x1xf32> to vector<8x32xf32>
    %20 = arith.mulf %15, %19 : vector<8x32xf32>
    %21 = vector.broadcast %1 : vector<1x32xf32> to vector<8x32xf32>
    %22 = arith.mulf %20, %21 : vector<8x32xf32>
    %23 = vector.broadcast %2 : vector<1x32xf32> to vector<8x32xf32>
    %24 = arith.addf %22, %23 : vector<8x32xf32>
    %25 = arith.truncf %24 : vector<8x32xf32> to vector<8x32xbf16>
    %c0_9 = arith.constant 0 : index
    %c0_10 = arith.constant 0 : index
    %26 = vector.load %arg4[%c0_9, %c0_10] : memref<32x32xbf16, #tpu.memory_space<vmem>>, vector<32x32xbf16>
    %cst_11 = arith.constant dense<0.000000e+00> : vector<8x32xf32>
    %27 = tpu.matmul %25, %26, %cst_11 {dimension_numbers = #tpu.dot_dimension_numbers<[1], [0], [0], [1], [0, 0, 1, 1], [], []>} : vector<8x32xbf16>, vector<32x32xbf16>, vector<8x32xf32> -> vector<8x32xf32>
    %c0_12 = arith.constant 0 : index
    %c0_13 = arith.constant 0 : index
    %28 = vector.load %arg5[%c0_12, %c0_13] : memref<1x32xf32, #tpu.memory_space<vmem>>, vector<1x32xf32>
    %29 = vector.broadcast %28 : vector<1x32xf32> to vector<8x32xf32>
    %30 = arith.addf %27, %29 : vector<8x32xf32>
    %cst_14 = arith.constant 0.176776692 : f32
    %31 = vector.broadcast %cst_14 : f32 to vector<8x32xf32>
    %32 = arith.mulf %30, %31 : vector<8x32xf32>
    %c0_15 = arith.constant 0 : index
    %c0_16 = arith.constant 0 : index
    %33 = vector.load %arg6[%c0_15, %c0_16] : memref<8x32xf32, #tpu.memory_space<vmem>>, vector<8x32xf32>
    tpu.vector_store %arg6[%c0_15, %c0_16], %32 {strides = array<i32>} : memref<8x32xf32, #tpu.memory_space<vmem>>, vector<8x32xf32>,
    return
  }
  func.func @transform_0(%arg0: i32) -> (i32, i32) {
    %c0_i32 = arith.constant 0 : i32
    %c0_i32_0 = arith.constant 0 : i32
    return %arg0, %c0_i32 : i32, i32
  }
  func.func @transform_1(%arg0: i32) -> (i32, i32) {
    %c0_i32 = arith.constant 0 : i32
    %c0_i32_0 = arith.constant 0 : i32
    %c0_i32_1 = arith.constant 0 : i32
    return %c0_i32, %c0_i32_0 : i32, i32
  }
  func.func @transform_2(%arg0: i32) -> (i32, i32) {
    %c0_i32 = arith.constant 0 : i32
    %c0_i32_0 = arith.constant 0 : i32
    %c0_i32_1 = arith.constant 0 : i32
    return %c0_i32, %c0_i32_0 : i32, i32
  }
  func.func @transform_3(%arg0: i32) -> (i32, i32) {
    %c0_i32 = arith.constant 0 : i32
    %c0_i32_0 = arith.constant 0 : i32
    %c0_i32_1 = arith.constant 0 : i32
    return %c0_i32, %c0_i32_0 : i32, i32
  }
  func.func @transform_4(%arg0: i32) -> (i32, i32) {
    %c0_i32 = arith.constant 0 : i32
    %c0_i32_0 = arith.constant 0 : i32
    %c0_i32_1 = arith.constant 0 : i32
    return %c0_i32, %c0_i32_0 : i32, i32
  }
  func.func @transform_5(%arg0: i32) -> (i32, i32) {
    %c0_i32 = arith.constant 0 : i32
    %c0_i32_0 = arith.constant 0 : i32
    return %arg0, %c0_i32 : i32, i32
  }
}

module attributes {stable_mosaic.version = 11 : i64} {
  func.func @_linear_res_kernel(%arg0: i32, %arg1: memref<8x32xf32, #tpu.memory_space<vmem>>, %arg2: memref<8x32xf32, #tpu.memory_space<vmem>>, %arg3: memref<32x32xbf16, #tpu.memory_space<vmem>>, %arg4: memref<8x32xf32, #tpu.memory_space<vmem>>) attributes {dimension_semantics = [#tpu.dimension_semantics<parallel>], iteration_bounds = array<i64: 5>, scalar_prefetch = 0 : i64, scratch_operands = 0 : i64, tpu.core_type = #tpu.core_type<tc>, window_params = [{transform_indices = @transform_0, window_bounds = array<i64: 8, 32>}, {transform_indices = @transform_1, window_bounds = array<i64: 8, 32>}, {pipeline_mode = #tpu.pipeline_mode<synchronous>, transform_indices = @transform_2, window_bounds = array<i64: 32, 32>}, {transform_indices = @transform_3, window_bounds = array<i64: 8, 32>}]} {
    %c0 = arith.constant 0 : index
    %c0_0 = arith.constant 0 : index
    %0 = vector.load %arg1[%c0, %c0_0] : memref<8x32xf32, #tpu.memory_space<vmem>>, vector<8x32xf32>
    %1 = arith.truncf %0 : vector<8x32xf32> to vector<8x32xbf16>
    %c0_1 = arith.constant 0 : index
    %c0_2 = arith.constant 0 : index
    %2 = vector.load %arg3[%c0_1, %c0_2] : memref<32x32xbf16, #tpu.memory_space<vmem>>, vector<32x32xbf16>
    %cst = arith.constant dense<0.000000e+00> : vector<8x32xf32>
    %3 = tpu.matmul %1, %2, %cst {dimension_numbers = #tpu.dot_dimension_numbers<[1], [0], [0], [1], [0, 0, 1, 1], [], []>} : vector<8x32xbf16>, vector<32x32xbf16>, vector<8x32xf32> -> vector<8x32xf32>
    %c0_3 = arith.constant 0 : index
    %c0_4 = arith.constant 0 : index
    %4 = vector.load %arg2[%c0_3, %c0_4] : memref<8x32xf32, #tpu.memory_space<vmem>>, vector<8x32xf32>
    %5 = arith.addf %4, %3 : vector<8x32xf32>
    %c0_5 = arith.constant 0 : index
    %c0_6 = arith.constant 0 : index
    %6 = vector.load %arg4[%c0_5, %c0_6] : memref<8x32xf32, #tpu.memory_space<vmem>>, vector<8x32xf32>
    tpu.vector_store %arg4[%c0_5, %c0_6], %5 {strides = array<i32>} : memref<8x32xf32, #tpu.memory_space<vmem>>, vector<8x32xf32>,
    return
  }
  func.func @transform_0(%arg0: i32) -> (i32, i32) {
    %c0_i32 = arith.constant 0 : i32
    %c0_i32_0 = arith.constant 0 : i32
    return %arg0, %c0_i32 : i32, i32
  }
  func.func @transform_1(%arg0: i32) -> (i32, i32) {
    %c0_i32 = arith.constant 0 : i32
    %c0_i32_0 = arith.constant 0 : i32
    return %arg0, %c0_i32 : i32, i32
  }
  func.func @transform_2(%arg0: i32) -> (i32, i32) {
    %c0_i32 = arith.constant 0 : i32
    %c0_i32_0 = arith.constant 0 : i32
    %c0_i32_1 = arith.constant 0 : i32
    return %c0_i32, %c0_i32_0 : i32, i32
  }
  func.func @transform_3(%arg0: i32) -> (i32, i32) {
    %c0_i32 = arith.constant 0 : i32
    %c0_i32_0 = arith.constant 0 : i32
    return %arg0, %c0_i32 : i32, i32
  }
}

module attributes {stable_mosaic.version = 11 : i64} {
  func.func @_attn_kernel(%arg0: i32, %arg1: memref<1x20x64xf32, #tpu.memory_space<vmem>>, %arg2: memref<1x20x8xf32, #tpu.memory_space<vmem>>, %arg3: memref<1x20x8xf32, #tpu.memory_space<vmem>>, %arg4: memref<1x20x32xf32, #tpu.memory_space<vmem>>) attributes {dimension_semantics = [#tpu.dimension_semantics<parallel>], iteration_bounds = array<i64: 2>, scalar_prefetch = 0 : i64, scratch_operands = 0 : i64, tpu.core_type = #tpu.core_type<tc>, window_params = [{transform_indices = @transform_0, window_bounds = array<i64: 1, 20, 64>}, {transform_indices = @transform_1, window_bounds = array<i64: 1, 20, 8>}, {transform_indices = @transform_2, window_bounds = array<i64: 1, 20, 8>}, {transform_indices = @transform_3, window_bounds = array<i64: 1, 20, 32>}]} {
    %c0 = arith.constant 0 : index
    %c0_0 = arith.constant 0 : index
    %c0_1 = arith.constant 0 : index
    %0 = vector.load %arg2[%c0, %c0_0, %c0_1] : memref<1x20x8xf32, #tpu.memory_space<vmem>>, vector<1x20x8xf32>
    %1 = vector.shape_cast %0 : vector<1x20x8xf32> to vector<20x8xf32>
    %c0_2 = arith.constant 0 : index
    %c0_3 = arith.constant 0 : index
    %c0_4 = arith.constant 0 : index
    %2 = vector.load %arg3[%c0_2, %c0_3, %c0_4] : memref<1x20x8xf32, #tpu.memory_space<vmem>>, vector<1x20x8xf32>
    %3 = vector.shape_cast %2 : vector<1x20x8xf32> to vector<20x8xf32>
    %4 = tpu.iota {dimensions = array<i32: 0>} : vector<8x8xi32>
    %5 = tpu.iota {dimensions = array<i32: 1>} : vector<8x8xi32>
    %c4_i32 = arith.constant 4 : i32
    %6 = vector.broadcast %c4_i32 : i32 to vector<8x8xi32>
    %7 = arith.addi %4, %6 : vector<8x8xi32>
    %8 = arith.cmpi eq, %5, %7 : vector<8x8xi32>
    %cst = arith.constant 1.000000e+00 : f32
    %cst_5 = arith.constant 0.000000e+00 : f32
    %9 = vector.broadcast %cst : f32 to vector<8x8xf32>
    %10 = vector.broadcast %cst_5 : f32 to vector<8x8xf32>
    %11 = arith.select %8, %9, %10 : vector<8x8xi1>, vector<8x8xf32>
    %c4_i32_6 = arith.constant 4 : i32
    %12 = vector.broadcast %c4_i32_6 : i32 to vector<8x8xi32>
    %13 = arith.addi %5, %12 : vector<8x8xi32>
    %14 = arith.cmpi eq, %4, %13 : vector<8x8xi32>
    %cst_7 = arith.constant 1.000000e+00 : f32
    %cst_8 = arith.constant 0.000000e+00 : f32
    %15 = vector.broadcast %cst_7 : f32 to vector<8x8xf32>
    %16 = vector.broadcast %cst_8 : f32 to vector<8x8xf32>
    %17 = arith.select %14, %15, %16 : vector<8x8xi1>, vector<8x8xf32>
    %18 = arith.subf %11, %17 : vector<8x8xf32>
    %c0_9 = arith.constant 0 : index
    %c0_10 = arith.constant 0 : index
    %c32 = arith.constant 32 : index
    %19 = vector.load %arg1[%c0_9, %c0_10, %c32] : memref<1x20x64xf32, #tpu.memory_space<vmem>>, vector<1x20x8xf32>
    %20 = vector.shape_cast %19 : vector<1x20x8xf32> to vector<20x8xf32>
    %21 = arith.mulf %20, %1 : vector<20x8xf32>
    %cst_11 = arith.constant dense<0.000000e+00> : vector<20x8xf32>
    %22 = tpu.matmul %20, %18, %cst_11 {dimension_numbers = #tpu.dot_dimension_numbers<[1], [0], [0], [1], [0, 0, 1, 1], [], []>} : vector<20x8xf32>, vector<8x8xf32>, vector<20x8xf32> -> vector<20x8xf32>
    %23 = arith.mulf %22, %3 : vector<20x8xf32>
    %24 = arith.addf %21, %23 : vector<20x8xf32>
    %c0_12 = arith.constant 0 : index
    %c0_13 = arith.constant 0 : index
    %c40 = arith.constant 40 : index
    %25 = vector.load %arg1[%c0_12, %c0_13, %c40] : memref<1x20x64xf32, #tpu.memory_space<vmem>>, vector<1x20x8xf32>
    %26 = vector.shape_cast %25 : vector<1x20x8xf32> to vector<20x8xf32>
    %27 = arith.mulf %26, %1 : vector<20x8xf32>
    %cst_14 = arith.constant dense<0.000000e+00> : vector<20x8xf32>
    %28 = tpu.matmul %26, %18, %cst_14 {dimension_numbers = #tpu.dot_dimension_numbers<[1], [0], [0], [1], [0, 0, 1, 1], [], []>} : vector<20x8xf32>, vector<8x8xf32>, vector<20x8xf32> -> vector<20x8xf32>
    %29 = arith.mulf %28, %3 : vector<20x8xf32>
    %30 = arith.addf %27, %29 : vector<20x8xf32>
    %c0_15 = arith.constant 0 : index
    %c0_16 = arith.constant 0 : index
    %c48 = arith.constant 48 : index
    %31 = vector.load %arg1[%c0_15, %c0_16, %c48] : memref<1x20x64xf32, #tpu.memory_space<vmem>>, vector<1x20x8xf32>
    %32 = vector.shape_cast %31 : vector<1x20x8xf32> to vector<20x8xf32>
    %c0_17 = arith.constant 0 : index
    %c0_18 = arith.constant 0 : index
    %c56 = arith.constant 56 : index
    %33 = vector.load %arg1[%c0_17, %c0_18, %c56] : memref<1x20x64xf32, #tpu.memory_space<vmem>>, vector<1x20x8xf32>
    %34 = vector.shape_cast %33 : vector<1x20x8xf32> to vector<20x8xf32>
    %c0_19 = arith.constant 0 : index
    %c0_20 = arith.constant 0 : index
    %c0_21 = arith.constant 0 : index
    %35 = vector.load %arg1[%c0_19, %c0_20, %c0_21] : memref<1x20x64xf32, #tpu.memory_space<vmem>>, vector<1x20x8xf32>
    %36 = vector.shape_cast %35 : vector<1x20x8xf32> to vector<20x8xf32>
    %37 = arith.mulf %36, %1 : vector<20x8xf32>
    %cst_22 = arith.constant dense<0.000000e+00> : vector<20x8xf32>
    %38 = tpu.matmul %36, %18, %cst_22 {dimension_numbers = #tpu.dot_dimension_numbers<[1], [0], [0], [1], [0, 0, 1, 1], [], []>} : vector<20x8xf32>, vector<8x8xf32>, vector<20x8xf32> -> vector<20x8xf32>
    %39 = arith.mulf %38, %3 : vector<20x8xf32>
    %40 = arith.addf %37, %39 : vector<20x8xf32>
    %cst_23 = arith.constant dense<0.000000e+00> : vector<20x20xf32>
    %41 = tpu.matmul %40, %24, %cst_23 {dimension_numbers = #tpu.dot_dimension_numbers<[1], [1], [0], [0], [0, 0, 1, 0], [], []>} : vector<20x8xf32>, vector<20x8xf32>, vector<20x20xf32> -> vector<20x20xf32>
    %cst_24 = arith.constant 0.353553385 : f32
    %42 = vector.broadcast %cst_24 : f32 to vector<20x20xf32>
    %43 = arith.mulf %41, %42 : vector<20x20xf32>
    %cst_25 = arith.constant dense<0xFF800000> : vector<20xf32>
    %44 = vector.multi_reduction <maximumf>, %43, %cst_25 [1] : vector<20x20xf32> to vector<20xf32>
    %45 = vector.shape_cast %44 : vector<20xf32> to vector<20x1xf32>
    %46 = vector.broadcast %45 : vector<20x1xf32> to vector<20x20xf32>
    %47 = arith.subf %43, %46 : vector<20x20xf32>
    %48 = math.exp %47 : vector<20x20xf32>
    %cst_26 = arith.constant dense<0.000000e+00> : vector<20xf32>
    %49 = vector.multi_reduction <add>, %48, %cst_26 [1] : vector<20x20xf32> to vector<20xf32>
    %50 = vector.shape_cast %49 : vector<20xf32> to vector<20x1xf32>
    %51 = tpu.reciprocal %50 {approx = true} : vector<20x1xf32> -> vector<20x1xf32>
    %52 = vector.broadcast %51 : vector<20x1xf32> to vector<20x20xf32>
    %53 = arith.mulf %48, %52 : vector<20x20xf32>
    %cst_27 = arith.constant dense<0.000000e+00> : vector<20x8xf32>
    %54 = tpu.matmul %53, %32, %cst_27 {dimension_numbers = #tpu.dot_dimension_numbers<[1], [0], [0], [1], [0, 0, 1, 1], [], []>} : vector<20x20xf32>, vector<20x8xf32>, vector<20x8xf32> -> vector<20x8xf32>
    %c0_28 = arith.constant 0 : index
    %c0_29 = arith.constant 0 : index
    %c0_30 = arith.constant 0 : index
    %55 = vector.load %arg4[%c0_28, %c0_29, %c0_30] : memref<1x20x32xf32, #tpu.memory_space<vmem>>, vector<1x20x8xf32>
    %56 = vector.shape_cast %55 : vector<1x20x8xf32> to vector<20x8xf32>
    %57 = vector.shape_cast %54 : vector<20x8xf32> to vector<1x20x8xf32>
    tpu.vector_store %arg4[%c0_28, %c0_29, %c0_30], %57 {strides = array<i32>} : memref<1x20x32xf32, #tpu.memory_space<vmem>>, vector<1x20x8xf32>,
    %c0_31 = arith.constant 0 : index
    %c0_32 = arith.constant 0 : index
    %c8 = arith.constant 8 : index
    %58 = vector.load %arg1[%c0_31, %c0_32, %c8] : memref<1x20x64xf32, #tpu.memory_space<vmem>>, vector<1x20x8xf32>
    %59 = vector.shape_cast %58 : vector<1x20x8xf32> to vector<20x8xf32>
    %60 = arith.mulf %59, %1 : vector<20x8xf32>
    %cst_33 = arith.constant dense<0.000000e+00> : vector<20x8xf32>
    %61 = tpu.matmul %59, %18, %cst_33 {dimension_numbers = #tpu.dot_dimension_numbers<[1], [0], [0], [1], [0, 0, 1, 1], [], []>} : vector<20x8xf32>, vector<8x8xf32>, vector<20x8xf32> -> vector<20x8xf32>
    %62 = arith.mulf %61, %3 : vector<20x8xf32>
    %63 = arith.addf %60, %62 : vector<20x8xf32>
    %cst_34 = arith.constant dense<0.000000e+00> : vector<20x20xf32>
    %64 = tpu.matmul %63, %24, %cst_34 {dimension_numbers = #tpu.dot_dimension_numbers<[1], [1], [0], [0], [0, 0, 1, 0], [], []>} : vector<20x8xf32>, vector<20x8xf32>, vector<20x20xf32> -> vector<20x20xf32>
    %cst_35 = arith.constant 0.353553385 : f32
    %65 = vector.broadcast %cst_35 : f32 to vector<20x20xf32>
    %66 = arith.mulf %64, %65 : vector<20x20xf32>
    %cst_36 = arith.constant dense<0xFF800000> : vector<20xf32>
    %67 = vector.multi_reduction <maximumf>, %66, %cst_36 [1] : vector<20x20xf32> to vector<20xf32>
    %68 = vector.shape_cast %67 : vector<20xf32> to vector<20x1xf32>
    %69 = vector.broadcast %68 : vector<20x1xf32> to vector<20x20xf32>
    %70 = arith.subf %66, %69 : vector<20x20xf32>
    %71 = math.exp %70 : vector<20x20xf32>
    %cst_37 = arith.constant dense<0.000000e+00> : vector<20xf32>
    %72 = vector.multi_reduction <add>, %71, %cst_37 [1] : vector<20x20xf32> to vector<20xf32>
    %73 = vector.shape_cast %72 : vector<20xf32> to vector<20x1xf32>
    %74 = tpu.reciprocal %73 {approx = true} : vector<20x1xf32> -> vector<20x1xf32>
    %75 = vector.broadcast %74 : vector<20x1xf32> to vector<20x20xf32>
    %76 = arith.mulf %71, %75 : vector<20x20xf32>
    %cst_38 = arith.constant dense<0.000000e+00> : vector<20x8xf32>
    %77 = tpu.matmul %76, %32, %cst_38 {dimension_numbers = #tpu.dot_dimension_numbers<[1], [0], [0], [1], [0, 0, 1, 1], [], []>} : vector<20x20xf32>, vector<20x8xf32>, vector<20x8xf32> -> vector<20x8xf32>
    %c0_39 = arith.constant 0 : index
    %c0_40 = arith.constant 0 : index
    %c8_41 = arith.constant 8 : index
    %78 = vector.load %arg4[%c0_39, %c0_40, %c8_41] : memref<1x20x32xf32, #tpu.memory_space<vmem>>, vector<1x20x8xf32>
    %79 = vector.shape_cast %78 : vector<1x20x8xf32> to vector<20x8xf32>
    %80 = vector.shape_cast %77 : vector<20x8xf32> to vector<1x20x8xf32>
    tpu.vector_store %arg4[%c0_39, %c0_40, %c8_41], %80 {strides = array<i32>} : memref<1x20x32xf32, #tpu.memory_space<vmem>>, vector<1x20x8xf32>,
    %c0_42 = arith.constant 0 : index
    %c0_43 = arith.constant 0 : index
    %c16 = arith.constant 16 : index
    %81 = vector.load %arg1[%c0_42, %c0_43, %c16] : memref<1x20x64xf32, #tpu.memory_space<vmem>>, vector<1x20x8xf32>
    %82 = vector.shape_cast %81 : vector<1x20x8xf32> to vector<20x8xf32>
    %83 = arith.mulf %82, %1 : vector<20x8xf32>
    %cst_44 = arith.constant dense<0.000000e+00> : vector<20x8xf32>
    %84 = tpu.matmul %82, %18, %cst_44 {dimension_numbers = #tpu.dot_dimension_numbers<[1], [0], [0], [1], [0, 0, 1, 1], [], []>} : vector<20x8xf32>, vector<8x8xf32>, vector<20x8xf32> -> vector<20x8xf32>
    %85 = arith.mulf %84, %3 : vector<20x8xf32>
    %86 = arith.addf %83, %85 : vector<20x8xf32>
    %cst_45 = arith.constant dense<0.000000e+00> : vector<20x20xf32>
    %87 = tpu.matmul %86, %30, %cst_45 {dimension_numbers = #tpu.dot_dimension_numbers<[1], [1], [0], [0], [0, 0, 1, 0], [], []>} : vector<20x8xf32>, vector<20x8xf32>, vector<20x20xf32> -> vector<20x20xf32>
    %cst_46 = arith.constant 0.353553385 : f32
    %88 = vector.broadcast %cst_46 : f32 to vector<20x20xf32>
    %89 = arith.mulf %87, %88 : vector<20x20xf32>
    %cst_47 = arith.constant dense<0xFF800000> : vector<20xf32>
    %90 = vector.multi_reduction <maximumf>, %89, %cst_47 [1] : vector<20x20xf32> to vector<20xf32>
    %91 = vector.shape_cast %90 : vector<20xf32> to vector<20x1xf32>
    %92 = vector.broadcast %91 : vector<20x1xf32> to vector<20x20xf32>
    %93 = arith.subf %89, %92 : vector<20x20xf32>
    %94 = math.exp %93 : vector<20x20xf32>
    %cst_48 = arith.constant dense<0.000000e+00> : vector<20xf32>
    %95 = vector.multi_reduction <add>, %94, %cst_48 [1] : vector<20x20xf32> to vector<20xf32>
    %96 = vector.shape_cast %95 : vector<20xf32> to vector<20x1xf32>
    %97 = tpu.reciprocal %96 {approx = true} : vector<20x1xf32> -> vector<20x1xf32>
    %98 = vector.broadcast %97 : vector<20x1xf32> to vector<20x20xf32>
    %99 = arith.mulf %94, %98 : vector<20x20xf32>
    %cst_49 = arith.constant dense<0.000000e+00> : vector<20x8xf32>
    %100 = tpu.matmul %99, %34, %cst_49 {dimension_numbers = #tpu.dot_dimension_numbers<[1], [0], [0], [1], [0, 0, 1, 1], [], []>} : vector<20x20xf32>, vector<20x8xf32>, vector<20x8xf32> -> vector<20x8xf32>
    %c0_50 = arith.constant 0 : index
    %c0_51 = arith.constant 0 : index
    %c16_52 = arith.constant 16 : index
    %101 = vector.load %arg4[%c0_50, %c0_51, %c16_52] : memref<1x20x32xf32, #tpu.memory_space<vmem>>, vector<1x20x8xf32>
    %102 = vector.shape_cast %101 : vector<1x20x8xf32> to vector<20x8xf32>
    %103 = vector.shape_cast %100 : vector<20x8xf32> to vector<1x20x8xf32>
    tpu.vector_store %arg4[%c0_50, %c0_51, %c16_52], %103 {strides = array<i32>} : memref<1x20x32xf32, #tpu.memory_space<vmem>>, vector<1x20x8xf32>,
    %c0_53 = arith.constant 0 : index
    %c0_54 = arith.constant 0 : index
    %c24 = arith.constant 24 : index
    %104 = vector.load %arg1[%c0_53, %c0_54, %c24] : memref<1x20x64xf32, #tpu.memory_space<vmem>>, vector<1x20x8xf32>
    %105 = vector.shape_cast %104 : vector<1x20x8xf32> to vector<20x8xf32>
    %106 = arith.mulf %105, %1 : vector<20x8xf32>
    %cst_55 = arith.constant dense<0.000000e+00> : vector<20x8xf32>
    %107 = tpu.matmul %105, %18, %cst_55 {dimension_numbers = #tpu.dot_dimension_numbers<[1], [0], [0], [1], [0, 0, 1, 1], [], []>} : vector<20x8xf32>, vector<8x8xf32>, vector<20x8xf32> -> vector<20x8xf32>
    %108 = arith.mulf %107, %3 : vector<20x8xf32>
    %109 = arith.addf %106, %108 : vector<20x8xf32>
    %cst_56 = arith.constant dense<0.000000e+00> : vector<20x20xf32>
    %110 = tpu.matmul %109, %30, %cst_56 {dimension_numbers = #tpu.dot_dimension_numbers<[1], [1], [0], [0], [0, 0, 1, 0], [], []>} : vector<20x8xf32>, vector<20x8xf32>, vector<20x20xf32> -> vector<20x20xf32>
    %cst_57 = arith.constant 0.353553385 : f32
    %111 = vector.broadcast %cst_57 : f32 to vector<20x20xf32>
    %112 = arith.mulf %110, %111 : vector<20x20xf32>
    %cst_58 = arith.constant dense<0xFF800000> : vector<20xf32>
    %113 = vector.multi_reduction <maximumf>, %112, %cst_58 [1] : vector<20x20xf32> to vector<20xf32>
    %114 = vector.shape_cast %113 : vector<20xf32> to vector<20x1xf32>
    %115 = vector.broadcast %114 : vector<20x1xf32> to vector<20x20xf32>
    %116 = arith.subf %112, %115 : vector<20x20xf32>
    %117 = math.exp %116 : vector<20x20xf32>
    %cst_59 = arith.constant dense<0.000000e+00> : vector<20xf32>
    %118 = vector.multi_reduction <add>, %117, %cst_59 [1] : vector<20x20xf32> to vector<20xf32>
    %119 = vector.shape_cast %118 : vector<20xf32> to vector<20x1xf32>
    %120 = tpu.reciprocal %119 {approx = true} : vector<20x1xf32> -> vector<20x1xf32>
    %121 = vector.broadcast %120 : vector<20x1xf32> to vector<20x20xf32>
    %122 = arith.mulf %117, %121 : vector<20x20xf32>
    %cst_60 = arith.constant dense<0.000000e+00> : vector<20x8xf32>
    %123 = tpu.matmul %122, %34, %cst_60 {dimension_numbers = #tpu.dot_dimension_numbers<[1], [0], [0], [1], [0, 0, 1, 1], [], []>} : vector<20x20xf32>, vector<20x8xf32>, vector<20x8xf32> -> vector<20x8xf32>
    %c0_61 = arith.constant 0 : index
    %c0_62 = arith.constant 0 : index
    %c24_63 = arith.constant 24 : index
    %124 = vector.load %arg4[%c0_61, %c0_62, %c24_63] : memref<1x20x32xf32, #tpu.memory_space<vmem>>, vector<1x20x8xf32>
    %125 = vector.shape_cast %124 : vector<1x20x8xf32> to vector<20x8xf32>
    %126 = vector.shape_cast %123 : vector<20x8xf32> to vector<1x20x8xf32>
    tpu.vector_store %arg4[%c0_61, %c0_62, %c24_63], %126 {strides = array<i32>} : memref<1x20x32xf32, #tpu.memory_space<vmem>>, vector<1x20x8xf32>,
    return
  }
  func.func @transform_0(%arg0: i32) -> (i32, i32, i32) {
    %c0_i32 = arith.constant 0 : i32
    %c0_i32_0 = arith.constant 0 : i32
    %c0_i32_1 = arith.constant 0 : i32
    return %arg0, %c0_i32, %c0_i32_0 : i32, i32, i32
  }
  func.func @transform_1(%arg0: i32) -> (i32, i32, i32) {
    %c0_i32 = arith.constant 0 : i32
    %c0_i32_0 = arith.constant 0 : i32
    %c0_i32_1 = arith.constant 0 : i32
    return %arg0, %c0_i32, %c0_i32_0 : i32, i32, i32
  }
  func.func @transform_2(%arg0: i32) -> (i32, i32, i32) {
    %c0_i32 = arith.constant 0 : i32
    %c0_i32_0 = arith.constant 0 : i32
    %c0_i32_1 = arith.constant 0 : i32
    return %arg0, %c0_i32, %c0_i32_0 : i32, i32, i32
  }
  func.func @transform_3(%arg0: i32) -> (i32, i32, i32) {
    %c0_i32 = arith.constant 0 : i32
    %c0_i32_0 = arith.constant 0 : i32
    %c0_i32_1 = arith.constant 0 : i32
    return %arg0, %c0_i32, %c0_i32_0 : i32, i32, i32
  }
}

module attributes {stable_mosaic.version = 11 : i64} {
  func.func @_rms_linear_kernel(%arg0: i32, %arg1: memref<8x32xf32, #tpu.memory_space<vmem>>, %arg2: memref<1x32xf32, #tpu.memory_space<vmem>>, %arg3: memref<32x64xbf16, #tpu.memory_space<vmem>>, %arg4: memref<8x64xf32, #tpu.memory_space<vmem>>) attributes {dimension_semantics = [#tpu.dimension_semantics<parallel>], iteration_bounds = array<i64: 5>, scalar_prefetch = 0 : i64, scratch_operands = 0 : i64, tpu.core_type = #tpu.core_type<tc>, window_params = [{transform_indices = @transform_0, window_bounds = array<i64: 8, 32>}, {pipeline_mode = #tpu.pipeline_mode<synchronous>, transform_indices = @transform_1, window_bounds = array<i64: 1, 32>}, {pipeline_mode = #tpu.pipeline_mode<synchronous>, transform_indices = @transform_2, window_bounds = array<i64: 32, 64>}, {transform_indices = @transform_3, window_bounds = array<i64: 8, 64>}]} {
    %c0 = arith.constant 0 : index
    %c0_0 = arith.constant 0 : index
    %0 = vector.load %arg1[%c0, %c0_0] : memref<8x32xf32, #tpu.memory_space<vmem>>, vector<8x32xf32>
    %c0_1 = arith.constant 0 : index
    %c0_2 = arith.constant 0 : index
    %1 = vector.load %arg2[%c0_1, %c0_2] : memref<1x32xf32, #tpu.memory_space<vmem>>, vector<1x32xf32>
    %2 = arith.mulf %0, %0 : vector<8x32xf32>
    %cst = arith.constant dense<0.000000e+00> : vector<8xf32>
    %3 = vector.multi_reduction <add>, %2, %cst [1] : vector<8x32xf32> to vector<8xf32>
    %4 = vector.shape_cast %3 : vector<8xf32> to vector<8x1xf32>
    %cst_3 = arith.constant 3.200000e+01 : f32
    %5 = vector.broadcast %cst_3 : f32 to vector<8x1xf32>
    %6 = arith.divf %4, %5 : vector<8x1xf32>
    %cst_4 = arith.constant 9.99999997E-7 : f32
    %7 = vector.broadcast %cst_4 : f32 to vector<8x1xf32>
    %8 = arith.addf %6, %7 : vector<8x1xf32>
    %9 = math.rsqrt %8 : vector<8x1xf32>
    %10 = vector.broadcast %9 : vector<8x1xf32> to vector<8x32xf32>
    %11 = arith.mulf %0, %10 : vector<8x32xf32>
    %cst_5 = arith.constant 1.000000e+00 : f32
    %12 = vector.broadcast %cst_5 : f32 to vector<1x32xf32>
    %13 = arith.addf %12, %1 : vector<1x32xf32>
    %14 = vector.broadcast %13 : vector<1x32xf32> to vector<8x32xf32>
    %15 = arith.mulf %11, %14 : vector<8x32xf32>
    %16 = arith.truncf %15 : vector<8x32xf32> to vector<8x32xbf16>
    %c0_6 = arith.constant 0 : index
    %c0_7 = arith.constant 0 : index
    %17 = vector.load %arg3[%c0_6, %c0_7] : memref<32x64xbf16, #tpu.memory_space<vmem>>, vector<32x64xbf16>
    %cst_8 = arith.constant dense<0.000000e+00> : vector<8x64xf32>
    %18 = tpu.matmul %16, %17, %cst_8 {dimension_numbers = #tpu.dot_dimension_numbers<[1], [0], [0], [1], [0, 0, 1, 1], [], []>} : vector<8x32xbf16>, vector<32x64xbf16>, vector<8x64xf32> -> vector<8x64xf32>
    %c0_9 = arith.constant 0 : index
    %c0_10 = arith.constant 0 : index
    %19 = vector.load %arg4[%c0_9, %c0_10] : memref<8x64xf32, #tpu.memory_space<vmem>>, vector<8x64xf32>
    tpu.vector_store %arg4[%c0_9, %c0_10], %18 {strides = array<i32>} : memref<8x64xf32, #tpu.memory_space<vmem>>, vector<8x64xf32>,
    return
  }
  func.func @transform_0(%arg0: i32) -> (i32, i32) {
    %c0_i32 = arith.constant 0 : i32
    %c0_i32_0 = arith.constant 0 : i32
    return %arg0, %c0_i32 : i32, i32
  }
  func.func @transform_1(%arg0: i32) -> (i32, i32) {
    %c0_i32 = arith.constant 0 : i32
    %c0_i32_0 = arith.constant 0 : i32
    %c0_i32_1 = arith.constant 0 : i32
    return %c0_i32, %c0_i32_0 : i32, i32
  }
  func.func @transform_2(%arg0: i32) -> (i32, i32) {
    %c0_i32 = arith.constant 0 : i32
    %c0_i32_0 = arith.constant 0 : i32
    %c0_i32_1 = arith.constant 0 : i32
    return %c0_i32, %c0_i32_0 : i32, i32
  }
  func.func @transform_3(%arg0: i32) -> (i32, i32) {
    %c0_i32 = arith.constant 0 : i32
    %c0_i32_0 = arith.constant 0 : i32
    return %arg0, %c0_i32 : i32, i32
  }
}

module attributes {stable_mosaic.version = 11 : i64} {
  func.func @_rms_geglu_down_kernel(%arg0: i32, %arg1: memref<8x32xf32, #tpu.memory_space<vmem>>, %arg2: memref<1x32xf32, #tpu.memory_space<vmem>>, %arg3: memref<32x64xbf16, #tpu.memory_space<vmem>>, %arg4: memref<32x64xbf16, #tpu.memory_space<vmem>>, %arg5: memref<64x32xbf16, #tpu.memory_space<vmem>>, %arg6: memref<8x32xf32, #tpu.memory_space<vmem>>) attributes {dimension_semantics = [#tpu.dimension_semantics<parallel>], iteration_bounds = array<i64: 5>, scalar_prefetch = 0 : i64, scratch_operands = 0 : i64, tpu.core_type = #tpu.core_type<tc>, window_params = [{transform_indices = @transform_0, window_bounds = array<i64: 8, 32>}, {pipeline_mode = #tpu.pipeline_mode<synchronous>, transform_indices = @transform_1, window_bounds = array<i64: 1, 32>}, {pipeline_mode = #tpu.pipeline_mode<synchronous>, transform_indices = @transform_2, window_bounds = array<i64: 32, 64>}, {pipeline_mode = #tpu.pipeline_mode<synchronous>, transform_indices = @transform_3, window_bounds = array<i64: 32, 64>}, {pipeline_mode = #tpu.pipeline_mode<synchronous>, transform_indices = @transform_4, window_bounds = array<i64: 64, 32>}, {transform_indices = @transform_5, window_bounds = array<i64: 8, 32>}]} {
    %c0 = arith.constant 0 : index
    %c0_0 = arith.constant 0 : index
    %0 = vector.load %arg1[%c0, %c0_0] : memref<8x32xf32, #tpu.memory_space<vmem>>, vector<8x32xf32>
    %c0_1 = arith.constant 0 : index
    %c0_2 = arith.constant 0 : index
    %1 = vector.load %arg2[%c0_1, %c0_2] : memref<1x32xf32, #tpu.memory_space<vmem>>, vector<1x32xf32>
    %2 = arith.mulf %0, %0 : vector<8x32xf32>
    %cst = arith.constant dense<0.000000e+00> : vector<8xf32>
    %3 = vector.multi_reduction <add>, %2, %cst [1] : vector<8x32xf32> to vector<8xf32>
    %4 = vector.shape_cast %3 : vector<8xf32> to vector<8x1xf32>
    %cst_3 = arith.constant 3.200000e+01 : f32
    %5 = vector.broadcast %cst_3 : f32 to vector<8x1xf32>
    %6 = arith.divf %4, %5 : vector<8x1xf32>
    %cst_4 = arith.constant 9.99999997E-7 : f32
    %7 = vector.broadcast %cst_4 : f32 to vector<8x1xf32>
    %8 = arith.addf %6, %7 : vector<8x1xf32>
    %9 = math.rsqrt %8 : vector<8x1xf32>
    %10 = vector.broadcast %9 : vector<8x1xf32> to vector<8x32xf32>
    %11 = arith.mulf %0, %10 : vector<8x32xf32>
    %cst_5 = arith.constant 1.000000e+00 : f32
    %12 = vector.broadcast %cst_5 : f32 to vector<1x32xf32>
    %13 = arith.addf %12, %1 : vector<1x32xf32>
    %14 = vector.broadcast %13 : vector<1x32xf32> to vector<8x32xf32>
    %15 = arith.mulf %11, %14 : vector<8x32xf32>
    %16 = arith.truncf %15 : vector<8x32xf32> to vector<8x32xbf16>
    %c0_6 = arith.constant 0 : index
    %c0_7 = arith.constant 0 : index
    %17 = vector.load %arg3[%c0_6, %c0_7] : memref<32x64xbf16, #tpu.memory_space<vmem>>, vector<32x64xbf16>
    %cst_8 = arith.constant dense<0.000000e+00> : vector<8x64xf32>
    %18 = tpu.matmul %16, %17, %cst_8 {dimension_numbers = #tpu.dot_dimension_numbers<[1], [0], [0], [1], [0, 0, 1, 1], [], []>} : vector<8x32xbf16>, vector<32x64xbf16>, vector<8x64xf32> -> vector<8x64xf32>
    %c0_9 = arith.constant 0 : index
    %c0_10 = arith.constant 0 : index
    %19 = vector.load %arg4[%c0_9, %c0_10] : memref<32x64xbf16, #tpu.memory_space<vmem>>, vector<32x64xbf16>
    %cst_11 = arith.constant dense<0.000000e+00> : vector<8x64xf32>
    %20 = tpu.matmul %16, %19, %cst_11 {dimension_numbers = #tpu.dot_dimension_numbers<[1], [0], [0], [1], [0, 0, 1, 1], [], []>} : vector<8x32xbf16>, vector<32x64xbf16>, vector<8x64xf32> -> vector<8x64xf32>
    %cst_12 = arith.constant 5.000000e-01 : f32
    %21 = vector.broadcast %cst_12 : f32 to vector<8x64xf32>
    %22 = arith.mulf %21, %18 : vector<8x64xf32>
    %cst_13 = arith.constant 4.471500e-02 : f32
    %23 = vector.broadcast %cst_13 : f32 to vector<8x64xf32>
    %24 = arith.mulf %23, %18 : vector<8x64xf32>
    %25 = arith.mulf %24, %18 : vector<8x64xf32>
    %26 = arith.mulf %25, %18 : vector<8x64xf32>
    %27 = arith.addf %18, %26 : vector<8x64xf32>
    %cst_14 = arith.constant 0.797884583 : f32
    %28 = vector.broadcast %cst_14 : f32 to vector<8x64xf32>
    %29 = arith.mulf %28, %27 : vector<8x64xf32>
    %30 = math.tanh %29 : vector<8x64xf32>
    %cst_15 = arith.constant 1.000000e+00 : f32
    %31 = vector.broadcast %cst_15 : f32 to vector<8x64xf32>
    %32 = arith.addf %31, %30 : vector<8x64xf32>
    %33 = arith.mulf %22, %32 : vector<8x64xf32>
    %34 = arith.mulf %33, %20 : vector<8x64xf32>
    %35 = arith.truncf %34 : vector<8x64xf32> to vector<8x64xbf16>
    %c0_16 = arith.constant 0 : index
    %c0_17 = arith.constant 0 : index
    %36 = vector.load %arg5[%c0_16, %c0_17] : memref<64x32xbf16, #tpu.memory_space<vmem>>, vector<64x32xbf16>
    %cst_18 = arith.constant dense<0.000000e+00> : vector<8x32xf32>
    %37 = tpu.matmul %35, %36, %cst_18 {dimension_numbers = #tpu.dot_dimension_numbers<[1], [0], [0], [1], [0, 0, 1, 1], [], []>} : vector<8x64xbf16>, vector<64x32xbf16>, vector<8x32xf32> -> vector<8x32xf32>
    %38 = arith.addf %0, %37 : vector<8x32xf32>
    %c0_19 = arith.constant 0 : index
    %c0_20 = arith.constant 0 : index
    %39 = vector.load %arg6[%c0_19, %c0_20] : memref<8x32xf32, #tpu.memory_space<vmem>>, vector<8x32xf32>
    tpu.vector_store %arg6[%c0_19, %c0_20], %38 {strides = array<i32>} : memref<8x32xf32, #tpu.memory_space<vmem>>, vector<8x32xf32>,
    return
  }
  func.func @transform_0(%arg0: i32) -> (i32, i32) {
    %c0_i32 = arith.constant 0 : i32
    %c0_i32_0 = arith.constant 0 : i32
    return %arg0, %c0_i32 : i32, i32
  }
  func.func @transform_1(%arg0: i32) -> (i32, i32) {
    %c0_i32 = arith.constant 0 : i32
    %c0_i32_0 = arith.constant 0 : i32
    %c0_i32_1 = arith.constant 0 : i32
    return %c0_i32, %c0_i32_0 : i32, i32
  }
  func.func @transform_2(%arg0: i32) -> (i32, i32) {
    %c0_i32 = arith.constant 0 : i32
    %c0_i32_0 = arith.constant 0 : i32
    %c0_i32_1 = arith.constant 0 : i32
    return %c0_i32, %c0_i32_0 : i32, i32
  }
  func.func @transform_3(%arg0: i32) -> (i32, i32) {
    %c0_i32 = arith.constant 0 : i32
    %c0_i32_0 = arith.constant 0 : i32
    %c0_i32_1 = arith.constant 0 : i32
    return %c0_i32, %c0_i32_0 : i32, i32
  }
  func.func @transform_4(%arg0: i32) -> (i32, i32) {
    %c0_i32 = arith.constant 0 : i32
    %c0_i32_0 = arith.constant 0 : i32
    %c0_i32_1 = arith.constant 0 : i32
    return %c0_i32, %c0_i32_0 : i32, i32
  }
  func.func @transform_5(%arg0: i32) -> (i32, i32) {
    %c0_i32 = arith.constant 0 : i32
    %c0_i32_0 = arith.constant 0 : i32
    return %arg0, %c0_i32 : i32, i32
  }
}

module attributes {stable_mosaic.version = 11 : i64} {
  func.func @_rms_lmhead_kernel(%arg0: i32, %arg1: memref<8x32xf32, #tpu.memory_space<vmem>>, %arg2: memref<1x32xf32, #tpu.memory_space<vmem>>, %arg3: memref<64x32xf32, #tpu.memory_space<vmem>>, %arg4: memref<8x64xf32, #tpu.memory_space<vmem>>) attributes {dimension_semantics = [#tpu.dimension_semantics<parallel>], iteration_bounds = array<i64: 5>, scalar_prefetch = 0 : i64, scratch_operands = 0 : i64, tpu.core_type = #tpu.core_type<tc>, window_params = [{transform_indices = @transform_0, window_bounds = array<i64: 8, 32>}, {pipeline_mode = #tpu.pipeline_mode<synchronous>, transform_indices = @transform_1, window_bounds = array<i64: 1, 32>}, {pipeline_mode = #tpu.pipeline_mode<synchronous>, transform_indices = @transform_2, window_bounds = array<i64: 64, 32>}, {transform_indices = @transform_3, window_bounds = array<i64: 8, 64>}]} {
    %c0 = arith.constant 0 : index
    %c0_0 = arith.constant 0 : index
    %0 = vector.load %arg1[%c0, %c0_0] : memref<8x32xf32, #tpu.memory_space<vmem>>, vector<8x32xf32>
    %c0_1 = arith.constant 0 : index
    %c0_2 = arith.constant 0 : index
    %1 = vector.load %arg2[%c0_1, %c0_2] : memref<1x32xf32, #tpu.memory_space<vmem>>, vector<1x32xf32>
    %2 = arith.mulf %0, %0 : vector<8x32xf32>
    %cst = arith.constant dense<0.000000e+00> : vector<8xf32>
    %3 = vector.multi_reduction <add>, %2, %cst [1] : vector<8x32xf32> to vector<8xf32>
    %4 = vector.shape_cast %3 : vector<8xf32> to vector<8x1xf32>
    %cst_3 = arith.constant 3.200000e+01 : f32
    %5 = vector.broadcast %cst_3 : f32 to vector<8x1xf32>
    %6 = arith.divf %4, %5 : vector<8x1xf32>
    %cst_4 = arith.constant 9.99999997E-7 : f32
    %7 = vector.broadcast %cst_4 : f32 to vector<8x1xf32>
    %8 = arith.addf %6, %7 : vector<8x1xf32>
    %9 = math.rsqrt %8 : vector<8x1xf32>
    %10 = vector.broadcast %9 : vector<8x1xf32> to vector<8x32xf32>
    %11 = arith.mulf %0, %10 : vector<8x32xf32>
    %cst_5 = arith.constant 1.000000e+00 : f32
    %12 = vector.broadcast %cst_5 : f32 to vector<1x32xf32>
    %13 = arith.addf %12, %1 : vector<1x32xf32>
    %14 = vector.broadcast %13 : vector<1x32xf32> to vector<8x32xf32>
    %15 = arith.mulf %11, %14 : vector<8x32xf32>
    %c0_6 = arith.constant 0 : index
    %c0_7 = arith.constant 0 : index
    %16 = vector.load %arg3[%c0_6, %c0_7] : memref<64x32xf32, #tpu.memory_space<vmem>>, vector<64x32xf32>
    %cst_8 = arith.constant dense<0.000000e+00> : vector<8x64xf32>
    %17 = tpu.matmul %15, %16, %cst_8 {dimension_numbers = #tpu.dot_dimension_numbers<[1], [1], [0], [0], [0, 0, 1, 0], [], []>} : vector<8x32xf32>, vector<64x32xf32>, vector<8x64xf32> -> vector<8x64xf32>
    %c0_9 = arith.constant 0 : index
    %c0_10 = arith.constant 0 : index
    %18 = vector.load %arg4[%c0_9, %c0_10] : memref<8x64xf32, #tpu.memory_space<vmem>>, vector<8x64xf32>
    tpu.vector_store %arg4[%c0_9, %c0_10], %17 {strides = array<i32>} : memref<8x64xf32, #tpu.memory_space<vmem>>, vector<8x64xf32>,
    return
  }
  func.func @transform_0(%arg0: i32) -> (i32, i32) {
    %c0_i32 = arith.constant 0 : i32
    %c0_i32_0 = arith.constant 0 : i32
    return %arg0, %c0_i32 : i32, i32
  }
  func.func @transform_1(%arg0: i32) -> (i32, i32) {
    %c0_i32 = arith.constant 0 : i32
    %c0_i32_0 = arith.constant 0 : i32
    %c0_i32_1 = arith.constant 0 : i32
    return %c0_i32, %c0_i32_0 : i32, i32
  }
  func.func @transform_2(%arg0: i32) -> (i32, i32) {
    %c0_i32 = arith.constant 0 : i32
    %c0_i32_0 = arith.constant 0 : i32
    %c0_i32_1 = arith.constant 0 : i32
    return %c0_i32, %c0_i32_0 : i32, i32
  }
  func.func @transform_3(%arg0: i32) -> (i32, i32) {
    %c0_i32 = arith.constant 0 : i32
    %c0_i32_0 = arith.constant 0 : i32
    return %arg0, %c0_i32 : i32, i32
  }
}

</mosaic_0001>

<bundles_post_ra>
// kernel: paligemma_forward.22
= control target key start
LH: loop header
LB: loop body
LE: loop exit
PB: predicated region body
PF: predicated region fallthrough
CT: control target
= control target key end

     0   :  { %s420_s15 = smov 0   ;;  %s449_s0 = inlined_call_operand.vmem [shape: f32[32,32], index: 0, kind: input, shape index: {}]   ;;  %s450_s1 = inlined_call_operand.vmem [shape: f32[32,32], index: 1, kind: input, shape index: {}]   ;;  %s451_s2 = inlined_call_operand.vmem [shape: bf16[32,32], index: 2, kind: input, shape index: {}]   ;;  %s452_s3 = inlined_call_operand.vmem [shape: f32[1,32], index: 3, kind: input, shape index: {}]   ;;  %s453_s4 = inlined_call_operand.vmem [shape: f32[32,32], index: 4, kind: output, shape index: {}]  }
   0x1 LB: > { %s348_s16 = sadd.s32 4294967295, %s391_s15   ;;  %p352_p0 = scmp.ge.s32.totalorder %s391_s15, 1  ;;  %s391_s15 = sphi %s420_s15, %s14_s15  }
   0x2   : > { %p170_p1 = scmp.lt.s32.totalorder %s391_s15, 5 }
   0x4   : > { %p171_p2 = pnand %p352_p0, %p170_p1 }
   0x5   : > { %v383_v0 = vld [vmem:[%s451_s2] sm:$0xff] (!%p171_p2)   ;;  %v393_v1 = vmov (!%p171_p2), 0.0   ;;  %v384_v2 = vld [vmem:[%s451_s2 + $0x8] sm:$0xff] (!%p171_p2)   ;;  %vm394_vm0 = vmmov (!%p171_p2), 0   ;;  %p198_p3 = scmp.lt.s32.totalorder (!%p171_p2), %s348_s16, 3  ;;  %vm236_vm1 = vcmask (!%p171_p2), 261120  }
   0x6   : > { %174 = sbr.rel (%p171_p2) target bundleno = 236 (0xec), region = 36  ;;  %365 = vmatprep.subr.bf16.mxu0 (!%p171_p2), %v393_v1  ;;  %369 = vmatprep.mubr.msk.bf16.mxu0 (!%p171_p2), %vm394_vm0, %v393_v1  ;;  %v356_v5 = vld [vmem:[%s452_s3] ss:$0 sm:$0xff] (!%p171_p2) }
   0x7   : > { %366 = vmatpush3.bf16.msra.mxu0 (!%p171_p2), %v383_v0 }
   0x8   : > { %367 = vmatprep.subr.bf16.mxu0 (!%p171_p2), %v393_v1 }
   0xb   : > { %368 = vmatpush3.bf16.msra.mxu0 (!%p171_p2), %v384_v2 }
   0xd   : > { %s455_s16 = smov (!%p198_p3, %s348_s16), 3 }
   0xe   : > { %s353_s21 = sshll.u32 %s455_s16, 3 }
   0xf   : > { %s201_s24 = scalar_lea.vmem %s449_s0, %s353_s21  ;;  %s205_s27 = scalar_lea.vmem %s450_s1, %s353_s21 }
  0x10   : > { %v211_v3 = vld [vmem:[%s201_s24] sm:$0xff]  ;;  %s209_s6 = scalar_lea.vmem %s453_s4, %s353_s21 }
  0x11   : > { %v212_v4 = vpack.c.bf16 %v211_v3, %v211_v3  ;;  %v280_v7 = vld [vmem:[%s205_s27] sm:$0xff] }
  0x13   : > { %370 = vmatmul.mubr.msk.bf16.vlgmr.msra.gmra.mrb[0].mxu0 %vm236_vm1, %v212_v4 }
  0xe6   : > { %v274_v6 = vpop.f32.mrb[0].mxu0 }
  0xe7   : > { %v275_v8 = vadd.f32 %v356_v5, %v274_v6  ;;  %v371_v9 = vpop.f32.mrb[1].mxu0 }
  0xe8   : > { %v277_v10 = vpop.f32.mrb[2].mxu0 }
  0xe9   : > { %v281_v11 = vadd.f32 %v280_v7, %v275_v8  ;;  %v372_v12 = vpop.f32.mrb[3].mxu0 }
  0xeb   : > { %282 = vst.msk [vmem:[%s209_s6] sm:$0xff] %vm236_vm1, %v281_v11 }
  0xec PF: > { %s14_s15 = sadd.s32 1, %s391_s15  }
  0xed   : > { %p11_p4 = scmp.ge.s32.totalorder %s14_s15, 6  }
  0xef   :  { %13 = sbr.rel (!%p11_p4) target bundleno = 1 (0x1), region = 69 }

// kernel: paligemma_forward.20
= control target key start
LH: loop header
LB: loop body
LE: loop exit
PB: predicated region body
PF: predicated region fallthrough
CT: control target
= control target key end

     0   :  { %s455_s18 = smov 0   ;;  %s497_s0 = inlined_call_operand.vmem [shape: f32[32,32], index: 0, kind: input, shape index: {}]   ;;  %s498_s1 = inlined_call_operand.vmem [shape: f32[1,32], index: 1, kind: input, shape index: {}]   ;;  %s499_s2 = inlined_call_operand.vmem [shape: f32[1,32], index: 2, kind: input, shape index: {}]   ;;  %s500_s3 = inlined_call_operand.vmem [shape: bf16[32,96], index: 3, kind: input, shape index: {}]   ;;  %s501_s4 = inlined_call_operand.vmem [shape: f32[1,96], index: 4, kind: input, shape index: {}]   ;;  %s502_s5 = inlined_call_operand.vmem [shape: f32[32,96], index: 5, kind: output, shape index: {}]  }
   0x1 LB: > { %s375_s19 = sadd.s32 4294967295, %s421_s18   ;;  %p379_p0 = scmp.ge.s32.totalorder %s421_s18, 1  ;;  %s421_s18 = sphi %s455_s18, %s15_s18  }
   0x2   : > { %p186_p1 = scmp.lt.s32.totalorder %s421_s18, 5 }
   0x4   : > { %p187_p2 = pnand %p379_p0, %p186_p1 }
   0x5   : > { %p212_p3 = scmp.lt.s32.totalorder (!%p187_p2), %s375_s19, 3  ;;  %vm224_vm0 = vcmask (!%p187_p2), 261120   ;;  %v411_v7 = vld [vmem:[%s500_s3] sm:$0xff] (!%p187_p2)   ;;  %v423_v8 = vmov (!%p187_p2), 0.0   ;;  %v412_v9 = vld [vmem:[%s500_s3 + $0x8] sm:$0xff] (!%p187_p2)   ;;  %vm424_vm1 = vmmov (!%p187_p2), 0  }
   0x6   : > { %190 = sbr.rel (%p187_p2) target bundleno = 547 (0x223), region = 40  ;;  %393 = vmatprep.subr.bf16.mxu0 (!%p187_p2), %v423_v8  ;;  %397 = vmatprep.mubr.msk.bf16.mxu0 (!%p187_p2), %vm424_vm1, %v423_v8  ;;  %v382_v14 = vld [vmem:[%s498_s1] ss:$0 sm:$0xff] (!%p187_p2)  ;;  %vm320_vm2 = vcmask (!%p187_p2), 785408  }
   0x7   : > { %394 = vmatpush3.bf16.msra.mxu0 (!%p187_p2), %v411_v7  ;;  %v383_v16 = vld [vmem:[%s499_s2] ss:$0 sm:$0xff] (!%p187_p2) }
   0x8   : > { %395 = vmatprep.subr.bf16.mxu0 (!%p187_p2), %v423_v8  ;;  %v384_v20 = vld [vmem:[%s501_s4] ss:$0 sm:$0xff] (!%p187_p2) }
   0xb   : > { %396 = vmatpush3.bf16.msra.mxu0 (!%p187_p2), %v412_v9 }
   0xd   : > { %s504_s19 = smov (!%p212_p3, %s375_s19), 3 }
   0xe   : > { %s380_s20 = sshll.u32 %s504_s19, 3 }
   0xf   : > { %s215_s23 = scalar_lea.vmem %s497_s0, %s380_s20  ;;  %s219_s11 = scalar_lea.vmem %s502_s5, %s380_s20 }
  0x10   : > { %v221_v0 = vld [vmem:[%s215_s23] sm:$0xff] }
  0x11   : > { %v225_v1 = vsel %vm224_vm0, %v221_v0, 0.0 }
  0x12   : > { %226 = vadd.xlane.f32.xlu0 %v225_v1 }
  0x9f   : > { %v227_v2 = vpop.xlane.xlu0 %226 }
  0xa0   : > { %v229_v3 = vmul.f32 0.03125, %v227_v2 }
  0xa2   : > { %v230_v4 = vsub.f32 %v221_v0, %v229_v3 }
  0xa4   : > { %v231_v5 = vmul.f32 %v230_v4, %v230_v4 }
  0xa6   : > { %v232_v6 = vsel %vm224_vm0, %v231_v5, 0.0 }
  0xa7   : > { %233 = vadd.xlane.f32.xlu0 %v232_v6 }
 0x134   : > { %v234_v10 = vpop.xlane.xlu0 %233 }
 0x135   : > { %v235_v11 = vmul.f32 0.03125, %v234_v10 }
 0x137   : > { %v236_v12 = vadd.f32 1e-06, %v235_v11 }
 0x139   : > { %413 = vrsqrt.f32 %v236_v12 }
 0x143   : > { %v414_v13 = vpop.eup %413 }
 0x144   : > { %v238_v15 = vmul.f32 %v414_v13, %v230_v4 }
 0x146   : > { %v245_v17 = vmul.f32 %v382_v14, %v238_v15 }
 0x148   : > { %v252_v18 = vadd.f32 %v383_v16, %v245_v17 }
 0x14a   : > { %v253_v19 = vpack.c.bf16 %v252_v18, %v252_v18 }
 0x14c   : > { %398 = vmatmul.mubr.msk.bf16.vlgmr.msra.gmra.mrb[0].mxu0 %vm224_vm0, %v253_v19 }
 0x21f   : > { %v314_v21 = vpop.f32.mrb[0].mxu0 }
 0x220   : > { %v315_v22 = vadd.f32 %v384_v20, %v314_v21  ;;  %v399_v23 = vpop.f32.mrb[1].mxu0 }
 0x221   : > { %v317_v24 = vpop.f32.mrb[2].mxu0 }
 0x222   : > { %321 = vst.msk [vmem:[%s219_s11] sm:$0xff] %vm320_vm2, %v315_v22  ;;  %v400_v25 = vpop.f32.mrb[3].mxu0 }
 0x223 PF: > { %s15_s18 = sadd.s32 1, %s421_s18  }
 0x224   : > { %p12_p4 = scmp.ge.s32.totalorder %s15_s18, 6  }
 0x226   :  { %14 = sbr.rel (!%p12_p4) target bundleno = 1 (0x1), region = 70 }

// kernel: paligemma_forward.19
= control target key start
LH: loop header
LB: loop body
LE: loop exit
PB: predicated region body
PF: predicated region fallthrough
CT: control target
= control target key end

     0   :  { %s420_s15 = smov 0   ;;  %s455_s0 = inlined_call_operand.vmem [shape: f32[2,16,48], index: 0, kind: input, shape index: {}]   ;;  %s456_s1 = inlined_call_operand.vmem [shape: bf16[48,32], index: 1, kind: input, shape index: {}]   ;;  %s457_s2 = inlined_call_operand.vmem [shape: f32[1,32], index: 2, kind: input, shape index: {}]   ;;  %s458_s3 = inlined_call_operand.vmem [shape: f32[16,32], index: 3, kind: input, shape index: {}]   ;;  %s459_s4 = inlined_call_operand.vmem [shape: f32[2,16,32], index: 4, kind: output, shape index: {}]  }
   0x1 LB: > { %s340_s16 = sadd.s32 4294967295, %s391_s15   ;;  %p344_p0 = scmp.ge.s32.totalorder %s391_s15, 1  ;;  %s391_s15 = sphi %s420_s15, %s14_s15  }
   0x2   : > { %p162_p1 = scmp.lt.s32.totalorder %s391_s15, 3 }
   0x4   : > { %p163_p2 = pnand %p344_p0, %p162_p1 }
   0x5   : > { %v382_v0 = vld [vmem:[%s456_s1] sm:$0xff] (!%p163_p2)   ;;  %v393_v1 = vmov (!%p163_p2), 0.0   ;;  %v383_v2 = vld [vmem:[%s456_s1 + $0x8] sm:$0xff] (!%p163_p2)   ;;  %vm394_vm0 = vmmov (!%p163_p2), 0   ;;  %p188_p3 = scmp.lt.s32.totalorder (!%p163_p2), %s340_s16, 1  ;;  %v384_v3 = vld [vmem:[%s456_s1 + $0x10] sm:$0xff] (!%p163_p2)  }
   0x6   : > { %166 = sbr.rel (%p163_p2) target bundleno = 238 (0xee), region = 36  ;;  %362 = vmatprep.subr.bf16.mxu0 (!%p163_p2), %v393_v1  ;;  %368 = vmatprep.mubr.msk.bf16.mxu0 (!%p163_p2), %vm394_vm0, %v393_v1  ;;  %vm233_vm1 = vcmask (!%p163_p2), 392192   ;;  %v349_v7 = vld [vmem:[%s457_s2] ss:$0 sm:$0xff] (!%p163_p2)  ;;  %vm282_vm2 = vcmask (!%p163_p2), 261120   ;;  %v279_v13 = vld [vmem:[%s458_s3 + $0x8] sm:$0xff] (!%p163_p2) }
   0x7   : > { %363 = vmatpush3.bf16.msra.mxu0 (!%p163_p2), %v382_v0  ;;  %v278_v9 = vld [vmem:[%s458_s3] sm:$0xff] (!%p163_p2) }
   0x8   : > { %364 = vmatprep.subr.bf16.mxu0 (!%p163_p2), %v393_v1 }
   0xb   : > { %365 = vmatpush3.bf16.msra.mxu0 (!%p163_p2), %v383_v2 }
   0xc   : > { %366 = vmatprep.subr.bf16.mxu0 (!%p163_p2), %v393_v1 }
   0xd   : > { %s461_s16 = smov (!%p188_p3, %s340_s16), 1 }
   0xe   : > { %s356_s23 = sshll.u32 %s461_s16, 4 }
   0xf   : > { %s192_s26 = scalar_lea.vmem %s455_s0, %s356_s23  ;;  %367 = vmatpush3.bf16.msra.mxu0 %v384_v3  ;;  %s197_s7 = scalar_lea.vmem %s459_s4, %s356_s23 }
  0x10   : > { %v199_v4 = vld [vmem:[%s192_s26] sm:$0xff]  ;;  %v200_v5 = vld [vmem:[%s192_s26 + $0x8] sm:$0xff] }
  0x11   : > { %v201_v6 = vpack.c.bf16 %v200_v5, %v199_v4 }
  0x13   : > { %369 = vmatmul.mubr.msk.bf16.vlgmr.msra.gmra.mrb[0].mxu0 %vm233_vm1, %v201_v6 }
  0xe6   : > { %v271_v8 = vpop.f32.mrb[0].mxu0 }
  0xe7   : > { %v272_v10 = vadd.f32 %v349_v7, %v271_v8  ;;  %v370_v11 = vpop.f32.mrb[1].mxu0 }
  0xe8   : > { %v274_v12 = vpop.f32.mrb[2].mxu0 }
  0xe9   : > { %v280_v14 = vadd.f32 %v278_v9, %v272_v10  ;;  %v275_v15 = vadd.f32 %v349_v7, %v274_v12  ;;  %v371_v16 = vpop.f32.mrb[3].mxu0 }
  0xeb   : > { %283 = vst.msk [vmem:[%s197_s7] sm:$0xff] %vm282_vm2, %v280_v14  ;;  %v281_v17 = vadd.f32 %v279_v13, %v275_v15 }
  0xed   : > { %284 = vst.msk [vmem:[%s197_s7 + $0x8] sm:$0xff] %vm282_vm2, %v281_v17 }
  0xee PF: > { %s14_s15 = sadd.s32 1, %s391_s15  }
  0xef   : > { %p11_p4 = scmp.ge.s32.totalorder %s14_s15, 4  }
  0xf1   :  { %13 = sbr.rel (!%p11_p4) target bundleno = 1 (0x1), region = 66 }

// kernel: paligemma_forward.21
= control target key start
LH: loop header
LB: loop body
LE: loop exit
PB: predicated region body
PF: predicated region fallthrough
CT: control target
= control target key end

     0   :  { %s1320_s6 = smov 0   ;;  %s1440_s0 = inlined_call_operand.vmem [shape: f32[2,16,96], index: 0, kind: input, shape index: {}]   ;;  %s1441_s1 = inlined_call_operand.vmem [shape: f32[2,16,32], index: 1, kind: output, shape index: {}]  }
   0x1 LB: > { %s1029_s7 = sadd.s32 4294967295, %s1294_s6   ;;  %p1033_p0 = scmp.ge.s32.totalorder %s1294_s6, 1  ;;  %s1294_s6 = sphi %s1320_s6, %s11_s6  }
   0x2   : > { %p87_p1 = scmp.lt.s32.totalorder %s1294_s6, 3 }
   0x4   : > { %p88_p2 = pnand %p1033_p0, %p87_p1 }
   0x5   : > { %p107_p3 = scmp.lt.s32.totalorder (!%p88_p2), %s1029_s7, 1  ;;  %vm125_vm0 = vcmask (!%p88_p2), 64512   ;;  %s1296_s12 = smov (!%p88_p2), 96   ;;  %vm211_vm2 = vcmask (!%p88_p2), 130048   ;;  %vm537_vm3 = vcmask (!%p88_p2), 130112   ;;  %vm754_vm4 = vcmask (!%p88_p2), 195712  }
   0x6   : > { %91 = sbr.rel (%p88_p2) target bundleno = 2628 (0xa44), region = 24  ;;  %vm1349_vm1 = vmpackc.low (!%p88_p2), %vm125_vm0, %vm125_vm0  ;;  %s1297_s13 = smov (!%p88_p2), 64   ;;  %vm971_vm5 = vcmask (!%p88_p2), 261312  }
   0x7   : > { %s1298_s14 = smov (!%p88_p2), 88   ;;  %s1299_s15 = smov (!%p88_p2), 120  }
   0x8   : > { %s1300_s19 = smov (!%p88_p2), 56   ;;  %s1301_s20 = smov (!%p88_p2), 112  }
   0x9   : > { %s1302_s21 = smov (!%p88_p2), 80   ;;  %s1303_s22 = smov (!%p88_p2), 72  }
   0xa   : > { %s1304_s23 = smov (!%p88_p2), 104   ;;  %s1305_s24 = smov (!%p88_p2), 48  }
   0xb   : > { %s1306_s25 = smov (!%p88_p2), 8   ;;  %s1307_s26 = smov (!%p88_p2), 40  }
   0xc   : > { %s1308_s27 = smov (!%p88_p2), 16   ;;  %s1309_s28 = smov (!%p88_p2), 24  }
   0xd   : > { %s1445_s7 = smov (!%p107_p3, %s1029_s7), 1 }
   0xe   : > { %s1064_s8 = sshll.u32 %s1445_s7, 4 }
   0xf   : > { %s111_s11 = scalar_lea.vmem %s1440_s0, %s1064_s8  ;;  %s1380_s18 = scalar_lea.vmem %s1441_s1, %s1064_s8 }
  0x10   : > { %v1336_v0 = vld [vmem:[%s111_s11] sm:$0xff]  ;;  %v1338_v1 = vld [vmem:[%s111_s11 + $0x8] sm:$0xff] }
  0x11   : > { %v1342_v2 = vpack.i.bf16 %v1338_v1, %v1336_v0  ;;  %1102 = vmatprep.mubr.msk.f32.mxu0 %vm125_vm0, %v1336_v0 }
  0x13   : > { %1217 = vrot.lane.b32.xlu0 %v1342_v2, %s1296_s12 }
  0x85   : > { %v1218_v3 = vpop.permute.xlu0 %1217 }
  0x86   : > { %v1220_v4 = vunpack.i.h.bf16 %v1218_v3  ;;  %v1219_v5 = vunpack.i.l.bf16 %v1218_v3 }
  0x88   : > { %v1154_v7 = vpack.c.bf16 %v1220_v4, %v1219_v5 }
  0x8a   : > { %1156 = vmatprep.subr.msk.bf16.mxu0 %vm1349_vm1, %v1154_v7 }
  0x8b   : > { %1159 = vmatpush3.bf16.xpose.msk.msra.mxu0 %vm1349_vm1, %v1154_v7 }
  0x92   : > { %1103 = vmatmul.mubr.msk.f32.vlgmr.msra.gmra.mrb[0].mxu0 %vm125_vm0, %v1338_v1 }
 0x165   : > { %v1104_v8 = vpop.f32.mrb[0].mxu0 }
 0x166   : > { %v210_v9 = vmul.f32 0.35355338, %v1104_v8  ;;  %v200_v10 = vpop.f32.mrb[1].mxu0 }
 0x167   : > { %v209_v11 = vmul.f32 0.35355338, %v200_v10 }
 0x168   : > { %v215_v12 = vsel %vm211_vm2, %v210_v9, -inf }
 0x169   : > { %216 = vmax.xlane.f32.xlu1 %v215_v12  ;;  %v212_v13 = vsel %vm211_vm2, %v209_v11, -inf }
 0x16a   : > { %213 = vmax.xlane.f32.xlu0 %v212_v13 }
 0x17a   : > { %1222 = vrot.lane.b32.xlu1 %v1342_v2, %s1297_s13 }
 0x17e   : > { %1227 = vrot.lane.b32.xlu1 %v1342_v2, %s1298_s14 }
 0x180   : > { %329 = vrot.lane.b32.xlu0 %v1338_v1, %s1299_s15 }
 0x1f6   : > { %v217_v14 = vpop.xlane.xlu1 %216 }
 0x1f7   : > { %v219_v15 = vsub.f32 %v210_v9, %v217_v14  ;;  %v214_v16 = vpop.xlane.xlu0 %213 }
 0x1f8   : > { %v218_v17 = vsub.f32 %v209_v11, %v214_v16 }
 0x1f9   : > { %v222_v18 = vmul.f32 1.442695, %v219_v15 }
 0x1fa   : > { %v220_v19 = vmul.f32 1.442695, %v218_v17  ;;  %v1223_v20 = vpop.permute.xlu1 %1222 }
 0x1fb   : > { %1256 = vpow2.f32 %v222_v18  ;;  %v1225_v21 = vunpack.i.h.bf16 %v1223_v20  ;;  %v1224_v22 = vunpack.i.l.bf16 %v1223_v20  ;;  %v330_v39 = vpop.permute.xlu0 %329 }
 0x1fc   : > { %1258 = vpow2.f32 %v220_v19 }
 0x1fd   : > { %v1160_v23 = vpack.c.bf16 %v1225_v21, %v1224_v22 }
 0x1fe   : > { %v1228_v24 = vpop.permute.xlu1 %1227 }
 0x1ff   : > { %v1230_v25 = vunpack.i.h.bf16 %v1228_v24  ;;  %v1229_v26 = vunpack.i.l.bf16 %v1228_v24  ;;  %1161 = vmatprep.subr.bf16.mxu1 %v1160_v23 }
 0x200   : > { %1163 = vmatpush3.bf16.msra.mxu1 %v1160_v23 }
 0x201   : > { %v1164_v27 = vpack.c.bf16 %v1230_v25, %v1229_v26 }
 0x203   : > { %1166 = vmatprep.subr.msk.bf16.mxu1 %vm1349_vm1, %v1164_v27 }
 0x205   : > { %v1257_v28 = vpop.eup %1256 }
 0x206   : > { %v227_v29 = vsel %vm211_vm2, %v1257_v28, 0.0  ;;  %v1259_v30 = vpop.eup %1258 }
 0x207   : > { %228 = vadd.xlane.f32.xlu1 %v227_v29  ;;  %v224_v31 = vsel %vm211_vm2, %v1259_v30, 0.0 }
 0x20b   : > { %225 = vadd.xlane.f32.xlu1 %v224_v31 }
 0x21c   : > { %327 = vrot.lane.b32.xlu1 %v1336_v0, %s1299_s15 }
 0x294   : > { %v229_v32 = vpop.xlane.xlu1 %228 }
 0x295   : > { %1260 = vrcp.f32 %v229_v32 }
 0x298   : > { %v226_v33 = vpop.xlane.xlu1 %225 }
 0x299   : > { %1262 = vrcp.f32 %v226_v33 }
 0x29c   : > { %v328_v38 = vpop.permute.xlu1 %327 }
 0x29f   : > { %v1261_v34 = vpop.eup %1260 }
 0x2a0   : > { %v233_v37 = vmul.f32 %v1261_v34, %v1257_v28 }
 0x2a3   : > { %v1263_v35 = vpop.eup %1262 }
 0x2a4   : > { %v232_v36 = vmul.f32 %v1263_v35, %v1259_v30 }
 0x2a6   : > { %1109 = vmatprep.mubr.msk.f32.mxu1 %vm211_vm2, %v232_v36 }
 0x2a7   : > { %1110 = vmatmul.mubr.msk.f32.vlgmr.msra.gmra.mrb[0].mxu1 %vm211_vm2, %v233_v37 }
 0x2a8   : > { %1169 = vmatpush3.bf16.xpose.msk.msra.mxu1 %vm1349_vm1, %v1164_v27  ;;  %1116 = vmatprep.mubr.msk.f32.mxu1 %vm125_vm0, %v328_v38 }
 0x2af   : > { %1117 = vmatmul.mubr.msk.f32.vlgmr.msra.gmra.mrb[2].mxu1 %vm125_vm0, %v330_v39 }
 0x37a   : > { %v1111_v40 = vpop.f32.mrb[0].mxu1 }
 0x37b   : > { %322 = vst.msk [vmem:[%s1380_s18 + $0x8] sm:$0xff] %vm125_vm0, %v1111_v40  ;;  %v312_v41 = vpop.f32.mrb[1].mxu1 }
 0x37c   : > { %321 = vst.msk [vmem:[%s1380_s18] sm:$0xff] %vm125_vm0, %v312_v41 }
 0x382   : > { %v1118_v42 = vpop.f32.mrb[2].mxu1 }
 0x383   : > { %v419_v43 = vmul.f32 0.35355338, %v1118_v42  ;;  %v409_v44 = vpop.f32.mrb[3].mxu1 }
 0x384   : > { %v418_v45 = vmul.f32 0.35355338, %v409_v44 }
 0x385   : > { %v423_v46 = vsel %vm211_vm2, %v419_v43, -inf }
 0x386   : > { %424 = vmax.xlane.f32.xlu0 %v423_v46  ;;  %v420_v47 = vsel %vm211_vm2, %v418_v45, -inf }
 0x387   : > { %421 = vmax.xlane.f32.xlu1 %v420_v47 }
 0x398   : > { %1232 = vrot.lane.b32.xlu1 %v1342_v2, %s1300_s19 }
 0x39c   : > { %544 = vrot.lane.b32.xlu1 %v1336_v0, %s1301_s20  ;;  %1237 = vrot.lane.b32.xlu0 %v1342_v2, %s1302_s21 }
 0x413   : > { %v425_v48 = vpop.xlane.xlu0 %424 }
 0x414   : > { %v427_v49 = vsub.f32 %v419_v43, %v425_v48  ;;  %v422_v50 = vpop.xlane.xlu1 %421 }
 0x415   : > { %v426_v51 = vsub.f32 %v418_v45, %v422_v50 }
 0x416   : > { %v430_v52 = vmul.f32 1.442695, %v427_v49 }
 0x417   : > { %v428_v53 = vmul.f32 1.442695, %v426_v51  ;;  %v1238_v62 = vpop.permute.xlu0 %1237 }
 0x418   : > { %1264 = vpow2.f32 %v430_v52  ;;  %v1233_v54 = vpop.permute.xlu1 %1232  ;;  %v1240_v63 = vunpack.i.h.bf16 %v1238_v62  ;;  %v1239_v3 = vunpack.i.l.bf16 %v1238_v62 }
 0x419   : > { %v1235_v55 = vunpack.i.h.bf16 %v1233_v54  ;;  %v1234_v56 = vunpack.i.l.bf16 %v1233_v54  ;;  %1266 = vpow2.f32 %v428_v53 }
 0x41a   : > { %v1174_v4 = vpack.c.bf16 %v1240_v63, %v1239_v3 }
 0x41b   : > { %v1170_v57 = vpack.c.bf16 %v1235_v55, %v1234_v56 }
 0x41c   : > { %v545_v5 = vpop.permute.xlu1 %544 }
 0x41d   : > { %1171 = vmatprep.subr.bf16.mxu0 %v1170_v57 }
 0x41e   : > { %1173 = vmatpush3.bf16.msra.mxu0 %v1170_v57 }
 0x41f   : > { %1176 = vmatprep.subr.msk.bf16.mxu0 %vm1349_vm1, %v1174_v4 }
 0x422   : > { %v1265_v58 = vpop.eup %1264 }
 0x423   : > { %v435_v59 = vsel %vm211_vm2, %v1265_v58, 0.0  ;;  %v1267_v60 = vpop.eup %1266 }
 0x424   : > { %436 = vadd.xlane.f32.xlu1 %v435_v59  ;;  %v432_v61 = vsel %vm211_vm2, %v1267_v60, 0.0 }
 0x428   : > { %433 = vadd.xlane.f32.xlu1 %v432_v61 }
 0x439   : > { %546 = vrot.lane.b32.xlu1 %v1338_v1, %s1301_s20 }
 0x4b1   : > { %v437_v7 = vpop.xlane.xlu1 %436 }
 0x4b2   : > { %1268 = vrcp.f32 %v437_v7 }
 0x4b5   : > { %v434_v8 = vpop.xlane.xlu1 %433 }
 0x4b6   : > { %1270 = vrcp.f32 %v434_v8 }
 0x4b9   : > { %v547_v13 = vpop.permute.xlu1 %546 }
 0x4bc   : > { %v1269_v9 = vpop.eup %1268 }
 0x4bd   : > { %v441_v12 = vmul.f32 %v1269_v9, %v1265_v58 }
 0x4c0   : > { %v1271_v10 = vpop.eup %1270 }
 0x4c1   : > { %v440_v11 = vmul.f32 %v1271_v10, %v1267_v60 }
 0x4c3   : > { %1123 = vmatprep.mubr.msk.f32.mxu0 %vm211_vm2, %v440_v11 }
 0x4c4   : > { %1124 = vmatmul.mubr.msk.f32.vlgmr.msra.gmra.mrb[2].mxu0 %vm211_vm2, %v441_v12 }
 0x4c5   : > { %1179 = vmatpush3.bf16.xpose.msk.msra.mxu0 %vm1349_vm1, %v1174_v4  ;;  %1130 = vmatprep.mubr.msk.f32.mxu0 %vm125_vm0, %v545_v5 }
 0x4cc   : > { %1131 = vmatmul.mubr.msk.f32.vlgmr.msra.gmra.mrb[4].mxu0 %vm125_vm0, %v547_v13 }
 0x597   : > { %v1402_v14 = vpop.f32.mrb[2].mxu0 }
 0x598   : > { %v1404_v15 = vpop.f32.mrb[3].mxu0 }
 0x59f   : > { %v1132_v16 = vpop.f32.mrb[4].mxu0 }
 0x5a0   : > { %v636_v17 = vmul.f32 0.35355338, %v1132_v16  ;;  %v626_v18 = vpop.f32.mrb[5].mxu0 }
 0x5a1   : > { %v635_v19 = vmul.f32 0.35355338, %v626_v18 }
 0x5a2   : > { %v640_v20 = vsel %vm211_vm2, %v636_v17, -inf }
 0x5a3   : > { %641 = vmax.xlane.f32.xlu0 %v640_v20  ;;  %v637_v21 = vsel %vm211_vm2, %v635_v19, -inf }
 0x5a4   : > { %638 = vmax.xlane.f32.xlu1 %v637_v21 }
 0x630   : > { %v642_v22 = vpop.xlane.xlu0 %641 }
 0x631   : > { %v644_v23 = vsub.f32 %v636_v17, %v642_v22  ;;  %v639_v24 = vpop.xlane.xlu1 %638 }
 0x632   : > { %v643_v25 = vsub.f32 %v635_v19, %v639_v24 }
 0x633   : > { %v647_v26 = vmul.f32 1.442695, %v644_v23 }
 0x634   : > { %v645_v27 = vmul.f32 1.442695, %v643_v25 }
 0x635   : > { %1272 = vpow2.f32 %v647_v26 }
 0x636   : > { %1274 = vpow2.f32 %v645_v27 }
 0x63f   : > { %v1273_v28 = vpop.eup %1272 }
 0x640   : > { %v1275_v29 = vpop.eup %1274  ;;  %v652_v30 = vsel %vm211_vm2, %v1273_v28, 0.0 }
 0x641   : > { %653 = vadd.xlane.f32.xlu1 %v652_v30  ;;  %v649_v31 = vsel %vm211_vm2, %v1275_v29, 0.0 }
 0x642   : > { %650 = vadd.xlane.f32.xlu0 %v649_v31 }
 0x652   : > { %1247 = vrot.lane.b32.xlu1 %v1342_v2, %s1303_s22 }
 0x656   : > { %761 = vrot.lane.b32.xlu1 %v1336_v0, %s1304_s23 }
 0x658   : > { %1242 = vrot.lane.b32.xlu0 %v1342_v2, %s1305_s24 }
 0x65c   : > { %763 = vrot.lane.b32.xlu0 %v1338_v1, %s1304_s23 }
 0x6ce   : > { %v654_v32 = vpop.xlane.xlu1 %653 }
 0x6cf   : > { %1276 = vrcp.f32 %v654_v32  ;;  %v651_v33 = vpop.xlane.xlu0 %650 }
 0x6d0   : > { %1278 = vrcp.f32 %v651_v33 }
 0x6d2   : > { %v1248_v34 = vpop.permute.xlu1 %1247 }
 0x6d3   : > { %v1243_v35 = vpop.permute.xlu0 %1242  ;;  %v1250_v36 = vunpack.i.h.bf16 %v1248_v34  ;;  %v1249_v37 = vunpack.i.l.bf16 %v1248_v34 }
 0x6d4   : > { %v1245_v38 = vunpack.i.h.bf16 %v1243_v35  ;;  %v1244_v39 = vunpack.i.l.bf16 %v1243_v35 }
 0x6d5   : > { %v1184_v41 = vpack.c.bf16 %v1250_v36, %v1249_v37 }
 0x6d6   : > { %v1180_v40 = vpack.c.bf16 %v1245_v38, %v1244_v39  ;;  %v762_v44 = vpop.permute.xlu1 %761 }
 0x6d7   : > { %v764_v45 = vpop.permute.xlu0 %763 }
 0x6d8   : > { %1181 = vmatprep.subr.bf16.mxu1 %v1180_v40 }
 0x6d9   : > { %v1277_v42 = vpop.eup %1276  ;;  %1183 = vmatpush3.bf16.msra.mxu1 %v1180_v40 }
 0x6da   : > { %v1279_v0 = vpop.eup %1278  ;;  %1186 = vmatprep.subr.msk.bf16.mxu1 %vm1349_vm1, %v1184_v41  ;;  %v658_v43 = vmul.f32 %v1277_v42, %v1273_v28 }
 0x6db   : > { %v657_v1 = vmul.f32 %v1279_v0, %v1275_v29 }
 0x6dd   : > { %1137 = vmatprep.mubr.msk.f32.mxu1 %vm211_vm2, %v657_v1 }
 0x6de   : > { %1138 = vmatmul.mubr.msk.f32.vlgmr.msra.gmra.mrb[4].mxu1 %vm211_vm2, %v658_v43 }
 0x6df   : > { %1144 = vmatprep.mubr.msk.f32.mxu1 %vm125_vm0, %v762_v44 }
 0x6e2   : > { %1189 = vmatpush3.bf16.xpose.msk.msra.mxu1 %vm1349_vm1, %v1184_v41 }
 0x6e9   : > { %1145 = vmatmul.mubr.msk.f32.vlgmr.msra.gmra.mrb[6].mxu1 %vm125_vm0, %v764_v45 }
 0x7b1   : > { %v1139_v46 = vpop.f32.mrb[4].mxu1 }
 0x7b2   : > { %v737_v47 = vpop.f32.mrb[5].mxu1 }
 0x7bc   : > { %v1146_v48 = vpop.f32.mrb[6].mxu1 }
 0x7bd   : > { %v853_v49 = vmul.f32 0.35355338, %v1146_v48  ;;  %v843_v50 = vpop.f32.mrb[7].mxu1 }
 0x7be   : > { %v852_v51 = vmul.f32 0.35355338, %v843_v50 }
 0x7bf   : > { %v857_v52 = vsel %vm211_vm2, %v853_v49, -inf }
 0x7c0   : > { %858 = vmax.xlane.f32.xlu0 %v857_v52  ;;  %v854_v53 = vsel %vm211_vm2, %v852_v51, -inf }
 0x7c1   : > { %855 = vmax.xlane.f32.xlu1 %v854_v53 }
 0x84d   : > { %v859_v54 = vpop.xlane.xlu0 %858 }
 0x84e   : > { %v861_v55 = vsub.f32 %v853_v49, %v859_v54  ;;  %v856_v56 = vpop.xlane.xlu1 %855 }
 0x84f   : > { %v860_v6 = vsub.f32 %v852_v51, %v856_v56 }
 0x850   : > { %v864_v57 = vmul.f32 1.442695, %v861_v55 }
 0x851   : > { %v862_v58 = vmul.f32 1.442695, %v860_v6 }
 0x852   : > { %1280 = vpow2.f32 %v864_v57 }
 0x853   : > { %1282 = vpow2.f32 %v862_v58 }
 0x85c   : > { %v1281_v59 = vpop.eup %1280 }
 0x85d   : > { %v1283_v60 = vpop.eup %1282  ;;  %v869_v61 = vsel %vm211_vm2, %v1281_v59, 0.0 }
 0x85e   : > { %870 = vadd.xlane.f32.xlu1 %v869_v61  ;;  %v866_v62 = vsel %vm211_vm2, %v1283_v60, 0.0 }
 0x85f   : > { %867 = vadd.xlane.f32.xlu0 %v866_v62 }
 0x86f   : > { %531 = vrot.lane.b32.xlu1 %v1404_v15, %s1306_s25 }
 0x873   : > { %533 = vrot.lane.b32.xlu1 %v1402_v14, %s1306_s25 }
 0x875   : > { %1252 = vrot.lane.b32.xlu0 %v1342_v2, %s1307_s26 }
 0x877   : > { %750 = vrot.lane.b32.xlu1 %v1139_v46, %s1308_s27 }
 0x879   : > { %748 = vrot.lane.b32.xlu0 %v737_v47, %s1308_s27 }
 0x8eb   : > { %v871_v63 = vpop.xlane.xlu1 %870 }
 0x8ec   : > { %1284 = vrcp.f32 %v871_v63  ;;  %v868_v3 = vpop.xlane.xlu0 %867 }
 0x8ed   : > { %1286 = vrcp.f32 %v868_v3 }
 0x8ef   : > { %v532_v4 = vpop.permute.xlu1 %531 }
 0x8f0   : > { %538 = vst.msk [vmem:[%s1380_s18] sm:$0xff] %vm537_vm3, %v532_v4  ;;  %v1253_v5 = vpop.permute.xlu0 %1252 }
 0x8f1   : > { %v1255_v7 = vunpack.i.h.bf16 %v1253_v5  ;;  %v1254_v8 = vunpack.i.l.bf16 %v1253_v5 }
 0x8f3   : > { %v1190_v9 = vpack.c.bf16 %v1255_v7, %v1254_v8  ;;  %v534_v10 = vpop.permute.xlu1 %533 }
 0x8f4   : > { %539 = vst.msk [vmem:[%s1380_s18 + $0x8] sm:$0xff] %vm537_vm3, %v534_v10  ;;  %v749_v2 = vpop.permute.xlu0 %748 }
 0x8f5   : > { %755 = vst.msk [vmem:[%s1380_s18] sm:$0xff] %vm754_vm4, %v749_v2  ;;  %1191 = vmatprep.subr.bf16.mxu0 %v1190_v9 }
 0x8f6   : > { %v1285_v11 = vpop.eup %1284  ;;  %1193 = vmatpush3.bf16.msra.mxu0 %v1190_v9 }
 0x8f7   : > { %v1287_v12 = vpop.eup %1286  ;;  %v751_v13 = vpop.permute.xlu1 %750  ;;  %v875_v15 = vmul.f32 %v1285_v11, %v1281_v59 }
 0x8f8   : > { %756 = vst.msk [vmem:[%s1380_s18 + $0x8] sm:$0xff] %vm754_vm4, %v751_v13  ;;  %v874_v14 = vmul.f32 %v1287_v12, %v1283_v60 }
 0x8fa   : > { %1151 = vmatprep.mubr.msk.f32.mxu0 %vm211_vm2, %v874_v14 }
 0x8fb   : > { %1152 = vmatmul.mubr.msk.f32.vlgmr.msra.gmra.mrb[6].mxu0 %vm211_vm2, %v875_v15 }
 0x9ce   : > { %v1153_v16 = vpop.f32.mrb[6].mxu0 }
 0x9cf   : > { %967 = vrot.lane.b32.xlu1 %v1153_v16, %s1309_s28  ;;  %v954_v17 = vpop.f32.mrb[7].mxu0 }
 0x9d0   : > { %965 = vrot.lane.b32.xlu0 %v954_v17, %s1309_s28 }
 0xa41   : > { %v968_v18 = vpop.permute.xlu1 %967 }
 0xa42   : > { %973 = vst.msk [vmem:[%s1380_s18 + $0x8] sm:$0xff] %vm971_vm5, %v968_v18  ;;  %v966_v19 = vpop.permute.xlu0 %965 }
 0xa43   : > { %972 = vst.msk [vmem:[%s1380_s18] sm:$0xff] %vm971_vm5, %v966_v19 }
 0xa44 PF: > { %s11_s6 = sadd.s32 1, %s1294_s6  }
 0xa45   : > { %p8_p4 = scmp.ge.s32.totalorder %s11_s6, 4  }
 0xa47   :  { %10 = sbr.rel (!%p8_p4) target bundleno = 1 (0x1), region = 54 }

// kernel: paligemma_forward.28
= control target key start
LH: loop header
LB: loop body
LE: loop exit
PB: predicated region body
PF: predicated region fallthrough
CT: control target
= control target key end

     0   :  { %s455_s18 = smov 0   ;;  %s498_s0 = inlined_call_operand.vmem [shape: f32[32,32], index: 0, kind: input, shape index: {}]   ;;  %s499_s1 = inlined_call_operand.vmem [shape: f32[1,32], index: 1, kind: input, shape index: {}]   ;;  %s500_s2 = inlined_call_operand.vmem [shape: f32[1,32], index: 2, kind: input, shape index: {}]   ;;  %s501_s3 = inlined_call_operand.vmem [shape: bf16[32,32], index: 3, kind: input, shape index: {}]   ;;  %s502_s4 = inlined_call_operand.vmem [shape: f32[1,32], index: 4, kind: input, shape index: {}]   ;;  %s503_s5 = inlined_call_operand.vmem [shape: f32[32,32], index: 5, kind: output, shape index: {}]  }
   0x1 LB: > { %s375_s19 = sadd.s32 4294967295, %s421_s18   ;;  %p379_p0 = scmp.ge.s32.totalorder %s421_s18, 1  ;;  %s421_s18 = sphi %s455_s18, %s15_s18  }
   0x2   : > { %p186_p1 = scmp.lt.s32.totalorder %s421_s18, 5 }
   0x4   : > { %p187_p2 = pnand %p379_p0, %p186_p1 }
   0x5   : > { %p212_p3 = scmp.lt.s32.totalorder (!%p187_p2), %s375_s19, 3  ;;  %vm224_vm0 = vcmask (!%p187_p2), 261120   ;;  %v411_v7 = vld [vmem:[%s501_s3] sm:$0xff] (!%p187_p2)   ;;  %v423_v8 = vmov (!%p187_p2), 0.0   ;;  %v412_v9 = vld [vmem:[%s501_s3 + $0x8] sm:$0xff] (!%p187_p2)   ;;  %vm424_vm1 = vmmov (!%p187_p2), 0  }
   0x6   : > { %190 = sbr.rel (%p187_p2) target bundleno = 549 (0x225), region = 40  ;;  %393 = vmatprep.subr.bf16.mxu0 (!%p187_p2), %v423_v8  ;;  %397 = vmatprep.mubr.msk.bf16.mxu0 (!%p187_p2), %vm424_vm1, %v423_v8  ;;  %v382_v14 = vld [vmem:[%s499_s1] ss:$0 sm:$0xff] (!%p187_p2) }
   0x7   : > { %394 = vmatpush3.bf16.msra.mxu0 (!%p187_p2), %v411_v7  ;;  %v383_v16 = vld [vmem:[%s500_s2] ss:$0 sm:$0xff] (!%p187_p2) }
   0x8   : > { %395 = vmatprep.subr.bf16.mxu0 (!%p187_p2), %v423_v8  ;;  %v384_v20 = vld [vmem:[%s502_s4] ss:$0 sm:$0xff] (!%p187_p2) }
   0xb   : > { %396 = vmatpush3.bf16.msra.mxu0 (!%p187_p2), %v412_v9 }
   0xd   : > { %s505_s19 = smov (!%p212_p3, %s375_s19), 3 }
   0xe   : > { %s380_s20 = sshll.u32 %s505_s19, 3 }
   0xf   : > { %s215_s23 = scalar_lea.vmem %s498_s0, %s380_s20  ;;  %s219_s11 = scalar_lea.vmem %s503_s5, %s380_s20 }
  0x10   : > { %v221_v0 = vld [vmem:[%s215_s23] sm:$0xff] }
  0x11   : > { %v225_v1 = vsel %vm224_vm0, %v221_v0, 0.0 }
  0x12   : > { %226 = vadd.xlane.f32.xlu0 %v225_v1 }
  0x9f   : > { %v227_v2 = vpop.xlane.xlu0 %226 }
  0xa0   : > { %v229_v3 = vmul.f32 0.03125, %v227_v2 }
  0xa2   : > { %v230_v4 = vsub.f32 %v221_v0, %v229_v3 }
  0xa4   : > { %v231_v5 = vmul.f32 %v230_v4, %v230_v4 }
  0xa6   : > { %v232_v6 = vsel %vm224_vm0, %v231_v5, 0.0 }
  0xa7   : > { %233 = vadd.xlane.f32.xlu0 %v232_v6 }
 0x134   : > { %v234_v10 = vpop.xlane.xlu0 %233 }
 0x135   : > { %v235_v11 = vmul.f32 0.03125, %v234_v10 }
 0x137   : > { %v236_v12 = vadd.f32 1e-06, %v235_v11 }
 0x139   : > { %413 = vrsqrt.f32 %v236_v12 }
 0x143   : > { %v414_v13 = vpop.eup %413 }
 0x144   : > { %v238_v15 = vmul.f32 %v414_v13, %v230_v4 }
 0x146   : > { %v245_v17 = vmul.f32 %v382_v14, %v238_v15 }
 0x148   : > { %v252_v18 = vadd.f32 %v383_v16, %v245_v17 }
 0x14a   : > { %v253_v19 = vpack.c.bf16 %v252_v18, %v252_v18 }
 0x14c   : > { %398 = vmatmul.mubr.msk.bf16.vlgmr.msra.gmra.mrb[0].mxu0 %vm224_vm0, %v253_v19 }
 0x21f   : > { %v314_v21 = vpop.f32.mrb[0].mxu0 }
 0x220   : > { %v315_v22 = vadd.f32 %v384_v20, %v314_v21  ;;  %v399_v23 = vpop.f32.mrb[1].mxu0 }
 0x221   : > { %v317_v24 = vpop.f32.mrb[2].mxu0 }
 0x222   : > { %v320_v25 = vmul.f32 0.17677669, %v315_v22  ;;  %v400_v26 = vpop.f32.mrb[3].mxu0 }
 0x224   : > { %321 = vst.msk [vmem:[%s219_s11] sm:$0xff] %vm224_vm0, %v320_v25 }
 0x225 PF: > { %s15_s18 = sadd.s32 1, %s421_s18  }
 0x226   : > { %p12_p4 = scmp.ge.s32.totalorder %s15_s18, 6  }
 0x228   :  { %14 = sbr.rel (!%p12_p4) target bundleno = 1 (0x1), region = 70 }

// kernel: paligemma_forward.23
= control target key start
LH: loop header
LB: loop body
LE: loop exit
PB: predicated region body
PF: predicated region fallthrough
CT: control target
= control target key end

     0   :  { %s641_s24 = smov 0   ;;  %s704_s0 = inlined_call_operand.vmem [shape: f32[32,32], index: 0, kind: input, shape index: {}]   ;;  %s705_s1 = inlined_call_operand.vmem [shape: f32[1,32], index: 1, kind: input, shape index: {}]   ;;  %s706_s2 = inlined_call_operand.vmem [shape: f32[1,32], index: 2, kind: input, shape index: {}]   ;;  %s707_s3 = inlined_call_operand.vmem [shape: bf16[32,64], index: 3, kind: input, shape index: {}]   ;;  %s708_s4 = inlined_call_operand.vmem [shape: f32[1,64], index: 4, kind: input, shape index: {}]   ;;  %s709_s5 = inlined_call_operand.vmem [shape: bf16[64,32], index: 5, kind: input, shape index: {}]   ;;  %s710_s6 = inlined_call_operand.vmem [shape: f32[1,32], index: 6, kind: input, shape index: {}]   ;;  %s711_s7 = inlined_call_operand.vmem [shape: f32[32,32], index: 7, kind: output, shape index: {}]  }
   0x1 LB: > { %s522_s25 = sadd.s32 4294967295, %s597_s24   ;;  %p526_p0 = scmp.ge.s32.totalorder %s597_s24, 1  ;;  %s597_s24 = sphi %s641_s24, %s17_s24  }
   0x2   : > { %p236_p1 = scmp.lt.s32.totalorder %s597_s24, 5 }
   0x4   : > { %p237_p2 = pnand %p526_p0, %p236_p1 }
   0x5   : > { %p266_p3 = scmp.lt.s32.totalorder (!%p237_p2), %s522_s25, 3  ;;  %vm278_vm0 = vcmask (!%p237_p2), 261120   ;;  %v581_v7 = vld [vmem:[%s707_s3] sm:$0xff] (!%p237_p2)   ;;  %v599_v8 = vmov (!%p237_p2), 0.0   ;;  %v582_v9 = vld [vmem:[%s707_s3 + $0x8] sm:$0xff] (!%p237_p2)   ;;  %vm600_vm1 = vmmov (!%p237_p2), 0  }
   0x6   : > { %240 = sbr.rel (%p237_p2) target bundleno = 790 (0x316), region = 48  ;;  %551 = vmatprep.subr.bf16.mxu0 (!%p237_p2), %v599_v8  ;;  %559 = vmatprep.subr.bf16.mxu1 (!%p237_p2), %v599_v8  ;;  %v529_v14 = vld [vmem:[%s705_s1] ss:$0 sm:$0xff] (!%p237_p2)  ;;  %v584_v21 = vld [vmem:[%s709_s5 + $0x8] sm:$0xff] (!%p237_p2)   ;;  %v585_v22 = vld [vmem:[%s709_s5 + $0x10] sm:$0xff] (!%p237_p2)   ;;  %vm423_vm2 = vcmask (!%p237_p2), 523264  }
   0x7   : > { %552 = vmatpush3.bf16.msra.mxu0 (!%p237_p2), %v581_v7  ;;  %555 = vmatprep.mubr.msk.bf16.mxu0 (!%p237_p2), %vm600_vm1, %v599_v8  ;;  %v530_v16 = vld [vmem:[%s706_s2] ss:$0 sm:$0xff] (!%p237_p2)  ;;  %v586_v23 = vld [vmem:[%s709_s5 + $0x18] sm:$0xff] (!%p237_p2)  }
   0x8   : > { %553 = vmatprep.subr.bf16.mxu0 (!%p237_p2), %v599_v8  ;;  %567 = vmatprep.mubr.msk.bf16.mxu1 (!%p237_p2), %vm600_vm1, %v599_v8  ;;  %v583_v20 = vld [vmem:[%s709_s5] sm:$0xff] (!%p237_p2)  }
   0x9   : > { %560 = vmatpush3.bf16.msra.mxu1 (!%p237_p2), %v583_v20  ;;  %v531_v24 = vld [vmem:[%s708_s4] ss:$0 sm:$0xff] (!%p237_p2) }
   0xa   : > { %561 = vmatprep.subr.bf16.mxu1 (!%p237_p2), %v599_v8  ;;  %v535_v40 = vld [vmem:[%s710_s6] ss:$0 sm:$0xff] (!%p237_p2) }
   0xb   : > { %554 = vmatpush3.bf16.msra.mxu0 (!%p237_p2), %v582_v9 }
   0xd   : > { %s713_s25 = smov (!%p266_p3, %s522_s25), 3  ;;  %562 = vmatpush3.bf16.msra.mxu1 %v584_v21 }
   0xe   : > { %s527_s26 = sshll.u32 %s713_s25, 3  ;;  %563 = vmatprep.subr.bf16.mxu1 %v599_v8 }
   0xf   : > { %s269_s29 = scalar_lea.vmem %s704_s0, %s527_s26  ;;  %s273_s9 = scalar_lea.vmem %s711_s7, %s527_s26 }
  0x10   : > { %v657_v0 = vld [vmem:[%s269_s29] sm:$0xff] }
  0x11   : > { %v279_v1 = vsel %vm278_vm0, %v657_v0, 0.0  ;;  %564 = vmatpush3.bf16.msra.mxu1 %v585_v22 }
  0x12   : > { %280 = vadd.xlane.f32.xlu0 %v279_v1  ;;  %565 = vmatprep.subr.bf16.mxu1 %v599_v8 }
  0x15   : > { %566 = vmatpush3.bf16.msra.mxu1 %v586_v23 }
  0x9f   : > { %v281_v2 = vpop.xlane.xlu0 %280 }
  0xa0   : > { %v283_v3 = vmul.f32 0.03125, %v281_v2 }
  0xa2   : > { %v284_v4 = vsub.f32 %v657_v0, %v283_v3 }
  0xa4   : > { %v285_v5 = vmul.f32 %v284_v4, %v284_v4 }
  0xa6   : > { %v286_v6 = vsel %vm278_vm0, %v285_v5, 0.0 }
  0xa7   : > { %287 = vadd.xlane.f32.xlu0 %v286_v6 }
 0x134   : > { %v288_v10 = vpop.xlane.xlu0 %287 }
 0x135   : > { %v289_v11 = vmul.f32 0.03125, %v288_v10 }
 0x137   : > { %v290_v12 = vadd.f32 1e-06, %v289_v11 }
 0x139   : > { %587 = vrsqrt.f32 %v290_v12 }
 0x143   : > { %v588_v13 = vpop.eup %587 }
 0x144   : > { %v292_v15 = vmul.f32 %v588_v13, %v284_v4 }
 0x146   : > { %v299_v17 = vmul.f32 %v529_v14, %v292_v15 }
 0x148   : > { %v306_v18 = vadd.f32 %v530_v16, %v299_v17 }
 0x14a   : > { %v307_v19 = vpack.c.bf16 %v306_v18, %v306_v18 }
 0x14c   : > { %556 = vmatmul.mubr.msk.bf16.vlgmr.msra.gmra.mrb[0].mxu0 %vm278_vm0, %v307_v19 }
 0x21f   : > { %v368_v25 = vpop.f32.mrb[0].mxu0 }
 0x220   : > { %v369_v26 = vadd.f32 %v531_v24, %v368_v25  ;;  %v557_v27 = vpop.f32.mrb[1].mxu0 }
 0x221   : > { %v371_v28 = vpop.f32.mrb[2].mxu0 }
 0x222   : > { %v375_v29 = vmul.f32 0.044715, %v369_v26  ;;  %v558_v30 = vpop.f32.mrb[3].mxu0  ;;  %v374_v36 = vmul.f32 0.5, %v369_v26 }
 0x224   : > { %v376_v31 = vmul.f32 %v375_v29, %v369_v26 }
 0x226   : > { %v377_v32 = vmul.f32 %v376_v31, %v369_v26 }
 0x228   : > { %v378_v33 = vadd.f32 %v377_v32, %v369_v26 }
 0x22a   : > { %v379_v34 = vmul.f32 0.7978846, %v378_v33 }
 0x22c   : > { %589 = vtanh.f32 %v379_v34 }
 0x236   : > { %v590_v35 = vpop.eup %589 }
 0x237   : > { %v381_v37 = vadd.f32 1.0, %v590_v35 }
 0x239   : > { %v382_v38 = vmul.f32 %v381_v37, %v374_v36 }
 0x23b   : > { %v383_v39 = vpack.c.bf16 %v382_v38, %v382_v38 }
 0x23d   : > { %568 = vmatmul.mubr.msk.bf16.vlgmr.msra.gmra.mrb[0].mxu1 %vm423_vm2, %v383_v39 }
 0x310   : > { %v461_v41 = vpop.f32.mrb[0].mxu1 }
 0x311   : > { %v462_v42 = vadd.f32 %v535_v40, %v461_v41  ;;  %v569_v43 = vpop.f32.mrb[1].mxu1 }
 0x312   : > { %v464_v44 = vpop.f32.mrb[2].mxu1 }
 0x313   : > { %v467_v45 = vadd.f32 %v462_v42, %v657_v0  ;;  %v570_v46 = vpop.f32.mrb[3].mxu1 }
 0x315   : > { %468 = vst.msk [vmem:[%s273_s9] sm:$0xff] %vm278_vm0, %v467_v45 }
 0x316 PF: > { %s17_s24 = sadd.s32 1, %s597_s24  }
 0x317   : > { %p14_p4 = scmp.ge.s32.totalorder %s17_s24, 6  }
 0x319   :  { %16 = sbr.rel (!%p14_p4) target bundleno = 1 (0x1), region = 78 }

// kernel: paligemma_forward.31
= control target key start
LH: loop header
LB: loop body
LE: loop exit
PB: predicated region body
PF: predicated region fallthrough
CT: control target
= control target key end

     0   :  { %s380_s12 = smov 0   ;;  %s406_s0 = inlined_call_operand.vmem [shape: f32[40,32], index: 0, kind: input, shape index: {}]   ;;  %s407_s1 = inlined_call_operand.vmem [shape: f32[40,32], index: 1, kind: input, shape index: {}]   ;;  %s408_s2 = inlined_call_operand.vmem [shape: bf16[32,32], index: 2, kind: input, shape index: {}]   ;;  %s409_s3 = inlined_call_operand.vmem [shape: f32[40,32], index: 3, kind: output, shape index: {}]  }
   0x1 LB: > { %s314_s13 = sadd.s32 4294967295, %s356_s12   ;;  %p318_p0 = scmp.ge.s32.totalorder %s356_s12, 1  ;;  %s356_s12 = sphi %s380_s12, %s13_s12  }
   0x2   : > { %p145_p1 = scmp.lt.s32.totalorder %s356_s12, 6 }
   0x4   : > { %p146_p2 = pnand %p318_p0, %p145_p1 }
   0x5   : > { %v348_v0 = vld [vmem:[%s408_s2] sm:$0xff] (!%p146_p2)   ;;  %v358_v1 = vmov (!%p146_p2), 0.0   ;;  %v349_v2 = vld [vmem:[%s408_s2 + $0x8] sm:$0xff] (!%p146_p2)   ;;  %vm359_vm0 = vmmov (!%p146_p2), 0   ;;  %p171_p3 = scmp.lt.s32.totalorder (!%p146_p2), %s314_s13, 4  ;;  %vm202_vm1 = vcmask (!%p146_p2), 261120  }
   0x6   : > { %149 = sbr.rel (%p146_p2) target bundleno = 234 (0xea), region = 32  ;;  %330 = vmatprep.subr.bf16.mxu0 (!%p146_p2), %v358_v1  ;;  %334 = vmatprep.mubr.msk.bf16.mxu0 (!%p146_p2), %vm359_vm0, %v358_v1 }
   0x7   : > { %331 = vmatpush3.bf16.msra.mxu0 (!%p146_p2), %v348_v0 }
   0x8   : > { %332 = vmatprep.subr.bf16.mxu0 (!%p146_p2), %v358_v1 }
   0xb   : > { %333 = vmatpush3.bf16.msra.mxu0 (!%p146_p2), %v349_v2 }
   0xd   : > { %s411_s13 = smov (!%p171_p3, %s314_s13), 4 }
   0xe   : > { %s319_s18 = sshll.u32 %s411_s13, 3 }
   0xf   : > { %s174_s21 = scalar_lea.vmem %s406_s0, %s319_s18  ;;  %s178_s24 = scalar_lea.vmem %s407_s1, %s319_s18 }
  0x10   : > { %v184_v3 = vld [vmem:[%s174_s21] sm:$0xff]  ;;  %s182_s27 = scalar_lea.vmem %s409_s3, %s319_s18 }
  0x11   : > { %v185_v4 = vpack.c.bf16 %v184_v3, %v184_v3  ;;  %v246_v5 = vld [vmem:[%s178_s24] sm:$0xff] }
  0x13   : > { %335 = vmatmul.mubr.msk.bf16.vlgmr.msra.gmra.mrb[0].mxu0 %vm202_vm1, %v185_v4 }
  0xe6   : > { %v240_v6 = vpop.f32.mrb[0].mxu0 }
  0xe7   : > { %v247_v7 = vadd.f32 %v246_v5, %v240_v6  ;;  %v336_v8 = vpop.f32.mrb[1].mxu0 }
  0xe8   : > { %v243_v9 = vpop.f32.mrb[2].mxu0 }
  0xe9   : > { %248 = vst.msk [vmem:[%s182_s27] sm:$0xff] %vm202_vm1, %v247_v7  ;;  %v337_v10 = vpop.f32.mrb[3].mxu0 }
  0xea PF: > { %s13_s12 = sadd.s32 1, %s356_s12  }
  0xeb   : > { %p10_p4 = scmp.ge.s32.totalorder %s13_s12, 7  }
  0xed   :  { %12 = sbr.rel (!%p10_p4) target bundleno = 1 (0x1), region = 65 }

// kernel: paligemma_forward.29
= control target key start
LH: loop header
LB: loop body
LE: loop exit
PB: predicated region body
PF: predicated region fallthrough
CT: control target
= control target key end

     0   :  { %s369_s12 = smov 0   ;;  %s404_s0 = inlined_call_operand.vmem [shape: f32[40,32], index: 0, kind: input, shape index: {}]   ;;  %s405_s1 = inlined_call_operand.vmem [shape: f32[1,32], index: 1, kind: input, shape index: {}]   ;;  %s406_s2 = inlined_call_operand.vmem [shape: bf16[32,64], index: 2, kind: input, shape index: {}]   ;;  %s407_s3 = inlined_call_operand.vmem [shape: f32[40,64], index: 3, kind: output, shape index: {}]  }
   0x1 LB: > { %s302_s13 = sadd.s32 4294967295, %s345_s12   ;;  %p306_p0 = scmp.ge.s32.totalorder %s345_s12, 1  ;;  %s345_s12 = sphi %s369_s12, %s13_s12  }
   0x2   : > { %p136_p1 = scmp.lt.s32.totalorder %s345_s12, 6 }
   0x4   : > { %p137_p2 = pnand %p306_p0, %p136_p1 }
   0x5   : > { %p158_p3 = scmp.lt.s32.totalorder (!%p137_p2), %s302_s13, 4  ;;  %vm170_vm0 = vcmask (!%p137_p2), 261120   ;;  %v335_v3 = vld [vmem:[%s406_s2] sm:$0xff] (!%p137_p2)   ;;  %v347_v4 = vmov (!%p137_p2), 0.0   ;;  %vm348_vm1 = vmmov (!%p137_p2), 0   ;;  %v336_v5 = vld [vmem:[%s406_s2 + $0x8] sm:$0xff] (!%p137_p2)   ;;  %v181_v8 = vlaneseq (!%p137_p2) }
   0x6   : > { %140 = sbr.rel (%p137_p2) target bundleno = 398 (0x18e), region = 32  ;;  %317 = vmatprep.subr.bf16.mxu0 (!%p137_p2), %v347_v4  ;;  %321 = vmatprep.mubr.msk.bf16.mxu0 (!%p137_p2), %vm348_vm1, %v347_v4  ;;  %v168_v11 = vld [vmem:[%s405_s1] sm:$0x1] (!%p137_p2)  ;;  %vm247_vm2 = vcmask (!%p137_p2), 523264  }
   0x7   : > { %318 = vmatpush3.bf16.msra.mxu0 (!%p137_p2), %v335_v3  ;;  %v182_v10 = vshrl.u32 (!%p137_p2), %v181_v8, 7  ;;  %v179_v12 = vadd.f32 (!%p137_p2), 1.0, %v168_v11 }
   0x8   : > { %319 = vmatprep.subr.bf16.mxu0 (!%p137_p2), %v347_v4 }
   0x9   : > { %v183_v13 = vsub.s32 (!%p137_p2), 0, %v182_v10 }
   0xb   : > { %320 = vmatpush3.bf16.msra.mxu0 (!%p137_p2), %v336_v5  ;;  %v184_v14 = vrot.slane (!%p137_p2), %v179_v12, %v183_v13 }
   0xd   : > { %s409_s13 = smov (!%p158_p3, %s302_s13), 4 }
   0xe   : > { %s307_s14 = sshll.u32 %s409_s13, 3 }
   0xf   : > { %s161_s17 = scalar_lea.vmem %s404_s0, %s307_s14  ;;  %s165_s26 = scalar_lea.vmem %s407_s3, %s307_s14 }
  0x10   : > { %v167_v0 = vld [vmem:[%s161_s17] sm:$0xff] }
  0x11   : > { %v169_v1 = vmul.f32 %v167_v0, %v167_v0 }
  0x13   : > { %v171_v2 = vsel %vm170_vm0, %v169_v1, 0.0 }
  0x14   : > { %172 = vadd.xlane.f32.xlu0 %v171_v2 }
  0xa1   : > { %v173_v6 = vpop.xlane.xlu0 %172 }
  0xa2   : > { %v175_v7 = vmul.f32 0.03125, %v173_v6 }
  0xa4   : > { %v176_v9 = vadd.f32 1e-06, %v175_v7 }
  0xa6   : > { %337 = vrsqrt.f32 %v176_v9 }
  0xb0   : > { %v338_v15 = vpop.eup %337 }
  0xb1   : > { %v178_v16 = vmul.f32 %v338_v15, %v167_v0 }
  0xb3   : > { %v186_v17 = vmul.f32 %v184_v14, %v178_v16 }
  0xb5   : > { %v187_v18 = vpack.c.bf16 %v186_v17, %v186_v17 }
  0xb7   : > { %322 = vmatmul.mubr.msk.bf16.vlgmr.msra.gmra.mrb[0].mxu0 %vm170_vm0, %v187_v18 }
 0x18a   : > { %v241_v19 = vpop.f32.mrb[0].mxu0 }
 0x18b   : > { %248 = vst.msk [vmem:[%s165_s26] sm:$0xff] %vm247_vm2, %v241_v19  ;;  %v323_v20 = vpop.f32.mrb[1].mxu0 }
 0x18c   : > { %v244_v21 = vpop.f32.mrb[2].mxu0 }
 0x18d   : > { %v324_v22 = vpop.f32.mrb[3].mxu0 }
 0x18e PF: > { %s13_s12 = sadd.s32 1, %s345_s12  }
 0x18f   : > { %p10_p4 = scmp.ge.s32.totalorder %s13_s12, 7  }
 0x191   :  { %12 = sbr.rel (!%p10_p4) target bundleno = 1 (0x1), region = 62 }

// kernel: paligemma_forward.32
= control target key start
LH: loop header
LB: loop body
LE: loop exit
PB: predicated region body
PF: predicated region fallthrough
CT: control target
= control target key end

     0   :  { %s620_s18 = smov 0   ;;  %s684_s0 = inlined_call_operand.vmem [shape: f32[40,32], index: 0, kind: input, shape index: {}]   ;;  %s685_s1 = inlined_call_operand.vmem [shape: f32[1,32], index: 1, kind: input, shape index: {}]   ;;  %s686_s2 = inlined_call_operand.vmem [shape: bf16[32,64], index: 2, kind: input, shape index: {}]   ;;  %s687_s3 = inlined_call_operand.vmem [shape: bf16[32,64], index: 3, kind: input, shape index: {}]   ;;  %s688_s4 = inlined_call_operand.vmem [shape: bf16[64,32], index: 4, kind: input, shape index: {}]   ;;  %s689_s5 = inlined_call_operand.vmem [shape: f32[40,32], index: 5, kind: output, shape index: {}]  }
   0x1 LB: > { %s499_s19 = sadd.s32 4294967295, %s586_s18   ;;  %p503_p0 = scmp.ge.s32.totalorder %s586_s18, 1  ;;  %s586_s18 = sphi %s620_s18, %s15_s18  }
   0x2   : > { %p186_p1 = scmp.lt.s32.totalorder %s586_s18, 6 }
   0x4   : > { %p187_p2 = pnand %p503_p0, %p186_p1 }
   0x5   : > { %p212_p3 = scmp.lt.s32.totalorder (!%p187_p2), %s499_s19, 4  ;;  %vm224_vm0 = vcmask (!%p187_p2), 261120   ;;  %v568_v3 = vld [vmem:[%s686_s2] sm:$0xff] (!%p187_p2)   ;;  %v588_v4 = vmov (!%p187_p2), 0.0   ;;  %vm589_vm1 = vmmov (!%p187_p2), 0   ;;  %v569_v5 = vld [vmem:[%s686_s2 + $0x8] sm:$0xff] (!%p187_p2)   ;;  %v235_v8 = vlaneseq (!%p187_p2) }
   0x6   : > { %190 = sbr.rel (%p187_p2) target bundleno = 639 (0x27f), region = 40  ;;  %530 = vmatprep.subr.bf16.mxu1 (!%p187_p2), %v588_v4  ;;  %534 = vmatprep.mubr.msk.bf16.mxu1 (!%p187_p2), %vm589_vm1, %v588_v4  ;;  %v222_v11 = vld [vmem:[%s685_s1] sm:$0x1] (!%p187_p2)  ;;  %v571_v20 = vld [vmem:[%s687_s3 + $0x8] sm:$0xff] (!%p187_p2)   ;;  %v574_v23 = vld [vmem:[%s688_s4 + $0x10] sm:$0xff] (!%p187_p2)   ;;  %vm400_vm2 = vcmask (!%p187_p2), 523264  }
   0x7   : > { %531 = vmatpush3.bf16.msra.mxu1 (!%p187_p2), %v568_v3  ;;  %546 = vmatprep.subr.bf16.mxu0 (!%p187_p2), %v588_v4  ;;  %v236_v10 = vshrl.u32 (!%p187_p2), %v235_v8, 7  ;;  %v233_v12 = vadd.f32 (!%p187_p2), 1.0, %v222_v11  ;;  %v570_v18 = vld [vmem:[%s687_s3] sm:$0xff] (!%p187_p2)   ;;  %v573_v22 = vld [vmem:[%s688_s4 + $0x8] sm:$0xff] (!%p187_p2)   ;;  %v575_v24 = vld [vmem:[%s688_s4 + $0x18] sm:$0xff] (!%p187_p2)  }
   0x8   : > { %532 = vmatprep.subr.bf16.mxu1 (!%p187_p2), %v588_v4  ;;  %554 = vmatprep.mubr.msk.bf16.mxu0 (!%p187_p2), %vm589_vm1, %v588_v4  ;;  %v572_v21 = vld [vmem:[%s688_s4] sm:$0xff] (!%p187_p2)  }
   0x9   : > { %v237_v13 = vsub.s32 (!%p187_p2), 0, %v236_v10  ;;  %547 = vmatpush3.bf16.msra.mxu0 (!%p187_p2), %v572_v21 }
   0xa   : > { %548 = vmatprep.subr.bf16.mxu0 (!%p187_p2), %v588_v4 }
   0xb   : > { %533 = vmatpush3.bf16.msra.mxu1 (!%p187_p2), %v569_v5  ;;  %v238_v14 = vrot.slane (!%p187_p2), %v233_v12, %v237_v13 }
   0xc   : > { %538 = vmatprep.subr.bf16.mxu1 (!%p187_p2), %v588_v4 }
   0xd   : > { %s691_s19 = smov (!%p212_p3, %s499_s19), 4  ;;  %549 = vmatpush3.bf16.msra.mxu0 %v573_v22 }
   0xe   : > { %s504_s20 = sshll.u32 %s691_s19, 3  ;;  %550 = vmatprep.subr.bf16.mxu0 %v588_v4 }
   0xf   : > { %s215_s23 = scalar_lea.vmem %s684_s0, %s504_s20  ;;  %s219_s22 = scalar_lea.vmem %s689_s5, %s504_s20 }
  0x10   : > { %v636_v0 = vld [vmem:[%s215_s23] sm:$0xff] }
  0x11   : > { %v223_v1 = vmul.f32 %v636_v0, %v636_v0  ;;  %551 = vmatpush3.bf16.msra.mxu0 %v574_v23 }
  0x12   : > { %552 = vmatprep.subr.bf16.mxu0 %v588_v4 }
  0x13   : > { %v225_v2 = vsel %vm224_vm0, %v223_v1, 0.0 }
  0x14   : > { %226 = vadd.xlane.f32.xlu0 %v225_v2 }
  0x15   : > { %553 = vmatpush3.bf16.msra.mxu0 %v575_v24 }
  0xa1   : > { %v227_v6 = vpop.xlane.xlu0 %226 }
  0xa2   : > { %v229_v7 = vmul.f32 0.03125, %v227_v6 }
  0xa4   : > { %v230_v9 = vadd.f32 1e-06, %v229_v7 }
  0xa6   : > { %576 = vrsqrt.f32 %v230_v9 }
  0xb0   : > { %v577_v15 = vpop.eup %576 }
  0xb1   : > { %v232_v16 = vmul.f32 %v577_v15, %v636_v0 }
  0xb3   : > { %v240_v17 = vmul.f32 %v238_v14, %v232_v16 }
  0xb5   : > { %v241_v19 = vpack.c.bf16 %v240_v17, %v240_v17 }
  0xb7   : > { %535 = vmatmul.mubr.msk.bf16.vlgmr.msra.gmra.mrb[0].mxu1 %vm224_vm0, %v241_v19 }
  0xb8   : > { %539 = vmatpush3.bf16.msra.mxu1 %v570_v18  ;;  %542 = vmatprep.mubr.msk.bf16.mxu1 %vm589_vm1, %v588_v4 }
  0xb9   : > { %540 = vmatprep.subr.bf16.mxu1 %v588_v4 }
  0xbc   : > { %541 = vmatpush3.bf16.msra.mxu1 %v571_v20 }
  0xbf   : > { %543 = vmatmul.mubr.msk.bf16.vlgmr.msra.gmra.mrb[4].mxu1 %vm224_vm0, %v241_v19 }
 0x18a   : > { %v295_v25 = vpop.f32.mrb[0].mxu1 }
 0x18b   : > { %v358_v26 = vmul.f32 0.044715, %v295_v25  ;;  %v536_v27 = vpop.f32.mrb[1].mxu1  ;;  %v357_v39 = vmul.f32 0.5, %v295_v25 }
 0x18c   : > { %v298_v28 = vpop.f32.mrb[2].mxu1 }
 0x18d   : > { %v359_v29 = vmul.f32 %v358_v26, %v295_v25  ;;  %v537_v30 = vpop.f32.mrb[3].mxu1 }
 0x18f   : > { %v360_v31 = vmul.f32 %v359_v29, %v295_v25 }
 0x191   : > { %v361_v32 = vadd.f32 %v360_v31, %v295_v25 }
 0x192   : > { %v351_v33 = vpop.f32.mrb[4].mxu1 }
 0x193   : > { %v362_v34 = vmul.f32 0.7978846, %v361_v32  ;;  %v544_v35 = vpop.f32.mrb[5].mxu1 }
 0x194   : > { %v354_v36 = vpop.f32.mrb[6].mxu1 }
 0x195   : > { %578 = vtanh.f32 %v362_v34  ;;  %v545_v37 = vpop.f32.mrb[7].mxu1 }
 0x19f   : > { %v579_v38 = vpop.eup %578 }
 0x1a0   : > { %v364_v40 = vadd.f32 1.0, %v579_v38 }
 0x1a2   : > { %v365_v41 = vmul.f32 %v364_v40, %v357_v39 }
 0x1a4   : > { %v366_v42 = vmul.f32 %v365_v41, %v351_v33 }
 0x1a6   : > { %v367_v43 = vpack.c.bf16 %v366_v42, %v366_v42 }
 0x1a8   : > { %555 = vmatmul.mubr.msk.bf16.vlgmr.msra.gmra.mrb[0].mxu0 %vm400_vm2, %v367_v43 }
 0x27b   : > { %v438_v44 = vpop.f32.mrb[0].mxu0 }
 0x27c   : > { %v444_v45 = vadd.f32 %v438_v44, %v636_v0  ;;  %v556_v46 = vpop.f32.mrb[1].mxu0 }
 0x27d   : > { %v441_v47 = vpop.f32.mrb[2].mxu0 }
 0x27e   : > { %445 = vst.msk [vmem:[%s219_s22] sm:$0xff] %vm224_vm0, %v444_v45  ;;  %v557_v48 = vpop.f32.mrb[3].mxu0 }
 0x27f PF: > { %s15_s18 = sadd.s32 1, %s586_s18  }
 0x280   : > { %p12_p4 = scmp.ge.s32.totalorder %s15_s18, 7  }
 0x282   :  { %14 = sbr.rel (!%p12_p4) target bundleno = 1 (0x1), region = 70 }

// kernel: paligemma_forward.37
= control target key start
LH: loop header
LB: loop body
LE: loop exit
PB: predicated region body
PF: predicated region fallthrough
CT: control target
= control target key end

     0   :  { %s452_s12 = smov 0   ;;  %s519_s0 = inlined_call_operand.vmem [shape: f32[40,32], index: 0, kind: input, shape index: {}]   ;;  %s520_s1 = inlined_call_operand.vmem [shape: f32[1,32], index: 1, kind: input, shape index: {}]   ;;  %s521_s2 = inlined_call_operand.vmem [shape: f32[64,32], index: 2, kind: input, shape index: {}]   ;;  %s522_s3 = inlined_call_operand.vmem [shape: f32[40,64], index: 3, kind: output, shape index: {}]  }
   0x1 LB: > { %s346_s13 = sadd.s32 4294967295, %s427_s12   ;;  %p350_p0 = scmp.ge.s32.totalorder %s427_s12, 1  ;;  %s427_s12 = sphi %s452_s12, %s13_s12  }
   0x2   : > { %p136_p1 = scmp.lt.s32.totalorder %s427_s12, 6 }
   0x4   : > { %p137_p2 = pnand %p350_p0, %p136_p1 }
   0x5   : > { %p158_p3 = scmp.lt.s32.totalorder (!%p137_p2), %s346_s13, 4  ;;  %vm169_vm0 = vcmask (!%p137_p2), 261120   ;;  %v186_v0 = vld [vmem:[%s521_s2] sm:$0xff] (!%p137_p2)  ;;  %v187_v1 = vld [vmem:[%s521_s2 + $0x8] sm:$0xff] (!%p137_p2)  ;;  %v429_v2 = vmov (!%p137_p2), 0.0|0.0   ;;  %v188_v5 = vld [vmem:[%s521_s2 + $0x10] sm:$0xff] (!%p137_p2)  ;;  %v180_v20 = vlaneseq (!%p137_p2) }
   0x6   : > { %140 = sbr.rel (%p137_p2) target bundleno = 394 (0x18a), region = 32  ;;  %392 = vmatprep.subr.bf16.mxu0 (!%p137_p2), %v429_v2  ;;  %v393_v3 = vpack.c.bf16 (!%p137_p2), %v187_v1, %v186_v0  ;;  %vm468_vm1 = vmpackc.low (!%p137_p2), %vm169_vm0, %vm169_vm0  ;;  %v189_v6 = vld [vmem:[%s521_s2 + $0x18] sm:$0xff] (!%p137_p2)  ;;  %v190_v11 = vld [vmem:[%s521_s2 + $0x20] sm:$0xff] (!%p137_p2)  ;;  %vm430_vm2 = vmmov (!%p137_p2), 0   ;;  %v431_v16 = vmov (!%p137_p2), 0.0   ;;  %vm291_vm3 = vcmask (!%p137_p2), 523264  }
   0x7   : > { %v397_v9 = vpack.c.bf16 (!%p137_p2), %v189_v6, %v188_v5  ;;  %v191_v12 = vld [vmem:[%s521_s2 + $0x28] sm:$0xff] (!%p137_p2)  ;;  %v192_v14 = vld [vmem:[%s521_s2 + $0x30] sm:$0xff] (!%p137_p2)  ;;  %v193_v15 = vld [vmem:[%s521_s2 + $0x38] sm:$0xff] (!%p137_p2)  ;;  %389 = vmatprep.mubr.msk.f32.mxu0 (!%p137_p2), %vm430_vm2, %v431_v16  ;;  %v181_v22 = vshrl.u32 (!%p137_p2), %v180_v20, 7 }
   0x8   : > { %395 = vmatpush3.bf16.xpose.msk.msra.mxu0 (!%p137_p2), %vm468_vm1, %v393_v3  ;;  %v401_v13 = vpack.c.bf16 (!%p137_p2), %v191_v12, %v190_v11  ;;  %v405_v17 = vpack.c.bf16 (!%p137_p2), %v193_v15, %v192_v14  ;;  %v167_v23 = vld [vmem:[%s520_s1] sm:$0x1] (!%p137_p2) }
   0x9   : > { %396 = vmatprep.subr.bf16.mxu0 (!%p137_p2), %v429_v2  ;;  %v178_v24 = vadd.f32 (!%p137_p2), 1.0, %v167_v23  ;;  %v182_v25 = vsub.s32 (!%p137_p2), 0, %v181_v22 }
   0xb   : > { %v183_v26 = vrot.slane (!%p137_p2), %v178_v24, %v182_v25 }
   0xd   : > { %s526_s13 = smov (!%p158_p3, %s346_s13), 4 }
   0xe   : > { %s351_s18 = sshll.u32 %s526_s13, 3 }
   0xf   : > { %s161_s25 = scalar_lea.vmem %s519_s0, %s351_s18  ;;  %s165_s11 = scalar_lea.vmem %s522_s3, %s351_s18 }
  0x10   : > { %v166_v7 = vld [vmem:[%s161_s25] sm:$0xff]  ;;  %399 = vmatpush3.bf16.xpose.msk.msra.mxu0 %vm468_vm1, %v397_v9 }
  0x11   : > { %v168_v8 = vmul.f32 %v166_v7, %v166_v7  ;;  %400 = vmatprep.subr.bf16.mxu0 %v429_v2 }
  0x13   : > { %v170_v10 = vsel %vm169_vm0, %v168_v8, 0.0 }
  0x14   : > { %171 = vadd.xlane.f32.xlu0 %v170_v10 }
  0x18   : > { %403 = vmatpush3.bf16.xpose.msk.msra.mxu0 %vm468_vm1, %v401_v13 }
  0x19   : > { %404 = vmatprep.subr.bf16.mxu0 %v429_v2 }
  0x20   : > { %407 = vmatpush3.bf16.xpose.msk.msra.mxu0 %vm468_vm1, %v405_v17 }
  0xa1   : > { %v172_v18 = vpop.xlane.xlu0 %171 }
  0xa2   : > { %v174_v19 = vmul.f32 0.03125, %v172_v18 }
  0xa4   : > { %v175_v21 = vadd.f32 1e-06, %v174_v19 }
  0xa6   : > { %419 = vrsqrt.f32 %v175_v21 }
  0xb0   : > { %v420_v27 = vpop.eup %419 }
  0xb1   : > { %v177_v28 = vmul.f32 %v420_v27, %v166_v7 }
  0xb3   : > { %v185_v29 = vmul.f32 %v183_v26, %v177_v28 }
  0xb5   : > { %390 = vmatmul.mubr.msk.f32.vlgmr.msra.gmra.mrb[0].mxu0 %vm169_vm0, %v185_v29 }
 0x188   : > { %v287_v30 = vpop.f32.mrb[0].mxu0 }
 0x189   : > { %292 = vst.msk [vmem:[%s165_s11] sm:$0xff] %vm291_vm3, %v287_v30  ;;  %v391_v31 = vpop.f32.mrb[1].mxu0 }
 0x18a PF: > { %s13_s12 = sadd.s32 1, %s427_s12  }
 0x18b   : > { %p10_p4 = scmp.ge.s32.totalorder %s13_s12, 7  }
 0x18d   :  { %12 = sbr.rel (!%p10_p4) target bundleno = 1 (0x1), region = 62 }

// kernel: paligemma_forward.30
= control target key start
LH: loop header
LB: loop body
LE: loop exit
PB: predicated region body
PF: predicated region fallthrough
CT: control target
= control target key end

     0   :  { %s2512_s12 = smov 0   ;;  %s2973_s0 = inlined_call_operand.vmem [shape: f32[2,20,64], index: 0, kind: input, shape index: {}]   ;;  %s2974_s1 = inlined_call_operand.vmem [shape: f32[2,20,8], index: 1, kind: input, shape index: {}]   ;;  %s2975_s2 = inlined_call_operand.vmem [shape: f32[2,20,8], index: 2, kind: input, shape index: {}]   ;;  %s2976_s3 = inlined_call_operand.vmem [shape: f32[2,20,32], index: 3, kind: output, shape index: {}]  }
   0x1 LB: > { %s2022_s13 = sadd.s32 4294967295, %s2475_s12   ;;  %p2026_p0 = scmp.ge.s32.totalorder %s2475_s12, 1  ;;  %s2475_s12 = sphi %s2512_s12, %s13_s12  }
   0x2   : > { %p157_p1 = scmp.lt.s32.totalorder %s2475_s12, 3 }
   0x4   : > { %p158_p2 = pnand %p2026_p0, %p157_p1 }
   0x5   : > { %p191_p3 = scmp.lt.s32.totalorder (!%p158_p2), %s2022_s13, 1  ;;  %v217_v0 = vlaneseq (!%p158_p2)  ;;  %v2477_v1 = vmov (!%p158_p2), 0.0   ;;  %vm2478_vm0 = vmmov (!%p158_p2), 0   ;;  %s2479_s21 = smov (!%p158_p2), 96   ;;  %vm255_vm3 = vcmask (!%p158_p2), 64512  }
   0x6   : > { %161 = sbr.rel (%p158_p2) target bundleno = 3112 (0xc28), region = 32  ;;  %2163 = vmatprep.subr.mxu0 (!%p158_p2), %v2477_v1  ;;  %2165 = vmatprep.mubr.msk.f32.mxu0 (!%p158_p2), %vm2478_vm0, %v2477_v1  ;;  %s2480_s22 = smov (!%p158_p2), 32   ;;  %v2483_v32 = vmov (!%p158_p2), 0.0|0.0   ;;  %vm2642_vm4 = vmpackc.low (!%p158_p2), %vm255_vm3, %vm255_vm3  ;;  %vm684_vm5 = vcmask (!%p158_p2), 162816   ;;  %vm691_vm6 = vcmask (!%p158_p2), 158720   ;;  %vm736_vm7 = vcmask (!%p158_p2), 1043456  }
   0x7   : > { %v218_v2 = vshrl.u32 (!%p158_p2), %v217_v0, 7  ;;  %v220_v3 = vand.u32 (!%p158_p2), 127, %v217_v0  ;;  %2174 = vmatprep.subr.mxu1 (!%p158_p2), %v2477_v1  ;;  %2176 = vmatprep.mubr.msk.f32.mxu1 (!%p158_p2), %vm2478_vm0, %v2477_v1  ;;  %s2481_s26 = smov (!%p158_p2), 88   ;;  %s2482_s27 = smov (!%p158_p2), 120   ;;  %vm821_vm8 = vcmask (!%p158_p2), 60416   ;;  %vm1183_vm9 = vcmask (!%p158_p2), 130112  }
   0x8   : > { %s2484_s28 = smov (!%p158_p2), 8   ;;  %s2485_s29 = smov (!%p158_p2), 80   ;;  %vm1186_vm10 = vcmask (!%p158_p2), 126016   ;;  %vm1573_vm11 = vcmask (!%p158_p2), 195712   ;;  %vm1576_vm12 = vcmask (!%p158_p2), 191616   ;;  %vm1938_vm13 = vcmask (!%p158_p2), 261312  }
   0x9   : > { %v221_v4 = vadd.s32 (!%p158_p2), 4, %v218_v2  ;;  %v224_v5 = vadd.s32 (!%p158_p2), 4, %v220_v3  ;;  %s2486_s30 = smov (!%p158_p2), 112   ;;  %s2487_s7 = smov (!%p158_p2), 40   ;;  %vm1941_vm14 = vcmask (!%p158_p2), 257216  }
   0xa   : > { %s2488_s8 = smov (!%p158_p2), 16   ;;  %s2489_s9 = smov (!%p158_p2), 104  }
   0xb   : > { %vm222_vm1 = vcmp.eq.s32.totalorder (!%p158_p2), %v220_v3, %v221_v4  ;;  %vm225_vm2 = vcmp.eq.s32.totalorder (!%p158_p2), %v218_v2, %v224_v5  ;;  %s2490_s10 = smov (!%p158_p2), 24   ;;  %s2491_s11 = smov (!%p158_p2), 72  }
   0xc   : > { %v223_v8 = vsel (!%p158_p2), %vm222_vm1, 1.0, %v2477_v1  ;;  %v226_v9 = vsel (!%p158_p2), %vm225_vm2, 1.0, %v2477_v1 }
   0xd   : > { %s2980_s13 = smov (!%p191_p3, %s2022_s13), 1  ;;  %v2552_v10 = vsub.f32 %v223_v8, %v226_v9 }
   0xe   : > { %s2526_s14 = smul.u32 24, %s2980_s13 }
   0xf   : > { %2164 = vmatpush3.msra.mxu0 %v2552_v10  ;;  %2175 = vmatpush3.msra.mxu1 %v2552_v10 }
  0x10   : > { %s2532_s17 = scalar_lea.vmem %s2973_s0, %s2526_s14  ;;  %s2538_s20 = scalar_lea.vmem %s2974_s1, %s2526_s14  ;;  %2185 = vmatprep.subr.mxu0 %v2477_v1  ;;  %2349 = vmatprep.subr.bf16.mxu1 %v2483_v32 }
  0x11   : > { %v2541_v6 = vld [vmem:[%s2532_s17] sm:$0xff]  ;;  %v2544_v7 = vld [vmem:[%s2532_s17 + $0x10] sm:$0xf]  ;;  %v2555_v11 = vld [vmem:[%s2532_s17 + $0x8] sm:$0xff]  ;;  %s205_s25 = scalar_lea.vmem %s2975_s2, %s2526_s14  ;;  %s2783_s6 = scalar_lea.vmem %s2976_s3, %s2526_s14 }
  0x12   : > { %249 = vrot.lane.b32.xlu0 %v2541_v6, %s2479_s21  ;;  %253 = vrot.lane.b32.xlu1 %v2544_v7, %s2479_s21  ;;  %v2558_v12 = vld [vmem:[%s2538_s20] sm:$0xff]  ;;  %v2590_v16 = vld [vmem:[%s2538_s20 + $0x8] sm:$0xff] }
  0x13   : > { %v2598_v17 = vld [vmem:[%s205_s25] sm:$0xff]  ;;  %v2601_v21 = vld [vmem:[%s205_s25 + $0x8] sm:$0xff]  ;;  %v2605_v23 = vld [vmem:[%s2538_s20 + $0x10] sm:$0xf]  ;;  %v482_v59 = vmul.f32 %v2541_v6, %v2558_v12  ;;  %v483_v63 = vmul.f32 %v2555_v11, %v2590_v16 }
  0x14   : > { %v2608_v26 = vld [vmem:[%s205_s25 + $0x10] sm:$0xf]  ;;  %v484_v3 = vmul.f32 %v2544_v7, %v2605_v23 }
  0x15   : > { %v2624_v33 = vld [vmem:[%s2532_s17 + $0x10] sm:$0xf] }
  0x16   : > { %251 = vrot.lane.b32.xlu0 %v2555_v11, %s2479_s21  ;;  %234 = vrot.lane.b32.xlu1 %v2558_v12, %s2480_s22 }
  0x1a   : > { %236 = vrot.lane.b32.xlu0 %v2590_v16, %s2480_s22 }
  0x84   : > { %v250_v13 = vpop.permute.xlu0 %249  ;;  %v254_v15 = vpop.permute.xlu1 %253 }
  0x85   : > { %2166 = vmatmul.mubr.msk.f32.vlgmr.msra.gmra.mrb[0].mxu0 %vm255_vm3, %v250_v13 }
  0x86   : > { %2168 = vmatprep.mubr.msk.f32.mxu0 %vm2478_vm0, %v2477_v1  ;;  %2186 = vmatpush3.msra.mxu0 %v2552_v10 }
  0x87   : > { %2353 = vmatprep.subr.bf16.mxu0 %v2483_v32 }
  0x88   : > { %v252_v14 = vpop.permute.xlu0 %251  ;;  %v235_v30 = vpop.permute.xlu1 %234 }
  0x89   : > { %2169 = vmatmul.mubr.msk.f32.gmra.mrb[2].mxu0 %vm255_vm3, %v252_v14  ;;  %v243_v34 = vmul.f32 %v235_v30, %v2541_v6 }
  0x8a   : > { %2171 = vmatprep.mubr.msk.f32.mxu0 %vm2478_vm0, %v2477_v1 }
  0x8c   : > { %v237_v31 = vpop.permute.xlu0 %236 }
  0x8d   : > { %2172 = vmatmul.mubr.msk.f32.gmra.mrb[4].mxu0 %vm255_vm3, %v254_v15  ;;  %v244_v38 = vmul.f32 %v237_v31, %v2555_v11 }
  0x8e   : > { %2187 = vmatprep.mubr.msk.f32.mxu0 %vm2478_vm0, %v2477_v1 }
  0x91   : > { %2188 = vmatmul.mubr.msk.f32.vlgmr.msra.gmra.mrb[6].mxu0 %vm255_vm3, %v2541_v6 }
  0x92   : > { %2190 = vmatprep.mubr.msk.f32.mxu0 %vm2478_vm0, %v2477_v1 }
  0x95   : > { %2191 = vmatmul.mubr.msk.f32.gmra.mrb[8].mxu0 %vm255_vm3, %v2555_v11 }
  0x96   : > { %2193 = vmatprep.mubr.msk.f32.mxu0 %vm2478_vm0, %v2477_v1 }
  0x99   : > { %2194 = vmatmul.mubr.msk.f32.gmra.mrb[10].mxu0 %vm255_vm3, %v2544_v7 }
  0x9a   : > { %2217 = vmatprep.mubr.msk.f32.mxu0 %vm2478_vm0, %v2477_v1 }
 0x158   : > { %v328_v18 = vpop.f32.mrb[0].mxu0 }
 0x159   : > { %v342_v19 = vmul.f32 %v328_v18, %v2598_v17  ;;  %v2167_v20 = vpop.f32.mrb[1].mxu0 }
 0x15b   : > { %348 = vrot.lane.b32.xlu1 %v342_v19, %s2480_s22 }
 0x15c   : > { %v333_v22 = vpop.f32.mrb[2].mxu0 }
 0x15d   : > { %v343_v24 = vmul.f32 %v333_v22, %v2601_v21  ;;  %v2170_v25 = vpop.f32.mrb[3].mxu0 }
 0x15f   : > { %350 = vrot.lane.b32.xlu0 %v343_v24, %s2480_s22  ;;  %238 = vrot.lane.b32.xlu1 %v2605_v23, %s2480_s22 }
 0x160   : > { %v338_v27 = vpop.f32.mrb[4].mxu0 }
 0x161   : > { %v344_v28 = vmul.f32 %v338_v27, %v2608_v26  ;;  %v2173_v29 = vpop.f32.mrb[5].mxu0 }
 0x163   : > { %352 = vrot.lane.b32.xlu0 %v344_v28, %s2480_s22 }
 0x164   : > { %v557_v35 = vpop.f32.mrb[6].mxu0 }
 0x165   : > { %v2189_v37 = vpop.f32.mrb[7].mxu0  ;;  %v571_v60 = vmul.f32 %v557_v35, %v2598_v17 }
 0x167   : > { %372 = vrot.lane.b32.xlu0 %v2541_v6, %s2481_s26  ;;  %v574_v62 = vadd.f32 %v571_v60, %v482_v59 }
 0x168   : > { %v562_v45 = vpop.f32.mrb[8].mxu0 }
 0x169   : > { %v2192_v47 = vpop.f32.mrb[9].mxu0  ;;  %v572_v0 = vmul.f32 %v562_v45, %v2601_v21 }
 0x16b   : > { %376 = vrot.lane.b32.xlu0 %v2544_v7, %s2481_s26  ;;  %v575_v2 = vadd.f32 %v572_v0, %v483_v63 }
 0x16c   : > { %v567_v48 = vpop.f32.mrb[10].mxu0 }
 0x16d   : > { %v2195_v50 = vpop.f32.mrb[11].mxu0  ;;  %v573_v4 = vmul.f32 %v567_v48, %v2608_v26 }
 0x16f   : > { %841 = vrot.lane.b32.xlu0 %v2541_v6, %s2482_s27  ;;  %v576_v5 = vadd.f32 %v573_v4, %v484_v3 }
 0x173   : > { %845 = vrot.lane.b32.xlu0 %v2624_v33, %s2482_s27 }
 0x1cd   : > { %v349_v36 = vpop.permute.xlu1 %348 }
 0x1ce   : > { %v357_v40 = vadd.f32 %v349_v36, %v243_v34 }
 0x1d1   : > { %v351_v39 = vpop.permute.xlu0 %350  ;;  %v239_v42 = vpop.permute.xlu1 %238 }
 0x1d2   : > { %v358_v41 = vadd.f32 %v351_v39, %v244_v38  ;;  %v245_v46 = vmul.f32 %v239_v42, %v2544_v7 }
 0x1d4   : > { %v2401_v43 = vpack.i.bf16 %v358_v41, %v357_v40 }
 0x1d5   : > { %v353_v44 = vpop.permute.xlu0 %352 }
 0x1d6   : > { %2402 = vrot.lane.b32.xlu1 %v2401_v43, %s2479_s21  ;;  %v359_v51 = vadd.f32 %v353_v44, %v245_v46 }
 0x1d9   : > { %v373_v49 = vpop.permute.xlu0 %372 }
 0x1da   : > { %374 = vrot.lane.b32.xlu1 %v2555_v11, %s2481_s26  ;;  %2177 = vmatmul.mubr.msk.f32.vlgmr.msra.gmra.mrb[0].mxu1 %vm255_vm3, %v373_v49 }
 0x1db   : > { %2179 = vmatprep.mubr.msk.f32.mxu1 %vm2478_vm0, %v2477_v1 }
 0x1dd   : > { %v377_v58 = vpop.permute.xlu0 %376 }
 0x1de   : > { %584 = vrot.lane.b32.xlu1 %v359_v51, %s2479_s21 }
 0x1e1   : > { %v842_v8 = vpop.permute.xlu0 %841 }
 0x1e2   : > { %843 = vrot.lane.b32.xlu1 %v2555_v11, %s2482_s27 }
 0x1e5   : > { %v846_v13 = vpop.permute.xlu0 %845 }
 0x248   : > { %v2403_v52 = vpop.permute.xlu1 %2402 }
 0x249   : > { %v2405_v53 = vunpack.i.h.bf16 %v2403_v52  ;;  %v2404_v54 = vunpack.i.l.bf16 %v2403_v52 }
 0x24b   : > { %v2646_v56 = vpack.c.bf16 %v2405_v53, %v2404_v54 }
 0x24c   : > { %v375_v57 = vpop.permute.xlu1 %374 }
 0x24d   : > { %2352 = vmatpush3.bf16.xpose.msk.msra.mxu1 %vm2642_vm4, %v2646_v56 }
 0x24e   : > { %2180 = vmatmul.mubr.msk.f32.gmra.mrb[2].mxu1 %vm255_vm3, %v375_v57  ;;  %2200 = vmatprep.subr.mxu1 %v2477_v1 }
 0x24f   : > { %2182 = vmatprep.mubr.msk.f32.mxu1 %vm2478_vm0, %v2477_v1 }
 0x250   : > { %v2659_v61 = vpop.permute.xlu1 %584 }
 0x252   : > { %2183 = vmatmul.mubr.msk.f32.gmra.mrb[4].mxu1 %vm255_vm3, %v377_v58 }
 0x253   : > { %2202 = vmatprep.mubr.msk.f32.mxu1 %vm2478_vm0, %v2477_v1 }
 0x254   : > { %v844_v9 = vpop.permute.xlu1 %843 }
 0x255   : > { %2201 = vmatpush3.xpose.msk.msra.mxu1 %vm255_vm3, %v2659_v61 }
 0x256   : > { %2226 = vmatprep.subr.mxu1 %v2477_v1 }
 0x258   : > { %2203 = vmatmul.mubr.msk.f32.vlgmr.msra.gmra.mrb[6].mxu1 %vm255_vm3, %v574_v62 }
 0x259   : > { %2205 = vmatprep.mubr.msk.f32.mxu1 %vm2478_vm0, %v2477_v1  ;;  %2227 = vmatpush3.msra.mxu1 %v2552_v10 }
 0x25a   : > { %2360 = vmatprep.subr.bf16.mxu1 %v2483_v32 }
 0x25c   : > { %2206 = vmatmul.mubr.msk.f32.gmra.mrb[8].mxu1 %vm255_vm3, %v575_v2 }
 0x25d   : > { %2208 = vmatprep.mubr.msk.f32.mxu1 %vm2478_vm0, %v2477_v1 }
 0x260   : > { %2209 = vmatmul.mubr.msk.f32.gmra.mrb[10].mxu1 %vm255_vm3, %v576_v5 }
 0x261   : > { %2228 = vmatprep.mubr.msk.f32.mxu1 %vm2478_vm0, %v2477_v1 }
 0x264   : > { %2229 = vmatmul.mubr.msk.f32.vlgmr.msra.gmra.mrb[12].mxu1 %vm255_vm3, %v842_v8 }
 0x265   : > { %2231 = vmatprep.mubr.msk.f32.mxu1 %vm2478_vm0, %v2477_v1 }
 0x268   : > { %2232 = vmatmul.mubr.msk.f32.gmra.mrb[14].mxu1 %vm255_vm3, %v844_v9 }
 0x269   : > { %2234 = vmatprep.mubr.msk.f32.mxu1 %vm2478_vm0, %v2477_v1 }
 0x26c   : > { %2235 = vmatmul.mubr.msk.f32.gmra.mrb[16].mxu1 %vm255_vm3, %v846_v13 }
 0x26d   : > { %2258 = vmatprep.mubr.msk.f32.mxu1 %vm2478_vm0, %v2477_v1 }
 0x2ad   : > { %v2692_v14 = vpop.f32.mrb[0].mxu1 }
 0x2ae   : > { %v2178_v15 = vpop.f32.mrb[1].mxu1 }
 0x321   : > { %v2694_v18 = vpop.f32.mrb[2].mxu1 }
 0x322   : > { %v2181_v19 = vpop.f32.mrb[3].mxu1 }
 0x325   : > { %v2696_v20 = vpop.f32.mrb[4].mxu1 }
 0x326   : > { %v2184_v22 = vpop.f32.mrb[5].mxu1 }
 0x32b   : > { %v667_v24 = vpop.f32.mrb[6].mxu1 }
 0x32c   : > { %v681_v25 = vmul.f32 0.35355338, %v667_v24  ;;  %v2204_v27 = vpop.f32.mrb[7].mxu1 }
 0x32e   : > { %v685_v28 = vsel %vm684_vm5, %v681_v25, -inf }
 0x32f   : > { %686 = vmax.xlane.f32.xlu1 %v685_v28  ;;  %v672_v29 = vpop.f32.mrb[8].mxu1 }
 0x330   : > { %v682_v30 = vmul.f32 0.35355338, %v672_v29  ;;  %v2207_v31 = vpop.f32.mrb[9].mxu1 }
 0x332   : > { %v688_v34 = vsel %vm684_vm5, %v682_v30, -inf }
 0x333   : > { %689 = vmax.xlane.f32.xlu0 %v688_v34  ;;  %v677_v35 = vpop.f32.mrb[10].mxu1 }
 0x334   : > { %v683_v36 = vmul.f32 0.35355338, %v677_v35  ;;  %v2210_v37 = vpop.f32.mrb[11].mxu1 }
 0x336   : > { %v692_v38 = vsel %vm691_vm6, %v683_v36, -inf }
 0x337   : > { %693 = vmax.xlane.f32.xlu0 %v692_v38  ;;  %v919_v39 = vpop.f32.mrb[12].mxu1 }
 0x338   : > { %v2230_v40 = vpop.f32.mrb[13].mxu1  ;;  %v933_v47 = vmul.f32 %v919_v39, %v2598_v17 }
 0x33b   : > { %v924_v41 = vpop.f32.mrb[14].mxu1 }
 0x33c   : > { %v2233_v42 = vpop.f32.mrb[15].mxu1  ;;  %v934_v45 = vmul.f32 %v924_v41, %v2601_v21 }
 0x33f   : > { %v929_v43 = vpop.f32.mrb[16].mxu1 }
 0x340   : > { %826 = vrot.lane.b32.xlu1 %v2558_v12, %s2484_s28  ;;  %v2236_v44 = vpop.f32.mrb[17].mxu1  ;;  %v935_v46 = vmul.f32 %v929_v43, %v2608_v26 }
 0x344   : > { %828 = vrot.lane.b32.xlu1 %v2590_v16, %s2484_s28 }
 0x348   : > { %941 = vrot.lane.b32.xlu1 %v934_v45, %s2484_s28 }
 0x34c   : > { %943 = vrot.lane.b32.xlu1 %v935_v46, %s2484_s28 }
 0x34d   : > { %830 = vrot.lane.b32.xlu0 %v2605_v23, %s2484_s28 }
 0x351   : > { %939 = vrot.lane.b32.xlu0 %v933_v47, %s2484_s28 }
 0x3bc   : > { %v687_v48 = vpop.xlane.xlu1 %686 }
 0x3bd   : > { %v695_v49 = vsub.f32 %v681_v25, %v687_v48  ;;  %v2722_v25 = vpack.i.bf16 %v2555_v11, %v2541_v6 }
 0x3bf   : > { %v698_v50 = vmul.f32 1.442695, %v695_v49 }
 0x3c0   : > { %v690_v51 = vpop.xlane.xlu0 %689  ;;  %v827_v0 = vpop.permute.xlu1 %826 }
 0x3c1   : > { %2421 = vpow2.f32 %v698_v50  ;;  %v696_v52 = vsub.f32 %v682_v30, %v690_v51  ;;  %v835_v9 = vmul.f32 %v827_v0, %v2541_v6 }
 0x3c3   : > { %v700_v53 = vmul.f32 1.442695, %v696_v52 }
 0x3c4   : > { %v694_v54 = vpop.xlane.xlu0 %693  ;;  %v829_v4 = vpop.permute.xlu1 %828 }
 0x3c5   : > { %2423 = vpow2.f32 %v700_v53  ;;  %v697_v57 = vsub.f32 %v683_v36, %v694_v54  ;;  %v836_v27 = vmul.f32 %v829_v4, %v2555_v11 }
 0x3c7   : > { %v702_v58 = vmul.f32 1.442695, %v697_v57 }
 0x3c8   : > { %v831_v5 = vpop.permute.xlu0 %830  ;;  %v942_v8 = vpop.permute.xlu1 %941 }
 0x3c9   : > { %2425 = vpow2.f32 %v702_v58  ;;  %v837_v15 = vmul.f32 %v831_v5, %v2624_v33  ;;  %v949_v28 = vadd.f32 %v942_v8, %v836_v27  ;;  %v2733_v33 = vld [vmem:[%s2532_s17 + $0x10] sm:$0xf]  ;;  %v464_v27 = vmul.f32 %v2692_v14, %v2598_v17 }
 0x3cb   : > { %v2422_v59 = vpop.eup %2421 }
 0x3cc   : > { %v704_v60 = vsel %vm684_vm5, %v2422_v59, 0.0  ;;  %v940_v13 = vpop.permute.xlu0 %939  ;;  %v944_v22 = vpop.permute.xlu1 %943 }
 0x3cd   : > { %705 = vadd.xlane.f32.xlu0 %v704_v60  ;;  %v948_v19 = vadd.f32 %v940_v13, %v835_v9  ;;  %v950_v24 = vadd.f32 %v944_v22, %v837_v15 }
 0x3cf   : > { %v2424_v62 = vpop.eup %2423 }
 0x3d0   : > { %v707_v63 = vsel %vm684_vm5, %v2424_v62, 0.0 }
 0x3d1   : > { %708 = vadd.xlane.f32.xlu1 %v707_v63 }
 0x3d3   : > { %v2426_v2 = vpop.eup %2425 }
 0x3d4   : > { %v710_v3 = vsel %vm691_vm6, %v2426_v2, 0.0 }
 0x3d5   : > { %711 = vadd.xlane.f32.xlu0 %v710_v3 }
 0x3e2   : > { %723 = vrot.lane.b32.xlu1 %v2544_v7, %s2485_s29 }
 0x3e6   : > { %954 = vrot.lane.b32.xlu1 %v948_v19, %s2482_s27 }
 0x3ea   : > { %958 = vrot.lane.b32.xlu1 %v950_v24, %s2482_s27 }
 0x3eb   : > { %2407 = vrot.lane.b32.xlu0 %v2722_v25, %s2485_s29 }
 0x3ee   : > { %1208 = vrot.lane.b32.xlu1 %v2555_v11, %s2486_s30 }
 0x3ef   : > { %956 = vrot.lane.b32.xlu0 %v949_v28, %s2482_s27  ;;  %v465_v28 = vmul.f32 %v2694_v18, %v2601_v21 }
 0x3f3   : > { %1206 = vrot.lane.b32.xlu0 %v2541_v6, %s2486_s30 }
 0x3f7   : > { %1210 = vrot.lane.b32.xlu0 %v2733_v33, %s2486_s30 }
 0x45a   : > { %v706_v29 = vpop.xlane.xlu0 %705 }
 0x45b   : > { %2427 = vrcp.f32 %v706_v29  ;;  %v466_v29 = vmul.f32 %v2696_v20, %v2608_v26 }
 0x45e   : > { %v709_v30 = vpop.xlane.xlu1 %708 }
 0x45f   : > { %2429 = vrcp.f32 %v709_v30 }
 0x462   : > { %v712_v31 = vpop.xlane.xlu0 %711  ;;  %v724_v39 = vpop.permute.xlu1 %723 }
 0x463   : > { %2431 = vrcp.f32 %v712_v31 }
 0x465   : > { %v2428_v38 = vpop.eup %2427 }
 0x466   : > { %v2408_v34 = vpop.permute.xlu0 %2407  ;;  %v716_v40 = vmul.f32 %v2428_v38, %v2422_v59  ;;  %v955_v45 = vpop.permute.xlu1 %954 }
 0x467   : > { %v2410_v35 = vunpack.i.h.bf16 %v2408_v34  ;;  %v2409_v36 = vunpack.i.l.bf16 %v2408_v34 }
 0x469   : > { %v2354_v37 = vpack.c.bf16 %v2410_v35, %v2409_v36  ;;  %v2430_v41 = vpop.eup %2429 }
 0x46a   : > { %v717_v42 = vmul.f32 %v2430_v41, %v2424_v62 }
 0x46b   : > { %2355 = vmatpush3.bf16.msra.mxu0 %v2354_v37  ;;  %2362 = vmatpush3.bf16.msra.mxu1 %v2354_v37 }
 0x46c   : > { %2215 = vmatprep.subr.mxu0 %v2477_v1  ;;  %2256 = vmatprep.subr.mxu1 %v2477_v1 }
 0x46d   : > { %v2432_v43 = vpop.eup %2431 }
 0x46e   : > { %v718_v44 = vmul.f32 %v2432_v43, %v2426_v2 }
 0x46f   : > { %2216 = vmatpush3.msk.msra.mxu0 %vm736_vm7, %v724_v39  ;;  %2257 = vmatpush3.msk.msra.mxu1 %vm736_vm7, %v724_v39 }
 0x470   : > { %2218 = vmatmul.mubr.msk.f32.vlgmr.msra.gmra.mrb[12].mxu0 %vm684_vm5, %v716_v40  ;;  %2356 = vmatprep.subr.bf16.mxu0 %v2483_v32 }
 0x471   : > { %2220 = vmatprep.mubr.msk.f32.mxu0 %vm2478_vm0, %v2477_v1  ;;  %2363 = vmatprep.subr.bf16.mxu1 %v2483_v32 }
 0x474   : > { %2221 = vmatmul.mubr.msk.f32.gmra.mrb[14].mxu0 %vm684_vm5, %v717_v42 }
 0x475   : > { %2223 = vmatprep.mubr.msk.f32.mxu0 %vm2478_vm0, %v2477_v1 }
 0x476   : > { %2359 = vmatpush3.bf16.xpose.msk.msra.mxu0 %vm2642_vm4, %v2646_v56  ;;  %v957_v56 = vpop.permute.xlu0 %956 }
 0x477   : > { %2241 = vmatprep.subr.mxu0 %v2477_v1 }
 0x478   : > { %2224 = vmatmul.mubr.msk.f32.gmra.mrb[16].mxu0 %vm684_vm5, %v718_v44 }
 0x479   : > { %2243 = vmatprep.mubr.msk.f32.mxu0 %vm2478_vm0, %v2477_v1 }
 0x47a   : > { %v1207_v46 = vpop.permute.xlu0 %1206 }
 0x47e   : > { %2242 = vmatpush3.xpose.msk.msra.mxu0 %vm255_vm3, %v2659_v61  ;;  %v959_v61 = vpop.permute.xlu1 %958  ;;  %v1211_v48 = vpop.permute.xlu0 %1210 }
 0x47f   : > { %2267 = vmatprep.subr.mxu0 %v2477_v1 }
 0x481   : > { %2244 = vmatmul.mubr.msk.f32.vlgmr.msra.gmra.mrb[18].mxu0 %vm255_vm3, %v955_v45 }
 0x482   : > { %2246 = vmatprep.mubr.msk.f32.mxu0 %vm2478_vm0, %v2477_v1  ;;  %2268 = vmatpush3.msra.mxu0 %v2552_v10  ;;  %v1209_v47 = vpop.permute.xlu1 %1208 }
 0x483   : > { %2367 = vmatprep.subr.bf16.mxu0 %v2483_v32 }
 0x485   : > { %2247 = vmatmul.mubr.msk.f32.gmra.mrb[20].mxu0 %vm255_vm3, %v957_v56 }
 0x486   : > { %2249 = vmatprep.mubr.msk.f32.mxu0 %vm2478_vm0, %v2477_v1 }
 0x489   : > { %2250 = vmatmul.mubr.msk.f32.gmra.mrb[22].mxu0 %vm255_vm3, %v959_v61 }
 0x48a   : > { %2269 = vmatprep.mubr.msk.f32.mxu0 %vm2478_vm0, %v2477_v1 }
 0x48d   : > { %2270 = vmatmul.mubr.msk.f32.vlgmr.msra.gmra.mrb[24].mxu0 %vm255_vm3, %v1207_v46 }
 0x48e   : > { %2272 = vmatprep.mubr.msk.f32.mxu0 %vm2478_vm0, %v2477_v1 }
 0x491   : > { %2273 = vmatmul.mubr.msk.f32.gmra.mrb[26].mxu0 %vm255_vm3, %v1209_v47 }
 0x492   : > { %2275 = vmatprep.mubr.msk.f32.mxu0 %vm2478_vm0, %v2477_v1 }
 0x495   : > { %2276 = vmatmul.mubr.msk.f32.gmra.mrb[28].mxu0 %vm255_vm3, %v1211_v48 }
 0x496   : > { %2299 = vmatprep.mubr.msk.f32.mxu0 %vm2478_vm0, %v2477_v1 }
 0x543   : > { %v805_v49 = vpop.f32.mrb[12].mxu0 }
 0x544   : > { %819 = vst.msk [vmem:[%s2783_s6] sm:$0xff] %vm255_vm3, %v805_v49  ;;  %v2219_v50 = vpop.f32.mrb[13].mxu0 }
 0x547   : > { %v810_v51 = vpop.f32.mrb[14].mxu0 }
 0x548   : > { %820 = vst.msk [vmem:[%s2783_s6 + $0x8] sm:$0xff] %vm255_vm3, %v810_v51  ;;  %v2222_v52 = vpop.f32.mrb[15].mxu0 }
 0x54b   : > { %v815_v53 = vpop.f32.mrb[16].mxu0 }
 0x54c   : > { %822 = vst.msk [vmem:[%s2783_s6 + $0x10] sm:$0xf] %vm821_vm8, %v815_v53  ;;  %v2225_v54 = vpop.f32.mrb[17].mxu0 }
 0x554   : > { %v1032_v57 = vpop.f32.mrb[18].mxu0 }
 0x555   : > { %v1046_v58 = vmul.f32 0.35355338, %v1032_v57  ;;  %v2245_v59 = vpop.f32.mrb[19].mxu0 }
 0x557   : > { %v1049_v60 = vsel %vm684_vm5, %v1046_v58, -inf }
 0x558   : > { %1050 = vmax.xlane.f32.xlu1 %v1049_v60  ;;  %v1037_v62 = vpop.f32.mrb[20].mxu0 }
 0x559   : > { %v1047_v63 = vmul.f32 0.35355338, %v1037_v62  ;;  %v2248_v0 = vpop.f32.mrb[21].mxu0 }
 0x55b   : > { %v1052_v2 = vsel %vm684_vm5, %v1047_v63, -inf }
 0x55c   : > { %1053 = vmax.xlane.f32.xlu0 %v1052_v2  ;;  %v1042_v3 = vpop.f32.mrb[22].mxu0 }
 0x55d   : > { %v1048_v4 = vmul.f32 0.35355338, %v1042_v3  ;;  %v2251_v5 = vpop.f32.mrb[23].mxu0 }
 0x55f   : > { %v1055_v8 = vsel %vm691_vm6, %v1048_v4, -inf }
 0x560   : > { %1056 = vmax.xlane.f32.xlu0 %v1055_v8  ;;  %v1284_v9 = vpop.f32.mrb[24].mxu0 }
 0x561   : > { %v2271_v13 = vpop.f32.mrb[25].mxu0  ;;  %v1298_v30 = vmul.f32 %v1284_v9, %v2598_v17 }
 0x564   : > { %v1289_v15 = vpop.f32.mrb[26].mxu0 }
 0x565   : > { %v2274_v19 = vpop.f32.mrb[27].mxu0  ;;  %v1299_v31 = vmul.f32 %v1289_v15, %v2601_v21 }
 0x568   : > { %v1294_v22 = vpop.f32.mrb[28].mxu0 }
 0x569   : > { %360 = vrot.lane.b32.xlu1 %v2558_v12, %s2487_s7  ;;  %v2277_v24 = vpop.f32.mrb[29].mxu0  ;;  %v1300_v14 = vmul.f32 %v1294_v22, %v2608_v26 }
 0x56d   : > { %470 = vrot.lane.b32.xlu1 %v464_v27, %s2487_s7 }
 0x571   : > { %472 = vrot.lane.b32.xlu1 %v465_v28, %s2487_s7 }
 0x575   : > { %474 = vrot.lane.b32.xlu1 %v466_v29, %s2487_s7 }
 0x576   : > { %362 = vrot.lane.b32.xlu0 %v2590_v16, %s2487_s7 }
 0x579   : > { %1304 = vrot.lane.b32.xlu1 %v1298_v30, %s2488_s8 }
 0x57a   : > { %364 = vrot.lane.b32.xlu0 %v2605_v23, %s2487_s7 }
 0x57d   : > { %1306 = vrot.lane.b32.xlu1 %v1299_v31, %s2488_s8 }
 0x57e   : > { %1191 = vrot.lane.b32.xlu0 %v2558_v12, %s2488_s8 }
 0x581   : > { %1308 = vrot.lane.b32.xlu1 %v1300_v14, %s2488_s8 }
 0x582   : > { %1193 = vrot.lane.b32.xlu0 %v2590_v16, %s2488_s8 }
 0x586   : > { %1195 = vrot.lane.b32.xlu0 %v2605_v23, %s2488_s8 }
 0x5e5   : > { %v1051_v18 = vpop.xlane.xlu1 %1050 }
 0x5e6   : > { %v1058_v20 = vsub.f32 %v1046_v58, %v1051_v18 }
 0x5e8   : > { %v1061_v34 = vmul.f32 1.442695, %v1058_v20 }
 0x5e9   : > { %v1054_v35 = vpop.xlane.xlu0 %1053  ;;  %v361_v37 = vpop.permute.xlu1 %360 }
 0x5ea   : > { %2433 = vpow2.f32 %v1061_v34  ;;  %v1059_v36 = vsub.f32 %v1047_v63, %v1054_v35  ;;  %v369_v2 = vmul.f32 %v361_v37, %v2541_v6 }
 0x5ec   : > { %v1063_v38 = vmul.f32 1.442695, %v1059_v36 }
 0x5ed   : > { %v1057_v39 = vpop.xlane.xlu0 %1056  ;;  %v471_v42 = vpop.permute.xlu1 %470 }
 0x5ee   : > { %2435 = vpow2.f32 %v1063_v38  ;;  %v1060_v40 = vsub.f32 %v1048_v4, %v1057_v39  ;;  %v479_v8 = vadd.f32 %v471_v42, %v369_v2 }
 0x5f0   : > { %v1065_v41 = vmul.f32 1.442695, %v1060_v40 }
 0x5f1   : > { %v363_v43 = vpop.permute.xlu0 %362  ;;  %v473_v56 = vpop.permute.xlu1 %472 }
 0x5f2   : > { %2437 = vpow2.f32 %v1065_v41  ;;  %v370_v62 = vmul.f32 %v363_v43, %v2555_v11 }
 0x5f4   : > { %v2434_v44 = vpop.eup %2433  ;;  %v480_v4 = vadd.f32 %v473_v56, %v370_v62 }
 0x5f5   : > { %v1067_v45 = vsel %vm684_vm5, %v2434_v44, 0.0  ;;  %v365_v46 = vpop.permute.xlu0 %364  ;;  %v475_v49 = vpop.permute.xlu1 %474 }
 0x5f6   : > { %1068 = vadd.xlane.f32.xlu0 %v1067_v45  ;;  %v371_v54 = vmul.f32 %v365_v46, %v2544_v7  ;;  %v2411_v13 = vpack.i.bf16 %v480_v4, %v479_v8 }
 0x5f8   : > { %v2436_v61 = vpop.eup %2435  ;;  %v481_v60 = vadd.f32 %v475_v49, %v371_v54 }
 0x5f9   : > { %v1070_v47 = vsel %vm684_vm5, %v2436_v61, 0.0  ;;  %v1192_v50 = vpop.permute.xlu0 %1191  ;;  %v1305_v52 = vpop.permute.xlu1 %1304 }
 0x5fa   : > { %1071 = vadd.xlane.f32.xlu1 %v1070_v47  ;;  %v1200_v58 = vmul.f32 %v1192_v50, %v2541_v6 }
 0x5fc   : > { %v2438_v48 = vpop.eup %2437  ;;  %v1313_v63 = vadd.f32 %v1305_v52, %v1200_v58 }
 0x5fd   : > { %v1073_v51 = vsel %vm691_vm6, %v2438_v48, 0.0  ;;  %v1194_v53 = vpop.permute.xlu0 %1193  ;;  %v1307_v57 = vpop.permute.xlu1 %1306 }
 0x5fe   : > { %1074 = vadd.xlane.f32.xlu0 %v1073_v51  ;;  %v1201_v9 = vmul.f32 %v1194_v53, %v2555_v11 }
 0x600   : > { %v1314_v15 = vadd.f32 %v1307_v57, %v1201_v9 }
 0x601   : > { %v1196_v59 = vpop.permute.xlu0 %1195  ;;  %v1309_v3 = vpop.permute.xlu1 %1308 }
 0x602   : > { %v1202_v0 = vmul.f32 %v1196_v59, %v2733_v33  ;;  %v2833_v33 = vld [vmem:[%s2532_s17 + $0x10] sm:$0xf] }
 0x604   : > { %v1315_v5 = vadd.f32 %v1309_v3, %v1202_v0 }
 0x60b   : > { %1332 = vrot.lane.b32.xlu1 %v481_v60, %s2481_s26 }
 0x60f   : > { %1319 = vrot.lane.b32.xlu1 %v1313_v63, %s2486_s30 }
 0x613   : > { %1323 = vrot.lane.b32.xlu1 %v1315_v5, %s2486_s30 }
 0x614   : > { %2412 = vrot.lane.b32.xlu0 %v2411_v13, %s2481_s26 }
 0x617   : > { %1598 = vrot.lane.b32.xlu1 %v2555_v11, %s2489_s9 }
 0x618   : > { %1321 = vrot.lane.b32.xlu0 %v1314_v15, %s2486_s30 }
 0x61c   : > { %1596 = vrot.lane.b32.xlu0 %v2541_v6, %s2489_s9 }
 0x620   : > { %1600 = vrot.lane.b32.xlu0 %v2833_v33, %s2489_s9 }
 0x683   : > { %v1069_v19 = vpop.xlane.xlu0 %1068 }
 0x684   : > { %2439 = vrcp.f32 %v1069_v19 }
 0x687   : > { %v1072_v22 = vpop.xlane.xlu1 %1071 }
 0x688   : > { %2441 = vrcp.f32 %v1072_v22 }
 0x68b   : > { %v1075_v24 = vpop.xlane.xlu0 %1074  ;;  %v2849_v36 = vpop.permute.xlu1 %1332 }
 0x68c   : > { %2443 = vrcp.f32 %v1075_v24 }
 0x68e   : > { %v2440_v27 = vpop.eup %2439 }
 0x68f   : > { %v1079_v28 = vmul.f32 %v2440_v27, %v2434_v44  ;;  %v2413_v29 = vpop.permute.xlu0 %2412  ;;  %v1320_v37 = vpop.permute.xlu1 %1319 }
 0x690   : > { %v2415_v30 = vunpack.i.h.bf16 %v2413_v29  ;;  %v2414_v31 = vunpack.i.l.bf16 %v2413_v29 }
 0x691   : > { %2259 = vmatmul.mubr.msk.f32.vlgmr.msra.gmra.mrb[18].mxu1 %vm684_vm5, %v1079_v28 }
 0x692   : > { %v2442_v14 = vpop.eup %2441  ;;  %v2838_v18 = vpack.c.bf16 %v2415_v30, %v2414_v31  ;;  %2261 = vmatprep.mubr.msk.f32.mxu1 %vm2478_vm0, %v2477_v1 }
 0x693   : > { %v1080_v20 = vmul.f32 %v2442_v14, %v2436_v61  ;;  %v1322_v38 = vpop.permute.xlu0 %1321  ;;  %v1324_v39 = vpop.permute.xlu1 %1323 }
 0x694   : > { %2366 = vmatpush3.bf16.xpose.msk.msra.mxu1 %vm2642_vm4, %v2838_v18 }
 0x695   : > { %2262 = vmatmul.mubr.msk.f32.gmra.mrb[20].mxu1 %vm684_vm5, %v1080_v20  ;;  %2282 = vmatprep.subr.mxu1 %v2477_v1 }
 0x696   : > { %v2444_v34 = vpop.eup %2443  ;;  %2264 = vmatprep.mubr.msk.f32.mxu1 %vm2478_vm0, %v2477_v1 }
 0x697   : > { %v1081_v35 = vmul.f32 %v2444_v34, %v2438_v48  ;;  %v1597_v40 = vpop.permute.xlu0 %1596 }
 0x699   : > { %2265 = vmatmul.mubr.msk.f32.gmra.mrb[22].mxu1 %vm684_vm5, %v1081_v35 }
 0x69a   : > { %2284 = vmatprep.mubr.msk.f32.mxu1 %vm2478_vm0, %v2477_v1 }
 0x69b   : > { %v1601_v41 = vpop.permute.xlu0 %1600 }
 0x69c   : > { %2283 = vmatpush3.xpose.msk.msra.mxu1 %vm255_vm3, %v2849_v36 }
 0x69d   : > { %2308 = vmatprep.subr.mxu1 %v2477_v1 }
 0x69f   : > { %2285 = vmatmul.mubr.msk.f32.vlgmr.msra.gmra.mrb[24].mxu1 %vm255_vm3, %v1320_v37 }
 0x6a0   : > { %2287 = vmatprep.mubr.msk.f32.mxu1 %vm2478_vm0, %v2477_v1  ;;  %2309 = vmatpush3.msra.mxu1 %v2552_v10  ;;  %v1599_v10 = vpop.permute.xlu1 %1598 }
 0x6a1   : > { %2374 = vmatprep.subr.bf16.mxu1 %v2483_v32 }
 0x6a3   : > { %2288 = vmatmul.mubr.msk.f32.gmra.mrb[26].mxu1 %vm255_vm3, %v1322_v38 }
 0x6a4   : > { %2290 = vmatprep.mubr.msk.f32.mxu1 %vm2478_vm0, %v2477_v1 }
 0x6a7   : > { %2291 = vmatmul.mubr.msk.f32.gmra.mrb[28].mxu1 %vm255_vm3, %v1324_v39 }
 0x6a8   : > { %2310 = vmatprep.mubr.msk.f32.mxu1 %vm2478_vm0, %v2477_v1 }
 0x6ab   : > { %2311 = vmatmul.mubr.msk.f32.vlgmr.msra.gmra.mrb[30].mxu1 %vm255_vm3, %v1597_v40 }
 0x6ac   : > { %2313 = vmatprep.mubr.msk.f32.mxu1 %vm2478_vm0, %v2477_v1 }
 0x6af   : > { %2314 = vmatmul.mubr.msk.f32.gmra.mrb[32].mxu1 %vm255_vm3, %v1599_v10 }
 0x6b0   : > { %2316 = vmatprep.mubr.msk.f32.mxu1 %vm2478_vm0, %v2477_v1 }
 0x6b3   : > { %2317 = vmatmul.mubr.msk.f32.gmra.mrb[34].mxu1 %vm255_vm3, %v1601_v41 }
 0x6b4   : > { %2340 = vmatprep.mubr.msk.f32.mxu1 %vm2478_vm0, %v2477_v1 }
 0x764   : > { %v2877_v42 = vpop.f32.mrb[18].mxu1 }
 0x765   : > { %v2260_v43 = vpop.f32.mrb[19].mxu1 }
 0x768   : > { %v2879_v44 = vpop.f32.mrb[20].mxu1 }
 0x769   : > { %v2263_v45 = vpop.f32.mrb[21].mxu1 }
 0x76c   : > { %v2881_v56 = vpop.f32.mrb[22].mxu1 }
 0x76d   : > { %v2266_v61 = vpop.f32.mrb[23].mxu1 }
 0x772   : > { %v1412_v46 = vpop.f32.mrb[24].mxu1 }
 0x773   : > { %v1426_v47 = vmul.f32 0.35355338, %v1412_v46  ;;  %v2286_v48 = vpop.f32.mrb[25].mxu1 }
 0x775   : > { %v1429_v49 = vsel %vm684_vm5, %v1426_v47, -inf }
 0x776   : > { %1430 = vmax.xlane.f32.xlu1 %v1429_v49  ;;  %v1417_v50 = vpop.f32.mrb[26].mxu1 }
 0x777   : > { %v1427_v51 = vmul.f32 0.35355338, %v1417_v50  ;;  %v2289_v52 = vpop.f32.mrb[27].mxu1 }
 0x779   : > { %v1432_v53 = vsel %vm684_vm5, %v1427_v51, -inf }
 0x77a   : > { %1433 = vmax.xlane.f32.xlu0 %v1432_v53  ;;  %v1422_v54 = vpop.f32.mrb[28].mxu1 }
 0x77b   : > { %v1428_v57 = vmul.f32 0.35355338, %v1422_v54  ;;  %v2292_v58 = vpop.f32.mrb[29].mxu1 }
 0x77d   : > { %v1435_v59 = vsel %vm691_vm6, %v1428_v57, -inf }
 0x77e   : > { %1436 = vmax.xlane.f32.xlu0 %v1435_v59  ;;  %v1674_v60 = vpop.f32.mrb[30].mxu1 }
 0x77f   : > { %v2312_v62 = vpop.f32.mrb[31].mxu1  ;;  %v1688_v8 = vmul.f32 %v1674_v60, %v2598_v17 }
 0x782   : > { %v1679_v63 = vpop.f32.mrb[32].mxu1 }
 0x783   : > { %v2315_v0 = vpop.f32.mrb[33].mxu1  ;;  %v1689_v4 = vmul.f32 %v1679_v63, %v2601_v21 }
 0x786   : > { %v1684_v2 = vpop.f32.mrb[34].mxu1 }
 0x787   : > { %1581 = vrot.lane.b32.xlu1 %v2558_v12, %s2490_s10  ;;  %v2318_v3 = vpop.f32.mrb[35].mxu1  ;;  %v1690_v5 = vmul.f32 %v1684_v2, %v2608_v26 }
 0x78b   : > { %1583 = vrot.lane.b32.xlu1 %v2590_v16, %s2490_s10 }
 0x78f   : > { %1696 = vrot.lane.b32.xlu1 %v1689_v4, %s2490_s10 }
 0x793   : > { %1698 = vrot.lane.b32.xlu1 %v1690_v5, %s2490_s10 }
 0x794   : > { %1585 = vrot.lane.b32.xlu0 %v2605_v23, %s2490_s10 }
 0x798   : > { %1694 = vrot.lane.b32.xlu0 %v1688_v8, %s2490_s10 }
 0x803   : > { %v1431_v12 = vpop.xlane.xlu1 %1430 }
 0x804   : > { %v1438_v9 = vsub.f32 %v1426_v47, %v1431_v12 }
 0x806   : > { %v1441_v13 = vmul.f32 1.442695, %v1438_v9 }
 0x807   : > { %v1434_v15 = vpop.xlane.xlu0 %1433  ;;  %v1582_v28 = vpop.permute.xlu1 %1581 }
 0x808   : > { %2445 = vpow2.f32 %v1441_v13  ;;  %v1439_v16 = vsub.f32 %v1427_v51, %v1434_v15  ;;  %v1590_v34 = vmul.f32 %v1582_v28, %v2541_v6 }
 0x80a   : > { %v1443_v21 = vmul.f32 1.442695, %v1439_v16 }
 0x80b   : > { %v1437_v19 = vpop.xlane.xlu0 %1436  ;;  %v1584_v31 = vpop.permute.xlu1 %1583 }
 0x80c   : > { %2447 = vpow2.f32 %v1443_v21  ;;  %v1440_v22 = vsub.f32 %v1428_v57, %v1437_v19  ;;  %v1591_v10 = vmul.f32 %v1584_v31, %v2555_v11 }
 0x80e   : > { %v1445_v26 = vmul.f32 1.442695, %v1440_v22 }
 0x80f   : > { %v1586_v14 = vpop.permute.xlu0 %1585  ;;  %v1697_v20 = vpop.permute.xlu1 %1696 }
 0x810   : > { %2449 = vpow2.f32 %v1445_v26  ;;  %v1592_v37 = vmul.f32 %v1586_v14, %v2833_v33  ;;  %v1704_v41 = vadd.f32 %v1697_v20, %v1591_v10 }
 0x812   : > { %v2446_v24 = vpop.eup %2445 }
 0x813   : > { %v1447_v17 = vsel %vm684_vm5, %v2446_v24, 0.0  ;;  %v1695_v35 = vpop.permute.xlu0 %1694  ;;  %v1699_v39 = vpop.permute.xlu1 %1698 }
 0x814   : > { %1448 = vadd.xlane.f32.xlu0 %v1447_v17  ;;  %v1703_v38 = vadd.f32 %v1695_v35, %v1590_v34  ;;  %v1705_v40 = vadd.f32 %v1699_v39, %v1592_v37 }
 0x816   : > { %v2448_v27 = vpop.eup %2447 }
 0x817   : > { %v1450_v23 = vsel %vm684_vm5, %v2448_v27, 0.0 }
 0x818   : > { %1451 = vadd.xlane.f32.xlu1 %v1450_v23 }
 0x81a   : > { %v2450_v29 = vpop.eup %2449 }
 0x81b   : > { %v1453_v30 = vsel %vm691_vm6, %v2450_v29, 0.0 }
 0x81c   : > { %1454 = vadd.xlane.f32.xlu0 %v1453_v30 }
 0x829   : > { %1466 = vrot.lane.b32.xlu1 %v2544_v7, %s2491_s11 }
 0x82d   : > { %1709 = vrot.lane.b32.xlu1 %v1703_v38, %s2489_s9 }
 0x831   : > { %1713 = vrot.lane.b32.xlu1 %v1705_v40, %s2489_s9 }
 0x832   : > { %2417 = vrot.lane.b32.xlu0 %v2722_v25, %s2491_s11 }
 0x836   : > { %1711 = vrot.lane.b32.xlu0 %v1704_v41, %s2489_s9 }
 0x8a1   : > { %v1449_v6 = vpop.xlane.xlu0 %1448 }
 0x8a2   : > { %2451 = vrcp.f32 %v1449_v6 }
 0x8a5   : > { %v1452_v43 = vpop.xlane.xlu1 %1451 }
 0x8a6   : > { %2453 = vrcp.f32 %v1452_v43 }
 0x8a9   : > { %v1455_v7 = vpop.xlane.xlu0 %1454  ;;  %v1467_v11 = vpop.permute.xlu1 %1466 }
 0x8aa   : > { %2455 = vrcp.f32 %v1455_v7 }
 0x8ac   : > { %v2452_v47 = vpop.eup %2451 }
 0x8ad   : > { %v2418_v33 = vpop.permute.xlu0 %2417  ;;  %v1459_v25 = vmul.f32 %v2452_v47, %v2446_v24 }
 0x8ae   : > { %v2420_v45 = vunpack.i.h.bf16 %v2418_v33  ;;  %v2419_v61 = vunpack.i.l.bf16 %v2418_v33 }
 0x8b0   : > { %v2368_v46 = vpack.c.bf16 %v2420_v45, %v2419_v61  ;;  %v2454_v48 = vpop.eup %2453 }
 0x8b1   : > { %v1460_v49 = vmul.f32 %v2454_v48, %v2448_v27  ;;  %v1712_v52 = vpop.permute.xlu0 %1711 }
 0x8b2   : > { %2369 = vmatpush3.bf16.msra.mxu0 %v2368_v46  ;;  %2376 = vmatpush3.bf16.msra.mxu1 %v2368_v46 }
 0x8b3   : > { %2297 = vmatprep.subr.mxu0 %v2477_v1  ;;  %2338 = vmatprep.subr.mxu1 %v2477_v1 }
 0x8b4   : > { %v2456_v50 = vpop.eup %2455 }
 0x8b5   : > { %v1461_v51 = vmul.f32 %v2456_v50, %v2450_v29 }
 0x8b6   : > { %2298 = vmatpush3.msk.msra.mxu0 %vm736_vm7, %v1467_v11  ;;  %2339 = vmatpush3.msk.msra.mxu1 %vm736_vm7, %v1467_v11 }
 0x8b7   : > { %2300 = vmatmul.mubr.msk.f32.vlgmr.msra.gmra.mrb[30].mxu0 %vm684_vm5, %v1459_v25  ;;  %2370 = vmatprep.subr.bf16.mxu0 %v2483_v32  ;;  %v1710_v32 = vpop.permute.xlu1 %1709 }
 0x8b8   : > { %2302 = vmatprep.mubr.msk.f32.mxu0 %vm2478_vm0, %v2477_v1 }
 0x8bb   : > { %2303 = vmatmul.mubr.msk.f32.gmra.mrb[32].mxu0 %vm684_vm5, %v1460_v49  ;;  %v1714_v55 = vpop.permute.xlu1 %1713 }
 0x8bc   : > { %2305 = vmatprep.mubr.msk.f32.mxu0 %vm2478_vm0, %v2477_v1 }
 0x8bd   : > { %2373 = vmatpush3.bf16.xpose.msk.msra.mxu0 %vm2642_vm4, %v2838_v18 }
 0x8be   : > { %2323 = vmatprep.subr.mxu0 %v2477_v1 }
 0x8bf   : > { %2306 = vmatmul.mubr.msk.f32.gmra.mrb[34].mxu0 %vm684_vm5, %v1461_v51 }
 0x8c0   : > { %2325 = vmatprep.mubr.msk.f32.mxu0 %vm2478_vm0, %v2477_v1 }
 0x8c5   : > { %2324 = vmatpush3.xpose.msk.msra.mxu0 %vm255_vm3, %v2849_v36 }
 0x8c8   : > { %2326 = vmatmul.mubr.msk.f32.vlgmr.msra.gmra.mrb[36].mxu0 %vm255_vm3, %v1710_v32 }
 0x8c9   : > { %2328 = vmatprep.mubr.msk.f32.mxu0 %vm2478_vm0, %v2477_v1 }
 0x8cc   : > { %2329 = vmatmul.mubr.msk.f32.gmra.mrb[38].mxu0 %vm255_vm3, %v1712_v52 }
 0x8cd   : > { %2331 = vmatprep.mubr.msk.f32.mxu0 %vm2478_vm0, %v2477_v1 }
 0x8d0   : > { %2332 = vmatmul.mubr.msk.f32.gmra.mrb[40].mxu0 %vm255_vm3, %v1714_v55 }
 0x98a   : > { %v1547_v18 = vpop.f32.mrb[30].mxu0 }
 0x98b   : > { %v2301_v53 = vpop.f32.mrb[31].mxu0 }
 0x98e   : > { %v1552_v54 = vpop.f32.mrb[32].mxu0 }
 0x98f   : > { %v2304_v57 = vpop.f32.mrb[33].mxu0 }
 0x992   : > { %v1557_v36 = vpop.f32.mrb[34].mxu0 }
 0x993   : > { %v2307_v58 = vpop.f32.mrb[35].mxu0 }
 0x99b   : > { %v1787_v59 = vpop.f32.mrb[36].mxu0 }
 0x99c   : > { %v1801_v60 = vmul.f32 0.35355338, %v1787_v59  ;;  %v2327_v62 = vpop.f32.mrb[37].mxu0 }
 0x99e   : > { %v1804_v63 = vsel %vm684_vm5, %v1801_v60, -inf }
 0x99f   : > { %1805 = vmax.xlane.f32.xlu0 %v1804_v63  ;;  %v1792_v0 = vpop.f32.mrb[38].mxu0 }
 0x9a0   : > { %v1802_v2 = vmul.f32 0.35355338, %v1792_v0  ;;  %v2330_v3 = vpop.f32.mrb[39].mxu0 }
 0x9a2   : > { %v1807_v4 = vsel %vm684_vm5, %v1802_v2, -inf }
 0x9a3   : > { %1808 = vmax.xlane.f32.xlu1 %v1807_v4  ;;  %v1797_v5 = vpop.f32.mrb[40].mxu0 }
 0x9a4   : > { %v1803_v8 = vmul.f32 0.35355338, %v1797_v5  ;;  %v2333_v12 = vpop.f32.mrb[41].mxu0 }
 0x9a6   : > { %v1810_v9 = vsel %vm691_vm6, %v1803_v8, -inf }
 0x9a7   : > { %1811 = vmax.xlane.f32.xlu0 %v1810_v9 }
 0xa2c   : > { %v1806_v13 = vpop.xlane.xlu0 %1805 }
 0xa2d   : > { %v1813_v15 = vsub.f32 %v1801_v60, %v1806_v13 }
 0xa2f   : > { %v1816_v16 = vmul.f32 1.442695, %v1813_v15 }
 0xa30   : > { %v1809_v21 = vpop.xlane.xlu1 %1808 }
 0xa31   : > { %2457 = vpow2.f32 %v1816_v16  ;;  %v1814_v19 = vsub.f32 %v1802_v2, %v1809_v21 }
 0xa33   : > { %v1818_v22 = vmul.f32 1.442695, %v1814_v19 }
 0xa34   : > { %v1812_v26 = vpop.xlane.xlu0 %1811 }
 0xa35   : > { %2459 = vpow2.f32 %v1818_v22  ;;  %v1815_v24 = vsub.f32 %v1803_v8, %v1812_v26 }
 0xa37   : > { %v1820_v17 = vmul.f32 1.442695, %v1815_v24 }
 0xa39   : > { %2461 = vpow2.f32 %v1820_v17 }
 0xa3b   : > { %v2458_v27 = vpop.eup %2457 }
 0xa3c   : > { %v1822_v23 = vsel %vm684_vm5, %v2458_v27, 0.0 }
 0xa3d   : > { %1823 = vadd.xlane.f32.xlu0 %v1822_v23 }
 0xa3f   : > { %v2460_v28 = vpop.eup %2459 }
 0xa40   : > { %v1825_v29 = vsel %vm684_vm5, %v2460_v28, 0.0 }
 0xa41   : > { %1826 = vadd.xlane.f32.xlu1 %v1825_v29 }
 0xa43   : > { %v2462_v30 = vpop.eup %2461 }
 0xa44   : > { %v1828_v31 = vsel %vm691_vm6, %v2462_v30, 0.0 }
 0xa45   : > { %1829 = vadd.xlane.f32.xlu0 %v1828_v31 }
 0xa52   : > { %1174 = vrot.lane.b32.xlu1 %v2877_v42, %s2484_s28 }
 0xa56   : > { %1178 = vrot.lane.b32.xlu1 %v2881_v56, %s2484_s28 }
 0xa5a   : > { %1564 = vrot.lane.b32.xlu1 %v1547_v18, %s2488_s8 }
 0xa5b   : > { %1176 = vrot.lane.b32.xlu0 %v2879_v44, %s2484_s28 }
 0xa5e   : > { %1568 = vrot.lane.b32.xlu1 %v1557_v36, %s2488_s8 }
 0xa5f   : > { %1566 = vrot.lane.b32.xlu0 %v1552_v54, %s2488_s8 }
 0xaca   : > { %v1824_v14 = vpop.xlane.xlu0 %1823 }
 0xacb   : > { %2463 = vrcp.f32 %v1824_v14 }
 0xace   : > { %v1827_v20 = vpop.xlane.xlu1 %1826 }
 0xacf   : > { %2465 = vrcp.f32 %v1827_v20 }
 0xad2   : > { %v1830_v42 = vpop.xlane.xlu0 %1829  ;;  %v1175_v34 = vpop.permute.xlu1 %1174 }
 0xad3   : > { %2467 = vrcp.f32 %v1830_v42  ;;  %1184 = vst.msk [vmem:[%s2783_s6] sm:$0xff] %vm1183_vm9, %v1175_v34 }
 0xad5   : > { %v2464_v56 = vpop.eup %2463 }
 0xad6   : > { %v1834_v44 = vmul.f32 %v2464_v56, %v2458_v27  ;;  %v1177_v35 = vpop.permute.xlu0 %1176  ;;  %v1179_v37 = vpop.permute.xlu1 %1178 }
 0xad7   : > { %1185 = vst.msk [vmem:[%s2783_s6 + $0x8] sm:$0xff] %vm1183_vm9, %v1177_v35 }
 0xad8   : > { %1187 = vst.msk [vmem:[%s2783_s6 + $0x10] sm:$0xf] %vm1186_vm10, %v1179_v37  ;;  %2341 = vmatmul.mubr.msk.f32.vlgmr.msra.gmra.mrb[36].mxu1 %vm684_vm5, %v1834_v44 }
 0xad9   : > { %v2466_v38 = vpop.eup %2465  ;;  %2343 = vmatprep.mubr.msk.f32.mxu1 %vm2478_vm0, %v2477_v1 }
 0xada   : > { %v1567_v39 = vpop.permute.xlu0 %1566  ;;  %v1565_v40 = vpop.permute.xlu1 %1564  ;;  %v1835_v10 = vmul.f32 %v2466_v38, %v2460_v28 }
 0xadb   : > { %1575 = vst.msk [vmem:[%s2783_s6 + $0x8] sm:$0xff] %vm1573_vm11, %v1567_v39  ;;  %1574 = vst.msk [vmem:[%s2783_s6] sm:$0xff] %vm1573_vm11, %v1565_v40 }
 0xadc   : > { %2344 = vmatmul.mubr.msk.f32.gmra.mrb[38].mxu1 %vm684_vm5, %v1835_v10 }
 0xadd   : > { %v2468_v41 = vpop.eup %2467  ;;  %2346 = vmatprep.mubr.msk.f32.mxu1 %vm2478_vm0, %v2477_v1 }
 0xade   : > { %v1569_v6 = vpop.permute.xlu1 %1568  ;;  %v1836_v43 = vmul.f32 %v2468_v41, %v2462_v30 }
 0xadf   : > { %1577 = vst.msk [vmem:[%s2783_s6 + $0x10] sm:$0xf] %vm1576_vm12, %v1569_v6 }
 0xae0   : > { %2347 = vmatmul.mubr.msk.f32.gmra.mrb[40].mxu1 %vm684_vm5, %v1836_v43 }
 0xbab   : > { %v1912_v7 = vpop.f32.mrb[36].mxu1 }
 0xbac   : > { %1929 = vrot.lane.b32.xlu0 %v1912_v7, %s2490_s10  ;;  %v2342_v33 = vpop.f32.mrb[37].mxu1 }
 0xbaf   : > { %v1917_v45 = vpop.f32.mrb[38].mxu1 }
 0xbb0   : > { %1931 = vrot.lane.b32.xlu1 %v1917_v45, %s2490_s10  ;;  %v2345_v61 = vpop.f32.mrb[39].mxu1 }
 0xbb3   : > { %v1922_v46 = vpop.f32.mrb[40].mxu1 }
 0xbb4   : > { %1933 = vrot.lane.b32.xlu0 %v1922_v46, %s2490_s10  ;;  %v2348_v1 = vpop.f32.mrb[41].mxu1 }
 0xc1e   : > { %v1930_v47 = vpop.permute.xlu0 %1929 }
 0xc1f   : > { %1939 = vst.msk [vmem:[%s2783_s6] sm:$0xff] %vm1938_vm13, %v1930_v47 }
 0xc22   : > { %v1932_v11 = vpop.permute.xlu1 %1931 }
 0xc23   : > { %1940 = vst.msk [vmem:[%s2783_s6 + $0x8] sm:$0xff] %vm1938_vm13, %v1932_v11 }
 0xc26   : > { %v1934_v25 = vpop.permute.xlu0 %1933 }
 0xc27   : > { %1942 = vst.msk [vmem:[%s2783_s6 + $0x10] sm:$0xf] %vm1941_vm14, %v1934_v25 }
 0xc28 PF: > { %s13_s12 = sadd.s32 1, %s2475_s12  }
 0xc29   : > { %p10_p4 = scmp.ge.s32.totalorder %s13_s12, 4  }
 0xc2b   :  { %12 = sbr.rel (!%p10_p4) target bundleno = 1 (0x1), region = 68 }

</bundles_post_ra>
